<compile_context>
chip_gen: v6e
topology: v6e:2x2x1
jax: 0.10.0
libtpu: 0.0.40
codegen_flags: <defaults>
</compile_context>

<pallas_src>
import functools

import jax
import jax.numpy as jnp
from jax.experimental import pallas as pl
from jax.experimental.pallas import tpu as pltpu

PREC = jax.lax.Precision.HIGHEST   # reference path only


def _conv_out_len(w):
    # Conv with kernel 3, stride 2, padding 1 along the window axis.
    return (w - 1) // 2 + 1


def _ru(n, m):
    return ((n + m - 1) // m) * m


def _pad_to(a, shape):
    return jnp.pad(a, [(0, s - d) for d, s in zip(a.shape, shape)])


def voca_encoder_kernel(xf_ref, pid_ref,
                        w1_ref, b1_ref, w2_ref, b2_ref,
                        w3_ref, b3_ref, w4_ref, b4_ref,
                        f1h_ref, f1p_ref, f2w_ref, f2b_ref,
                        out_ref):
    # Conv stack: each layer is one block-Toeplitz matmul + bias + ReLU over a
    # lane-dense time-major activation (TB, wl*Cin_p) -> (TB, wout*Cout_p).
    h = xf_ref[...]                                          # (TB, KXp) bf16
    for w_ref, b_ref in ((w1_ref, b1_ref), (w2_ref, b2_ref),
                         (w3_ref, b3_ref), (w4_ref, b4_ref)):
        a = jnp.dot(h, w_ref[...], preferred_element_type=jnp.float32)
        h = jnp.maximum(a + b_ref[...], 0.0).astype(jnp.bfloat16)

    # fc1: channel-major flatten, pid concat and fc1 bias folded into weights.
    z = jnp.dot(pid_ref[...], f1p_ref[...], preferred_element_type=jnp.float32)
    z = z + jnp.dot(h, f1h_ref[...], preferred_element_type=jnp.float32)
    z = jnp.tanh(z).astype(jnp.bfloat16)                     # (TB, FC1p)

    out = jnp.dot(z, f2w_ref[...],
                  preferred_element_type=jnp.float32) + f2b_ref[...]
    out_ref[...] = out.astype(out_ref.dtype)                 # lane-dense (TB, EFp)


@functools.partial(jax.jit, static_argnames=('tile_b',))
def voca_encoder_forward(x_nchw, pid, params, *, tile_b=64):
    B, _, W, AF = x_nchw.shape
    BP = pid.shape[1]
    C1, C2, C3, C4 = (params[f'conv{i}_w'].shape[0] for i in range(1, 5))
    FC1, EF = params['fc1_w'].shape[0], params['fc2_w'].shape[0]
    eps = 1e-5

    widths = [W]
    for _ in range(4):
        widths.append(_conv_out_len(widths[-1]))             # per-layer widths
    wf = widths[4]                                            # final conv width

    AFp = _ru(AF, 16)
    PIDp = _ru(BP + 1, 16)
    C1p, C2p, C3p, C4p = (_ru(c, 128) for c in (C1, C2, C3, C4))
    FC1p, EFp = _ru(FC1, 128), _ru(EF, 128)
    Bp = _ru(B, tile_b)

    f32, bf16 = jnp.float32, jnp.bfloat16

    # ---- activations: lane-dense time-major flatten + augmented [pid | 1] ----
    KX = W * AFp + PIDp
    KXp = _ru(KX, 128)
    xs = _pad_to(x_nchw[:, 0].astype(f32), (B, W, AFp)).reshape(B, W * AFp)
    pid_aug = jnp.concatenate([pid.astype(f32), jnp.ones((B, 1), f32)], axis=1)
    xf = jnp.concatenate([xs, _pad_to(pid_aug, (B, PIDp))], axis=1)
    xf = _pad_to(xf, (Bp, KXp)).astype(bf16)                  # (Bp, KXp)
    pid_aug_p = _pad_to(pid_aug, (Bp, PIDp)).astype(bf16)     # (Bp, PIDp)

    # ---- conv1 block-Toeplitz: BN scale folded into x rows, pid channels and
    #      folded BN shift on the augmented rows (zero-padding respected). ----
    scale = params['bn_gamma'] / jnp.sqrt(params['bn_var'] + eps)
    shift = params['bn_beta'] - params['bn_mean'] * scale
    w1 = params['conv1_w'][..., 0]                            # (C1, AF+BP, 3)
    wout1 = widths[1]
    ones_row = W * AFp + BP
    wt1 = jnp.zeros((KXp, wout1 * C1p), f32)
    bt1 = jnp.zeros((1, wout1 * C1p), f32)
    for t in range(wout1):
        c0 = t * C1p
        for k in range(3):
            tp = 2 * t - 1 + k                                # padding=1, stride=2
            if 0 <= tp < W:                                   # zero pad -> skip tap
                wt1 = wt1.at[tp * AFp:tp * AFp + AF, c0:c0 + C1].set(
                    (w1[:, :AF, k] * scale).T)
                wt1 = wt1.at[W * AFp:W * AFp + BP, c0:c0 + C1].add(
                    w1[:, AF:, k].T)
                wt1 = wt1.at[ones_row, c0:c0 + C1].add(
                    shift * jnp.sum(w1[:, :AF, k], axis=1))
        bt1 = bt1.at[0, c0:c0 + C1].set(params['conv1_b'])
    wt1 = wt1.astype(bf16)

    # ---- conv2..4 block-Toeplitz weights + per-tap broadcast biases ----
    def conv_toeplitz(idx, wl, cin, cinp, cout, coutp):
        w = params[f'conv{idx}_w'][..., 0]                    # (cout, cin, 3)
        bvec = params[f'conv{idx}_b']
        wout = _conv_out_len(wl)
        wt = jnp.zeros((wl * cinp, wout * coutp), f32)
        bt = jnp.zeros((1, wout * coutp), f32)
        for t in range(wout):
            for k in range(3):
                tp = 2 * t - 1 + k
                if 0 <= tp < wl:
                    wt = wt.at[tp * cinp:tp * cinp + cin,
                               t * coutp:t * coutp + cout].set(w[:, :, k].T)
            bt = bt.at[0, t * coutp:t * coutp + cout].set(bvec)
        return wt.astype(bf16), bt

    wt2, bt2 = conv_toeplitz(2, widths[1], C1, C1p, C2, C2p)
    wt3, bt3 = conv_toeplitz(3, widths[2], C2, C2p, C3, C3p)
    wt4, bt4 = conv_toeplitz(4, widths[3], C3, C3p, C4, C4p)

    # ---- fc1: fold channel-major flatten, pid concat and fc1 bias ----
    hpart = params['fc1_w'][:, :C4 * wf].reshape(FC1, C4, wf)  # [f, c, w]
    f1h = jnp.zeros((wf * C4p, FC1p), f32)
    for w in range(wf):
        f1h = f1h.at[w * C4p:w * C4p + C4, :FC1].set(hpart[:, :, w].T)
    f1h = f1h.astype(bf16)
    f1p = jnp.zeros((PIDp, FC1p), f32)
    f1p = f1p.at[:BP, :FC1].set(params['fc1_w'][:, C4 * wf:].T)
    f1p = f1p.at[BP, :FC1].set(params['fc1_b'])                # bias on ones row
    f1p = f1p.astype(bf16)

    f2w = _pad_to(params['fc2_w'].T, (FC1p, EFp)).astype(bf16)
    f2b = _pad_to(params['fc2_b'][None, :], (1, EFp)).astype(f32)

    weights = (wt1, bt1, wt2, bt2, wt3, bt3, wt4, bt4, f1h, f1p, f2w, f2b)

    def const_spec(a):
        nd = a.ndim
        return pl.BlockSpec(a.shape, lambda b, _nd=nd: (0,) * _nd)

    out = pl.pallas_call(
        voca_encoder_kernel,
        out_shape=jax.ShapeDtypeStruct((Bp, EFp), jnp.float32),
        grid=(Bp // tile_b,),
        in_specs=[pl.BlockSpec((tile_b, KXp), lambda b: (b, 0)),
                  pl.BlockSpec((tile_b, PIDp), lambda b: (b, 0))]
                 + [const_spec(a) for a in weights],
        out_specs=pl.BlockSpec((tile_b, EFp), lambda b: (b, 0)),
        compiler_params=pltpu.CompilerParams(
            dimension_semantics=("parallel",)),
    )(xf, pid_aug_p, *weights)

    return out[:B, :EF]


def _q_bf16(a):
    # Round to bf16-representable f32 so the bf16 MXU path is compared fairly.
    return a.astype(jnp.bfloat16).astype(jnp.float32)


def init_params(key, audio_features, audio_window_size, base_persons,
                encoder_features):
    channels = (32, 32, 64, 64)
    fc1_channels = 128
    wf = audio_window_size
    for _ in range(4):
        wf = _conv_out_len(wf)
    keys = jax.random.split(key, 12)
    p = {'bn_gamma': jnp.float32(1.2), 'bn_beta': jnp.float32(0.1),
         'bn_mean': jnp.float32(0.05), 'bn_var': jnp.float32(0.8)}
    ki = 0
    in_c = audio_features + base_persons
    for i, out_c in enumerate(channels):
        p[f'conv{i + 1}_w'] = _q_bf16(0.1 * jax.random.normal(
            keys[ki], (out_c, in_c, 3, 1), jnp.float32)); ki += 1
        p[f'conv{i + 1}_b'] = _q_bf16(0.1 * jax.random.normal(
            keys[ki], (out_c,), jnp.float32)); ki += 1
        in_c = out_c
    in_f = in_c * wf + base_persons
    p['fc1_w'] = _q_bf16(0.1 * jax.random.normal(
        keys[ki], (fc1_channels, in_f), jnp.float32)); ki += 1
    p['fc1_b'] = _q_bf16(0.1 * jax.random.normal(
        keys[ki], (fc1_channels,), jnp.float32)); ki += 1
    p['fc2_w'] = _q_bf16(0.1 * jax.random.normal(
        keys[ki], (encoder_features, fc1_channels), jnp.float32)); ki += 1
    p['fc2_b'] = _q_bf16(0.1 * jax.random.normal(
        keys[ki], (encoder_features,), jnp.float32)); ki += 1
    return p


def voca_encoder_reference(x_nchw, pid, params):
    # Pure-JAX mirror of the PyTorch forward (eval-mode BN), f32 / HIGHEST.
    eps = 1e-5
    scale = params['bn_gamma'] / jnp.sqrt(params['bn_var'] + eps)
    shift = params['bn_beta'] - params['bn_mean'] * scale
    x = x_nchw * scale + shift
    x = jnp.transpose(x, (0, 3, 2, 1))                    # (B, AF, W, 1)
    B, _, W, _ = x.shape
    y = jnp.broadcast_to(pid[:, :, None, None], (B, pid.shape[1], W, 1))
    x = jnp.concatenate([x, y], axis=1)
    for i in range(1, 5):
        w = params[f'conv{i}_w']
        b = params[f'conv{i}_b']
        x = jax.lax.conv_general_dilated(
            x, w, window_strides=(2, 1), padding=((1, 1), (0, 0)),
            dimension_numbers=('NCHW', 'OIHW', 'NCHW'), precision=PREC)
        x = jnp.maximum(x + b.reshape(1, -1, 1, 1), 0.0)
    x = x.reshape(B, -1)
    x = jnp.concatenate([x, pid], axis=1)
    x = jnp.tanh(jnp.dot(x, params['fc1_w'].T, precision=PREC) + params['fc1_b'])
    return jnp.dot(x, params['fc2_w'].T, precision=PREC) + params['fc2_b']


if __name__ == "__main__":
    B = 128                     # small, but >1 grid step to exercise the pipeline
    audio_features = 12
    audio_window_size = 16      # 16 -> 8 -> 4 -> 2 -> 1, as the module expects
    base_persons = 4
    encoder_features = 8
    tile_b = 64

    key = jax.random.PRNGKey(0)
    kx, kp, kparams = jax.random.split(key, 3)
    x = _q_bf16(jax.random.normal(
        kx, (B, 1, audio_window_size, audio_features), jnp.float32))
    pid = _q_bf16(jax.random.normal(kp, (B, base_persons), jnp.float32))
    params = init_params(kparams, audio_features, audio_window_size,
                         base_persons, encoder_features)

    out = voca_encoder_forward(x, pid, params, tile_b=tile_b)
    out = jax.block_until_ready(out)

    ref = voca_encoder_reference(x, pid, params)
    assert out.shape == (B, encoder_features), out.shape
    assert jnp.allclose(out, ref, atol=3e-2, rtol=3e-2), \
        float(jnp.max(jnp.abs(out - ref)))

    print("KERNEL_OK")
</pallas_src>

<mosaic_0001>
module attributes {stable_mosaic.version = 11 : i64} {
  func.func @voca_encoder_kernel(%arg0: i32, %arg1: memref<64x384xbf16, #tpu.memory_space<vmem>>, %arg2: memref<64x16xbf16, #tpu.memory_space<vmem>>, %arg3: memref<384x1024xbf16, #tpu.memory_space<vmem>>, %arg4: memref<1x1024xf32, #tpu.memory_space<vmem>>, %arg5: memref<1024x512xbf16, #tpu.memory_space<vmem>>, %arg6: memref<1x512xf32, #tpu.memory_space<vmem>>, %arg7: memref<512x256xbf16, #tpu.memory_space<vmem>>, %arg8: memref<1x256xf32, #tpu.memory_space<vmem>>, %arg9: memref<256x128xbf16, #tpu.memory_space<vmem>>, %arg10: memref<1x128xf32, #tpu.memory_space<vmem>>, %arg11: memref<128x128xbf16, #tpu.memory_space<vmem>>, %arg12: memref<16x128xbf16, #tpu.memory_space<vmem>>, %arg13: memref<128x128xbf16, #tpu.memory_space<vmem>>, %arg14: memref<1x128xf32, #tpu.memory_space<vmem>>, %arg15: memref<64x128xf32, #tpu.memory_space<vmem>>) attributes {dimension_semantics = [#tpu.dimension_semantics<parallel>], iteration_bounds = array<i64: 2>, scalar_prefetch = 0 : i64, scratch_operands = 0 : i64, tpu.core_type = #tpu.core_type<tc>, window_params = [{transform_indices = @transform_0, window_bounds = array<i64: 64, 384>}, {transform_indices = @transform_1, window_bounds = array<i64: 64, 16>}, {pipeline_mode = #tpu.pipeline_mode<synchronous>, transform_indices = @transform_2, window_bounds = array<i64: 384, 1024>}, {pipeline_mode = #tpu.pipeline_mode<synchronous>, transform_indices = @transform_3, window_bounds = array<i64: 1, 1024>}, {pipeline_mode = #tpu.pipeline_mode<synchronous>, transform_indices = @transform_4, window_bounds = array<i64: 1024, 512>}, {pipeline_mode = #tpu.pipeline_mode<synchronous>, transform_indices = @transform_5, window_bounds = array<i64: 1, 512>}, {pipeline_mode = #tpu.pipeline_mode<synchronous>, transform_indices = @transform_6, window_bounds = array<i64: 512, 256>}, {pipeline_mode = #tpu.pipeline_mode<synchronous>, transform_indices = @transform_7, window_bounds = array<i64: 1, 256>}, {pipeline_mode = #tpu.pipeline_mode<synchronous>, transform_indices = @transform_8, window_bounds = array<i64: 256, 128>}, {pipeline_mode = #tpu.pipeline_mode<synchronous>, transform_indices = @transform_9, window_bounds = array<i64: 1, 128>}, {pipeline_mode = #tpu.pipeline_mode<synchronous>, transform_indices = @transform_10, window_bounds = array<i64: 128, 128>}, {pipeline_mode = #tpu.pipeline_mode<synchronous>, transform_indices = @transform_11, window_bounds = array<i64: 16, 128>}, {pipeline_mode = #tpu.pipeline_mode<synchronous>, transform_indices = @transform_12, window_bounds = array<i64: 128, 128>}, {pipeline_mode = #tpu.pipeline_mode<synchronous>, transform_indices = @transform_13, window_bounds = array<i64: 1, 128>}, {transform_indices = @transform_14, window_bounds = array<i64: 64, 128>}]} {
    %c0 = arith.constant 0 : index
    %c0_0 = arith.constant 0 : index
    %0 = vector.load %arg1[%c0, %c0_0] : memref<64x384xbf16, #tpu.memory_space<vmem>>, vector<64x384xbf16>
    %c0_1 = arith.constant 0 : index
    %c0_2 = arith.constant 0 : index
    %1 = vector.load %arg3[%c0_1, %c0_2] : memref<384x1024xbf16, #tpu.memory_space<vmem>>, vector<384x1024xbf16>
    %cst = arith.constant dense<0.000000e+00> : vector<64x1024xf32>
    %2 = tpu.matmul %0, %1, %cst {dimension_numbers = #tpu.dot_dimension_numbers<[1], [0], [0], [1], [0, 0, 1, 1], [], []>} : vector<64x384xbf16>, vector<384x1024xbf16>, vector<64x1024xf32> -> vector<64x1024xf32>
    %c0_3 = arith.constant 0 : index
    %c0_4 = arith.constant 0 : index
    %3 = vector.load %arg4[%c0_3, %c0_4] : memref<1x1024xf32, #tpu.memory_space<vmem>>, vector<1x1024xf32>
    %4 = vector.broadcast %3 : vector<1x1024xf32> to vector<64x1024xf32>
    %5 = arith.addf %2, %4 : vector<64x1024xf32>
    %cst_5 = arith.constant 0.000000e+00 : f32
    %6 = vector.broadcast %cst_5 : f32 to vector<64x1024xf32>
    %7 = arith.maximumf %5, %6 : vector<64x1024xf32>
    %8 = arith.truncf %7 : vector<64x1024xf32> to vector<64x1024xbf16>
    %c0_6 = arith.constant 0 : index
    %c0_7 = arith.constant 0 : index
    %9 = vector.load %arg5[%c0_6, %c0_7] : memref<1024x512xbf16, #tpu.memory_space<vmem>>, vector<1024x512xbf16>
    %cst_8 = arith.constant dense<0.000000e+00> : vector<64x512xf32>
    %10 = tpu.matmul %8, %9, %cst_8 {dimension_numbers = #tpu.dot_dimension_numbers<[1], [0], [0], [1], [0, 0, 1, 1], [], []>} : vector<64x1024xbf16>, vector<1024x512xbf16>, vector<64x512xf32> -> vector<64x512xf32>
    %c0_9 = arith.constant 0 : index
    %c0_10 = arith.constant 0 : index
    %11 = vector.load %arg6[%c0_9, %c0_10] : memref<1x512xf32, #tpu.memory_space<vmem>>, vector<1x512xf32>
    %12 = vector.broadcast %11 : vector<1x512xf32> to vector<64x512xf32>
    %13 = arith.addf %10, %12 : vector<64x512xf32>
    %cst_11 = arith.constant 0.000000e+00 : f32
    %14 = vector.broadcast %cst_11 : f32 to vector<64x512xf32>
    %15 = arith.maximumf %13, %14 : vector<64x512xf32>
    %16 = arith.truncf %15 : vector<64x512xf32> to vector<64x512xbf16>
    %c0_12 = arith.constant 0 : index
    %c0_13 = arith.constant 0 : index
    %17 = vector.load %arg7[%c0_12, %c0_13] : memref<512x256xbf16, #tpu.memory_space<vmem>>, vector<512x256xbf16>
    %cst_14 = arith.constant dense<0.000000e+00> : vector<64x256xf32>
    %18 = tpu.matmul %16, %17, %cst_14 {dimension_numbers = #tpu.dot_dimension_numbers<[1], [0], [0], [1], [0, 0, 1, 1], [], []>} : vector<64x512xbf16>, vector<512x256xbf16>, vector<64x256xf32> -> vector<64x256xf32>
    %c0_15 = arith.constant 0 : index
    %c0_16 = arith.constant 0 : index
    %19 = vector.load %arg8[%c0_15, %c0_16] : memref<1x256xf32, #tpu.memory_space<vmem>>, vector<1x256xf32>
    %20 = vector.broadcast %19 : vector<1x256xf32> to vector<64x256xf32>
    %21 = arith.addf %18, %20 : vector<64x256xf32>
    %cst_17 = arith.constant 0.000000e+00 : f32
    %22 = vector.broadcast %cst_17 : f32 to vector<64x256xf32>
    %23 = arith.maximumf %21, %22 : vector<64x256xf32>
    %24 = arith.truncf %23 : vector<64x256xf32> to vector<64x256xbf16>
    %c0_18 = arith.constant 0 : index
    %c0_19 = arith.constant 0 : index
    %25 = vector.load %arg9[%c0_18, %c0_19] : memref<256x128xbf16, #tpu.memory_space<vmem>>, vector<256x128xbf16>
    %cst_20 = arith.constant dense<0.000000e+00> : vector<64x128xf32>
    %26 = tpu.matmul %24, %25, %cst_20 {dimension_numbers = #tpu.dot_dimension_numbers<[1], [0], [0], [1], [0, 0, 1, 1], [], []>} : vector<64x256xbf16>, vector<256x128xbf16>, vector<64x128xf32> -> vector<64x128xf32>
    %c0_21 = arith.constant 0 : index
    %c0_22 = arith.constant 0 : index
    %27 = vector.load %arg10[%c0_21, %c0_22] : memref<1x128xf32, #tpu.memory_space<vmem>>, vector<1x128xf32>
    %28 = vector.broadcast %27 : vector<1x128xf32> to vector<64x128xf32>
    %29 = arith.addf %26, %28 : vector<64x128xf32>
    %cst_23 = arith.constant 0.000000e+00 : f32
    %30 = vector.broadcast %cst_23 : f32 to vector<64x128xf32>
    %31 = arith.maximumf %29, %30 : vector<64x128xf32>
    %32 = arith.truncf %31 : vector<64x128xf32> to vector<64x128xbf16>
    %c0_24 = arith.constant 0 : index
    %c0_25 = arith.constant 0 : index
    %33 = vector.load %arg2[%c0_24, %c0_25] : memref<64x16xbf16, #tpu.memory_space<vmem>>, vector<64x16xbf16>
    %c0_26 = arith.constant 0 : index
    %c0_27 = arith.constant 0 : index
    %34 = vector.load %arg12[%c0_26, %c0_27] : memref<16x128xbf16, #tpu.memory_space<vmem>>, vector<16x128xbf16>
    %cst_28 = arith.constant dense<0.000000e+00> : vector<64x128xf32>
    %35 = tpu.matmul %33, %34, %cst_28 {dimension_numbers = #tpu.dot_dimension_numbers<[1], [0], [0], [1], [0, 0, 1, 1], [], []>} : vector<64x16xbf16>, vector<16x128xbf16>, vector<64x128xf32> -> vector<64x128xf32>
    %c0_29 = arith.constant 0 : index
    %c0_30 = arith.constant 0 : index
    %36 = vector.load %arg11[%c0_29, %c0_30] : memref<128x128xbf16, #tpu.memory_space<vmem>>, vector<128x128xbf16>
    %cst_31 = arith.constant dense<0.000000e+00> : vector<64x128xf32>
    %37 = tpu.matmul %32, %36, %cst_31 {dimension_numbers = #tpu.dot_dimension_numbers<[1], [0], [0], [1], [0, 0, 1, 1], [], []>} : vector<64x128xbf16>, vector<128x128xbf16>, vector<64x128xf32> -> vector<64x128xf32>
    %38 = arith.addf %35, %37 : vector<64x128xf32>
    %39 = math.tanh %38 : vector<64x128xf32>
    %40 = arith.truncf %39 : vector<64x128xf32> to vector<64x128xbf16>
    %c0_32 = arith.constant 0 : index
    %c0_33 = arith.constant 0 : index
    %41 = vector.load %arg13[%c0_32, %c0_33] : memref<128x128xbf16, #tpu.memory_space<vmem>>, vector<128x128xbf16>
    %cst_34 = arith.constant dense<0.000000e+00> : vector<64x128xf32>
    %42 = tpu.matmul %40, %41, %cst_34 {dimension_numbers = #tpu.dot_dimension_numbers<[1], [0], [0], [1], [0, 0, 1, 1], [], []>} : vector<64x128xbf16>, vector<128x128xbf16>, vector<64x128xf32> -> vector<64x128xf32>
    %c0_35 = arith.constant 0 : index
    %c0_36 = arith.constant 0 : index
    %43 = vector.load %arg14[%c0_35, %c0_36] : memref<1x128xf32, #tpu.memory_space<vmem>>, vector<1x128xf32>
    %44 = vector.broadcast %43 : vector<1x128xf32> to vector<64x128xf32>
    %45 = arith.addf %42, %44 : vector<64x128xf32>
    %c0_37 = arith.constant 0 : index
    %c0_38 = arith.constant 0 : index
    %46 = vector.load %arg15[%c0_37, %c0_38] : memref<64x128xf32, #tpu.memory_space<vmem>>, vector<64x128xf32>
    tpu.vector_store %arg15[%c0_37, %c0_38], %45 {strides = array<i32>} : memref<64x128xf32, #tpu.memory_space<vmem>>, vector<64x128xf32>,
    return
  }
  func.func @transform_0(%arg0: i32) -> (i32, i32) {
    %c0_i32 = arith.constant 0 : i32
    %c0_i32_0 = arith.constant 0 : i32
    return %arg0, %c0_i32 : i32, i32
  }
  func.func @transform_1(%arg0: i32) -> (i32, i32) {
    %c0_i32 = arith.constant 0 : i32
    %c0_i32_0 = arith.constant 0 : i32
    return %arg0, %c0_i32 : i32, i32
  }
  func.func @transform_2(%arg0: i32) -> (i32, i32) {
    %c0_i32 = arith.constant 0 : i32
    %c0_i32_0 = arith.constant 0 : i32
    %c0_i32_1 = arith.constant 0 : i32
    return %c0_i32, %c0_i32_0 : i32, i32
  }
  func.func @transform_3(%arg0: i32) -> (i32, i32) {
    %c0_i32 = arith.constant 0 : i32
    %c0_i32_0 = arith.constant 0 : i32
    %c0_i32_1 = arith.constant 0 : i32
    return %c0_i32, %c0_i32_0 : i32, i32
  }
  func.func @transform_4(%arg0: i32) -> (i32, i32) {
    %c0_i32 = arith.constant 0 : i32
    %c0_i32_0 = arith.constant 0 : i32
    %c0_i32_1 = arith.constant 0 : i32
    return %c0_i32, %c0_i32_0 : i32, i32
  }
  func.func @transform_5(%arg0: i32) -> (i32, i32) {
    %c0_i32 = arith.constant 0 : i32
    %c0_i32_0 = arith.constant 0 : i32
    %c0_i32_1 = arith.constant 0 : i32
    return %c0_i32, %c0_i32_0 : i32, i32
  }
  func.func @transform_6(%arg0: i32) -> (i32, i32) {
    %c0_i32 = arith.constant 0 : i32
    %c0_i32_0 = arith.constant 0 : i32
    %c0_i32_1 = arith.constant 0 : i32
    return %c0_i32, %c0_i32_0 : i32, i32
  }
  func.func @transform_7(%arg0: i32) -> (i32, i32) {
    %c0_i32 = arith.constant 0 : i32
    %c0_i32_0 = arith.constant 0 : i32
    %c0_i32_1 = arith.constant 0 : i32
    return %c0_i32, %c0_i32_0 : i32, i32
  }
  func.func @transform_8(%arg0: i32) -> (i32, i32) {
    %c0_i32 = arith.constant 0 : i32
    %c0_i32_0 = arith.constant 0 : i32
    %c0_i32_1 = arith.constant 0 : i32
    return %c0_i32, %c0_i32_0 : i32, i32
  }
  func.func @transform_9(%arg0: i32) -> (i32, i32) {
    %c0_i32 = arith.constant 0 : i32
    %c0_i32_0 = arith.constant 0 : i32
    %c0_i32_1 = arith.constant 0 : i32
    return %c0_i32, %c0_i32_0 : i32, i32
  }
  func.func @transform_10(%arg0: i32) -> (i32, i32) {
    %c0_i32 = arith.constant 0 : i32
    %c0_i32_0 = arith.constant 0 : i32
    %c0_i32_1 = arith.constant 0 : i32
    return %c0_i32, %c0_i32_0 : i32, i32
  }
  func.func @transform_11(%arg0: i32) -> (i32, i32) {
    %c0_i32 = arith.constant 0 : i32
    %c0_i32_0 = arith.constant 0 : i32
    %c0_i32_1 = arith.constant 0 : i32
    return %c0_i32, %c0_i32_0 : i32, i32
  }
  func.func @transform_12(%arg0: i32) -> (i32, i32) {
    %c0_i32 = arith.constant 0 : i32
    %c0_i32_0 = arith.constant 0 : i32
    %c0_i32_1 = arith.constant 0 : i32
    return %c0_i32, %c0_i32_0 : i32, i32
  }
  func.func @transform_13(%arg0: i32) -> (i32, i32) {
    %c0_i32 = arith.constant 0 : i32
    %c0_i32_0 = arith.constant 0 : i32
    %c0_i32_1 = arith.constant 0 : i32
    return %c0_i32, %c0_i32_0 : i32, i32
  }
  func.func @transform_14(%arg0: i32) -> (i32, i32) {
    %c0_i32 = arith.constant 0 : i32
    %c0_i32_0 = arith.constant 0 : i32
    return %arg0, %c0_i32 : i32, i32
  }
}

</mosaic_0001>

<bundles_post_ra>
// kernel: voca_encoder_forward.1
= control target key start
LH: loop header
LB: loop body
LE: loop exit
PB: predicated region body
PF: predicated region fallthrough
CT: control target
= control target key end

     0   :  { %s7248_s29 = smov 0   ;;  %s9592_s0 = inlined_call_operand.vmem [shape: bf16[128,384], index: 0, kind: input, shape index: {}]   ;;  %s9593_s1 = inlined_call_operand.vmem [shape: bf16[128,16], index: 1, kind: input, shape index: {}]   ;;  %s9594_s2 = inlined_call_operand.vmem [shape: bf16[384,1024], index: 2, kind: input, shape index: {}]   ;;  %s9595_s3 = inlined_call_operand.vmem [shape: f32[1,1024], index: 3, kind: input, shape index: {}]   ;;  %s9596_s4 = inlined_call_operand.vmem [shape: bf16[1024,512], index: 4, kind: input, shape index: {}]   ;;  %s9597_s5 = inlined_call_operand.vmem [shape: f32[1,512], index: 5, kind: input, shape index: {}]   ;;  %s9598_s6 = inlined_call_operand.vmem [shape: bf16[512,256], index: 6, kind: input, shape index: {}]   ;;  %s9599_s7 = inlined_call_operand.vmem [shape: f32[1,256], index: 7, kind: input, shape index: {}]   ;;  %s9600_s8 = inlined_call_operand.vmem [shape: bf16[256,128], index: 8, kind: input, shape index: {}]   ;;  %s9601_s9 = inlined_call_operand.vmem [shape: f32[1,128], index: 9, kind: input, shape index: {}]   ;;  %s9602_s10 = inlined_call_operand.vmem [shape: bf16[128,128], index: 10, kind: input, shape index: {}]   ;;  %s9603_s11 = inlined_call_operand.vmem [shape: bf16[16,128], index: 11, kind: input, shape index: {}]   ;;  %s9604_s12 = inlined_call_operand.vmem [shape: bf16[128,128], index: 12, kind: input, shape index: {}]   ;;  %s9605_s13 = inlined_call_operand.vmem [shape: f32[1,128], index: 13, kind: input, shape index: {}]   ;;  %s9606_s14 = inlined_call_operand.vmem [shape: f32[128,128], index: 14, kind: output, shape index: {}]  }
   0x1 LB: > { %s5886_s30 = sadd.s32 4294967295, %s7170_s29   ;;  %p5890_p0 = scmp.ge.s32.totalorder %s7170_s29, 1  ;;  %s7170_s29 = sphi %s7248_s29, %s24_s29  }
   0x2   : > { %p425_p1 = scmp.lt.s32.totalorder %s7170_s29, 3 }
   0x4   : > { %p426_p2 = pnand %p5890_p0, %p425_p1 }
   0x5   : > { %s5891_s21 = sshll.u32 (!%p426_p2), %s5886_s30, 3 }
   0x6   : > { %429 = sbr.rel (%p426_p2) target bundleno = 1624 (0x658), region = 76  ;;  %p478_p3 = scmp.lt.s32.totalorder (!%p426_p2), %s5891_s21, 15 }
   0xb   : > { %v569_v0 = vld [vmem:[%s9594_s2 + $0x1c0] sm:$0xff]  ;;  %v7172_v8 = vmov 0   ;;  %s9608_s21 = smov (!%p478_p3, %s5891_s21), 15  ;;  %vm5584_vm0 = vcmask 130048  }
   0xc   : > { %v573_v1 = vld [vmem:[%s9594_s2 + $0x1e0] sm:$0xff]  ;;  %1876 = vmatprep.mubr.bf16.mxu1 %v7172_v8  ;;  %s6593_s15 = smul.u32 12, %s9608_s21 }
   0xd   : > { %v697_v2 = vld [vmem:[%s9594_s2 + $0x5c0] sm:$0xff]  ;;  %v5966_v3 = vcombine.high %v569_v0, %v573_v1  ;;  %v5965_v5 = vcombine.low %v569_v0, %v573_v1 }
   0xe   : > { %v701_v4 = vld [vmem:[%s9594_s2 + $0x5e0] sm:$0xff]  ;;  %s7320_s30 = scalar_lea.vmem %s9592_s0, %s6593_s15  ;;  %s5894_s15 = sshll.u32 %s9608_s21, 2 }
   0xf   : > { %v561_v6 = vld [vmem:[%s9594_s2 + $0x180] sm:$0xff]  ;;  %v6094_v9 = vcombine.high %v697_v2, %v701_v4  ;;  %v6093_v10 = vcombine.low %v697_v2, %v701_v4  ;;  %1771 = vmatprep.subr.bf16.mxu0 %v5966_v3  ;;  %v570_v2 = vld [vmem:[%s9594_s2 + $0x1c8] sm:$0xff]  ;;  %s9549_s25 = scalar_lea.vmem %s9593_s1, %s5894_s15 }
  0x10   : > { %v565_v7 = vld [vmem:[%s9594_s2 + $0x1a0] sm:$0xff]  ;;  %1772 = vmatpush1.bf16.msra.mxu0 %v5965_v5  ;;  %v574_v3 = vld [vmem:[%s9594_s2 + $0x1e8] sm:$0xff] }
  0x11   : > { %v5958_v11 = vcombine.high %v561_v6, %v565_v7  ;;  %v689_v12 = vld [vmem:[%s9594_s2 + $0x580] sm:$0xff]  ;;  %1844 = vmatprep.subr.bf16.mxu1 %v6094_v9  ;;  %v5957_v19 = vcombine.low %v561_v6, %v565_v7  ;;  %v5968_v9 = vcombine.high %v570_v2, %v574_v3 }
  0x12   : > { %v693_v13 = vld [vmem:[%s9594_s2 + $0x5a0] sm:$0xff]  ;;  %1845 = vmatpush1.bf16.msra.mxu1 %v6093_v10 }
  0x13   : > { %v553_v14 = vld [vmem:[%s9594_s2 + $0x140] sm:$0xff]  ;;  %v6086_v15 = vcombine.high %v689_v12, %v693_v13  ;;  %1773 = vmatprep.subr.bf16.mxu0 %v5958_v11  ;;  %v6085_v20 = vcombine.low %v689_v12, %v693_v13  ;;  %v562_v11 = vld [vmem:[%s9594_s2 + $0x188] sm:$0xff] }
  0x14   : > { %v557_v16 = vld [vmem:[%s9594_s2 + $0x160] sm:$0xff]  ;;  %1774 = vmatpush1.bf16.msra.mxu0 %v5957_v19  ;;  %v566_v12 = vld [vmem:[%s9594_s2 + $0x1a8] sm:$0xff] }
  0x15   : > { %v681_v17 = vld [vmem:[%s9594_s2 + $0x540] sm:$0xff]  ;;  %v5950_v21 = vcombine.high %v553_v14, %v557_v16  ;;  %1846 = vmatprep.subr.bf16.mxu1 %v6086_v15  ;;  %v5949_v27 = vcombine.low %v553_v14, %v557_v16  ;;  %v7390_v13 = vld [vmem:[%s7320_s30 + $0x8] ss:$12 sps:$4 sm:$0xff]   ;;  %v5967_v15 = vcombine.low %v570_v2, %v574_v3  ;;  %v7477_v2 = vld [vmem:[%s7320_s30 + $0x50] ss:$12 sps:$4 sm:$0xff]  }
  0x16   : > { %v685_v18 = vld [vmem:[%s9594_s2 + $0x560] sm:$0xff]  ;;  %1847 = vmatpush1.bf16.msra.mxu1 %v6085_v20  ;;  %v554_v20 = vld [vmem:[%s9594_s2 + $0x148] sm:$0xff] }
  0x17   : > { %v6078_v22 = vcombine.high %v681_v17, %v685_v18  ;;  %v545_v23 = vld [vmem:[%s9594_s2 + $0x100] sm:$0xff]  ;;  %1775 = vmatprep.subr.bf16.mxu0 %v5950_v21  ;;  %v6077_v28 = vcombine.low %v681_v17, %v685_v18  ;;  %v5960_v17 = vcombine.high %v562_v11, %v566_v12  ;;  %v558_v21 = vld [vmem:[%s9594_s2 + $0x168] sm:$0xff] }
  0x18   : > { %v549_v24 = vld [vmem:[%s9594_s2 + $0x120] sm:$0xff]  ;;  %1776 = vmatpush1.bf16.msra.mxu0 %v5949_v27 }
  0x19   : > { %v673_v25 = vld [vmem:[%s9594_s2 + $0x500] sm:$0xff]  ;;  %v5942_v29 = vcombine.high %v545_v23, %v549_v24  ;;  %1848 = vmatprep.subr.bf16.mxu1 %v6078_v22  ;;  %v5941_v35 = vcombine.low %v545_v23, %v549_v24  ;;  %v5959_v23 = vcombine.low %v562_v11, %v566_v12 }
  0x1a   : > { %v677_v26 = vld [vmem:[%s9594_s2 + $0x520] sm:$0xff]  ;;  %1849 = vmatpush1.bf16.msra.mxu1 %v6077_v28  ;;  %v546_v28 = vld [vmem:[%s9594_s2 + $0x108] sm:$0xff] }
  0x1b   : > { %v6070_v30 = vcombine.high %v673_v25, %v677_v26  ;;  %v537_v31 = vld [vmem:[%s9594_s2 + $0xc0] sm:$0xff]  ;;  %1777 = vmatprep.subr.bf16.mxu0 %v5942_v29  ;;  %v6069_v36 = vcombine.low %v673_v25, %v677_v26  ;;  %v5952_v25 = vcombine.high %v554_v20, %v558_v21  ;;  %v550_v29 = vld [vmem:[%s9594_s2 + $0x128] sm:$0xff] }
  0x1c   : > { %v541_v32 = vld [vmem:[%s9594_s2 + $0xe0] sm:$0xff]  ;;  %1778 = vmatpush1.bf16.msra.mxu0 %v5941_v35 }
  0x1d   : > { %v665_v33 = vld [vmem:[%s9594_s2 + $0x4c0] sm:$0xff]  ;;  %v5934_v37 = vcombine.high %v537_v31, %v541_v32  ;;  %1850 = vmatprep.subr.bf16.mxu1 %v6070_v30  ;;  %v5933_v43 = vcombine.low %v537_v31, %v541_v32  ;;  %v5951_v32 = vcombine.low %v554_v20, %v558_v21  ;;  %v630_v20 = vld [vmem:[%s9594_s2 + $0x3a8] sm:$0xff] }
  0x1e   : > { %v669_v34 = vld [vmem:[%s9594_s2 + $0x4e0] sm:$0xff]  ;;  %1851 = vmatpush1.bf16.msra.mxu1 %v6069_v36 }
  0x1f   : > { %v6062_v38 = vcombine.high %v665_v33, %v669_v34  ;;  %v529_v39 = vld [vmem:[%s9594_s2 + $0x80] sm:$0xff]  ;;  %1779 = vmatprep.subr.bf16.mxu0 %v5934_v37  ;;  %v6061_v44 = vcombine.low %v665_v33, %v669_v34  ;;  %v5944_v34 = vcombine.high %v546_v28, %v550_v29  ;;  %v538_v37 = vld [vmem:[%s9594_s2 + $0xc8] sm:$0xff] }
  0x20   : > { %v533_v40 = vld [vmem:[%s9594_s2 + $0xa0] sm:$0xff]  ;;  %1780 = vmatpush1.bf16.msra.mxu0 %v5933_v43 }
  0x21   : > { %v657_v41 = vld [vmem:[%s9594_s2 + $0x480] sm:$0xff]  ;;  %v5926_v45 = vcombine.high %v529_v39, %v533_v40  ;;  %1852 = vmatprep.subr.bf16.mxu1 %v6062_v38  ;;  %v5925_v51 = vcombine.low %v529_v39, %v533_v40  ;;  %v542_v38 = vld [vmem:[%s9594_s2 + $0xe8] sm:$0xff]  ;;  %v5943_v40 = vcombine.low %v546_v28, %v550_v29 }
  0x22   : > { %v661_v42 = vld [vmem:[%s9594_s2 + $0x4a0] sm:$0xff]  ;;  %1853 = vmatpush1.bf16.msra.mxu1 %v6061_v44  ;;  %v618_v28 = vld [vmem:[%s9594_s2 + $0x348] sm:$0xff] }
  0x23   : > { %v6054_v46 = vcombine.high %v657_v41, %v661_v42  ;;  %v521_v47 = vld [vmem:[%s9594_s2 + $0x40] sm:$0xff]  ;;  %1781 = vmatprep.subr.bf16.mxu0 %v5926_v45  ;;  %v6053_v52 = vcombine.low %v657_v41, %v661_v42  ;;  %v5936_v42 = vcombine.high %v538_v37, %v542_v38  ;;  %v530_v45 = vld [vmem:[%s9594_s2 + $0x88] sm:$0xff] }
  0x24   : > { %v525_v48 = vld [vmem:[%s9594_s2 + $0x60] sm:$0xff]  ;;  %1782 = vmatpush1.bf16.msra.mxu0 %v5925_v51  ;;  %v622_v29 = vld [vmem:[%s9594_s2 + $0x368] sm:$0xff] }
  0x25   : > { %v649_v49 = vld [vmem:[%s9594_s2 + $0x440] sm:$0xff]  ;;  %v5918_v53 = vcombine.high %v521_v47, %v525_v48  ;;  %1854 = vmatprep.subr.bf16.mxu1 %v6054_v46  ;;  %v5917_v60 = vcombine.low %v521_v47, %v525_v48  ;;  %v534_v46 = vld [vmem:[%s9594_s2 + $0xa8] sm:$0xff] }
  0x26   : > { %v653_v50 = vld [vmem:[%s9594_s2 + $0x460] sm:$0xff]  ;;  %1855 = vmatpush1.bf16.msra.mxu1 %v6053_v52  ;;  %v5928_v51 = vcombine.high %v530_v45, %v534_v46 }
  0x27   : > { %v513_v54 = vld [vmem:[%s9594_s2] sm:$0xff]  ;;  %v6046_v55 = vcombine.high %v649_v49, %v653_v50  ;;  %1783 = vmatprep.subr.bf16.mxu0 %v5918_v53  ;;  %v6045_v61 = vcombine.low %v649_v49, %v653_v50  ;;  %v5935_v49 = vcombine.low %v538_v37, %v542_v38  ;;  %v610_v38 = vld [vmem:[%s9594_s2 + $0x308] sm:$0xff] }
  0x28   : > { %v517_v56 = vld [vmem:[%s9594_s2 + $0x20] sm:$0xff]  ;;  %1784 = vmatpush1.bf16.msra.mxu0 %v5917_v60 }
  0x29   : > { %v641_v57 = vld [vmem:[%s9594_s2 + $0x400] sm:$0xff]  ;;  %v5910_v62 = vcombine.high %v513_v54, %v517_v56  ;;  %1856 = vmatprep.subr.bf16.mxu1 %v6046_v55  ;;  %v5909_v4 = vcombine.low %v513_v54, %v517_v56  ;;  %v522_v54 = vld [vmem:[%s9594_s2 + $0x48] sm:$0xff] }
  0x2a   : > { %v645_v58 = vld [vmem:[%s9594_s2 + $0x420] sm:$0xff]  ;;  %1857 = vmatpush1.bf16.msra.mxu1 %v6045_v61  ;;  %v526_v55 = vld [vmem:[%s9594_s2 + $0x68] sm:$0xff] }
  0x2b   : > { %v7362_v59 = vld [vmem:[%s7320_s30 + $0x4] ss:$12 sps:$4 sm:$0xff]   ;;  %v6038_v63 = vcombine.high %v641_v57, %v645_v58  ;;  %1785 = vmatprep.subr.bf16.mxu0 %v5910_v62  ;;  %v6037_v5 = vcombine.low %v641_v57, %v645_v58  ;;  %v7419_v31 = vld [vmem:[%s7320_s30 + $0x20] ss:$12 sps:$4 sm:$0xff]   ;;  %v5927_v57 = vcombine.low %v530_v45, %v534_v46  ;;  %v5920_v60 = vcombine.high %v522_v54, %v526_v55 }
  0x2c   : > { %v633_v0 = vld [vmem:[%s9594_s2 + $0x3c0] sm:$0xff]  ;;  %1803 = vmatprep.mubr.bf16.mxu0 %v7362_v59  ;;  %1786 = vmatpush1.bf16.msra.mxu0 %v5909_v4  ;;  %v5919_v3 = vcombine.low %v522_v54, %v526_v55  ;;  %v602_v45 = vld [vmem:[%s9594_s2 + $0x2c8] sm:$0xff]  ;;  %v7564_v54 = vld [vmem:[%s7320_s30 + $0x30] ss:$12 sps:$4 sm:$0xff]  }
  0x2d   : > { %v637_v1 = vld [vmem:[%s9594_s2 + $0x3e0] sm:$0xff]  ;;  %1858 = vmatprep.subr.bf16.mxu1 %v6038_v63  ;;  %v514_v63 = vld [vmem:[%s9594_s2 + $0x8] sm:$0xff] }
  0x2e   : > { %v6030_v6 = vcombine.high %v633_v0, %v637_v1  ;;  %v625_v7 = vld [vmem:[%s9594_s2 + $0x380] sm:$0xff]  ;;  %v6029_v14 = vcombine.low %v633_v0, %v637_v1  ;;  %1859 = vmatpush1.bf16.msra.mxu1 %v6037_v5  ;;  %v518_v0 = vld [vmem:[%s9594_s2 + $0x28] sm:$0xff] }
  0x2f   : > { %v629_v10 = vld [vmem:[%s9594_s2 + $0x3a0] sm:$0xff]  ;;  %1917 = vmatprep.subr.bf16.mxu1 %v5968_v9  ;;  %v5912_v5 = vcombine.high %v514_v63, %v518_v0  ;;  %v634_v9 = vld [vmem:[%s9594_s2 + $0x3c8] sm:$0xff]  ;;  %v5911_v12 = vcombine.low %v514_v63, %v518_v0 }
  0x30   : > { %1787 = vmatprep.subr.bf16.mxu0 %v6030_v6  ;;  %v6022_v16 = vcombine.high %v625_v7, %v629_v10  ;;  %v617_v18 = vld [vmem:[%s9594_s2 + $0x340] sm:$0xff]  ;;  %v6021_v22 = vcombine.low %v625_v7, %v629_v10  ;;  %v698_v6 = vld [vmem:[%s9594_s2 + $0x5c8] sm:$0xff] }
  0x31   : > { %v621_v19 = vld [vmem:[%s9594_s2 + $0x360] sm:$0xff]  ;;  %1877 = vmatmul.mubr.bf16.vlgmr.msra.gmra.mxu1 %v7390_v13  ;;  %1788 = vmatpush2.bf16.msra.mxu0 %v6029_v14  ;;  %v702_v7 = vld [vmem:[%s9594_s2 + $0x5e8] sm:$0xff] }
  0x32   : > { %1918 = vmatpush1.bf16.msra.mxu1 %v5967_v15  ;;  %1789 = vmatprep.subr.bf16.mxu0 %v6022_v16  ;;  %v6014_v24 = vcombine.high %v617_v18, %v621_v19  ;;  %v609_v26 = vld [vmem:[%s9594_s2 + $0x300] sm:$0xff]  ;;  %v6013_v30 = vcombine.low %v617_v18, %v621_v19  ;;  %v638_v10 = vld [vmem:[%s9594_s2 + $0x3e8] sm:$0xff]  ;;  %v6096_v14 = vcombine.high %v698_v6, %v702_v7 }
  0x33   : > { %1919 = vmatprep.subr.bf16.mxu1 %v5960_v17  ;;  %v613_v27 = vld [vmem:[%s9594_s2 + $0x320] sm:$0xff]  ;;  %1886 = vmatprep.mubr.bf16.mxu1 %v7172_v8  ;;  %v6032_v15 = vcombine.high %v634_v9, %v638_v10  ;;  %v690_v16 = vld [vmem:[%s9594_s2 + $0x588] sm:$0xff]  ;;  %v6095_v21 = vcombine.low %v698_v6, %v702_v7 }
  0x34   : > { %v6006_v33 = vcombine.high %v609_v26, %v613_v27  ;;  %v601_v35 = vld [vmem:[%s9594_s2 + $0x2c0] sm:$0xff]  ;;  %v6005_v39 = vcombine.low %v609_v26, %v613_v27  ;;  %v694_v17 = vld [vmem:[%s9594_s2 + $0x5a8] sm:$0xff] }
  0x35   : > { %1790 = vmatpush2.bf16.msra.mxu0 %v6021_v22  ;;  %v605_v36 = vld [vmem:[%s9594_s2 + $0x2e0] sm:$0xff]  ;;  %v626_v19 = vld [vmem:[%s9594_s2 + $0x388] sm:$0xff] }
  0x36   : > { %1920 = vmatpush1.bf16.msra.mxu1 %v5959_v23  ;;  %1791 = vmatprep.subr.bf16.mxu0 %v6014_v24  ;;  %v5998_v41 = vcombine.high %v601_v35, %v605_v36  ;;  %v593_v43 = vld [vmem:[%s9594_s2 + $0x280] sm:$0xff]  ;;  %v5997_v47 = vcombine.low %v601_v35, %v605_v36  ;;  %v7509_v22 = vld [vmem:[%s7320_s30 + $0x1c] ss:$12 sps:$4 sm:$0xff]   ;;  %v6031_v23 = vcombine.low %v634_v9, %v638_v10 }
  0x37   : > { %1921 = vmatprep.subr.bf16.mxu1 %v5952_v25  ;;  %v597_v44 = vld [vmem:[%s9594_s2 + $0x2a0] sm:$0xff]  ;;  %v6088_v24 = vcombine.high %v690_v16, %v694_v17  ;;  %v6024_v25 = vcombine.high %v626_v19, %v630_v20  ;;  %v682_v26 = vld [vmem:[%s9594_s2 + $0x548] sm:$0xff] }
  0x38   : > { %v7448_v48 = vld [vmem:[%s7320_s30 + $0x38] ss:$12 sps:$4 sm:$0xff]   ;;  %v5990_v50 = vcombine.high %v593_v43, %v597_v44  ;;  %v5989_v56 = vcombine.low %v593_v43, %v597_v44  ;;  %v7500_v18 = vld [vmem:[%s7320_s30] ss:$12 sps:$4 sm:$0xff]   ;;  %v6015_v43 = vcombine.low %v618_v28, %v622_v29 }
  0x39   : > { %1792 = vmatpush2.bf16.msra.mxu0 %v6013_v30  ;;  %1887 = vmatmul.mubr.bf16.gmra.mxu1 %v7419_v31  ;;  %v585_v52 = vld [vmem:[%s9594_s2 + $0x240] sm:$0xff]  ;;  %v686_v27 = vld [vmem:[%s9594_s2 + $0x568] sm:$0xff]  ;;  %v6087_v30 = vcombine.low %v690_v16, %v694_v17 }
  0x3a   : > { %1922 = vmatpush1.bf16.msra.mxu1 %v5951_v32  ;;  %1793 = vmatprep.subr.bf16.mxu0 %v6006_v33  ;;  %v589_v53 = vld [vmem:[%s9594_s2 + $0x260] sm:$0xff]  ;;  %v6023_v32 = vcombine.low %v626_v19, %v630_v20  ;;  %v6080_v33 = vcombine.high %v682_v26, %v686_v27  ;;  %v674_v35 = vld [vmem:[%s9594_s2 + $0x508] sm:$0xff]  ;;  %v571_v19 = vld [vmem:[%s9594_s2 + $0x1d0] sm:$0xff] }
  0x3b   : > { %1923 = vmatprep.subr.bf16.mxu1 %v5944_v34  ;;  %1896 = vmatprep.mubr.bf16.mxu1 %v7172_v8  ;;  %v5982_v58 = vcombine.high %v585_v52, %v589_v53  ;;  %v577_v61 = vld [vmem:[%s9594_s2 + $0x200] sm:$0xff]  ;;  %v5981_v1 = vcombine.low %v585_v52, %v589_v53  ;;  %v6016_v34 = vcombine.high %v618_v28, %v622_v29  ;;  %v678_v36 = vld [vmem:[%s9594_s2 + $0x528] sm:$0xff]  ;;  %v575_v20 = vld [vmem:[%s9594_s2 + $0x1f0] sm:$0xff] }
  0x3c   : > { %v581_v62 = vld [vmem:[%s9594_s2 + $0x220] sm:$0xff]  ;;  %v6072_v44 = vcombine.high %v674_v35, %v678_v36  ;;  %v606_v46 = vld [vmem:[%s9594_s2 + $0x2e8] sm:$0xff]  ;;  %v563_v28 = vld [vmem:[%s9594_s2 + $0x190] sm:$0xff] }
  0x3d   : > { %1794 = vmatpush2.bf16.msra.mxu0 %v6005_v39  ;;  %v5974_v4 = vcombine.high %v577_v61, %v581_v62  ;;  %v5973_v11 = vcombine.low %v577_v61, %v581_v62  ;;  %v7532_v37 = vld [vmem:[%s7320_s30 + $0x18] ss:$12 sps:$4 sm:$0xff]   ;;  %v614_v39 = vld [vmem:[%s9594_s2 + $0x328] sm:$0xff]  ;;  %v5999_v63 = vcombine.low %v602_v45, %v606_v46  ;;  %v567_v29 = vld [vmem:[%s9594_s2 + $0x1b0] sm:$0xff] }
  0x3e   : > { %1924 = vmatpush1.bf16.msra.mxu1 %v5943_v40  ;;  %1795 = vmatprep.subr.bf16.mxu0 %v5998_v41  ;;  %v6079_v40 = vcombine.low %v682_v26, %v686_v27  ;;  %v7541_v41 = vld [vmem:[%s7320_s30 + $0x34] ss:$12 sps:$4 sm:$0xff]   ;;  %v662_v52 = vld [vmem:[%s9594_s2 + $0x4a8] sm:$0xff]  ;;  %v6007_v53 = vcombine.low %v610_v38, %v614_v39 }
  0x3f   : > { %1925 = vmatprep.subr.bf16.mxu1 %v5936_v42  ;;  %v666_v42 = vld [vmem:[%s9594_s2 + $0x4c8] sm:$0xff]  ;;  %v703_v26 = vld [vmem:[%s9594_s2 + $0x5f0] sm:$0xff] }
  0x40   : > { %v650_v62 = vld [vmem:[%s9594_s2 + $0x448] sm:$0xff] }
  0x41   : > { %1796 = vmatpush2.bf16.msra.mxu0 %v5997_v47  ;;  %1897 = vmatmul.mubr.bf16.gmra.mxu1 %v7448_v48  ;;  %v670_v47 = vld [vmem:[%s9594_s2 + $0x4e8] sm:$0xff] }
  0x42   : > { %1926 = vmatpush1.bf16.msra.mxu1 %v5935_v49  ;;  %1797 = vmatprep.subr.bf16.mxu0 %v5990_v50  ;;  %v6008_v49 = vcombine.high %v610_v38, %v614_v39  ;;  %v6071_v50 = vcombine.low %v674_v35, %v678_v36  ;;  %v6064_v55 = vcombine.high %v666_v42, %v670_v47  ;;  %v642_v7 = vld [vmem:[%s9594_s2 + $0x408] sm:$0xff]  ;;  %v555_v38 = vld [vmem:[%s9594_s2 + $0x150] sm:$0xff] }
  0x43   : > { %1927 = vmatprep.subr.bf16.mxu1 %v5928_v51  ;;  %1906 = vmatprep.mubr.bf16.mxu1 %v7172_v8  ;;  %v658_v51 = vld [vmem:[%s9594_s2 + $0x488] sm:$0xff]  ;;  %v6063_v61 = vcombine.low %v666_v42, %v670_v47  ;;  %v5969_v36 = vcombine.low %v571_v19, %v575_v20  ;;  %v559_v39 = vld [vmem:[%s9594_s2 + $0x170] sm:$0xff]  ;;  %v5962_v42 = vcombine.high %v563_v28, %v567_v29 }
  0x44   : > { %v6056_v0 = vcombine.high %v658_v51, %v662_v52  ;;  %v6055_v6 = vcombine.low %v658_v51, %v662_v52  ;;  %v646_v9 = vld [vmem:[%s9594_s2 + $0x428] sm:$0xff]  ;;  %v547_v47 = vld [vmem:[%s9594_s2 + $0x110] sm:$0xff]  ;;  %v5954_v51 = vcombine.high %v555_v38, %v559_v39 }
  0x45   : > { %1798 = vmatpush2.bf16.msra.mxu0 %v5989_v56  ;;  %v594_v56 = vld [vmem:[%s9594_s2 + $0x288] sm:$0xff]  ;;  %v6039_v27 = vcombine.low %v642_v7, %v646_v9 }
  0x46   : > { %1928 = vmatpush1.bf16.msra.mxu1 %v5927_v57  ;;  %1799 = vmatprep.subr.bf16.mxu0 %v5982_v58  ;;  %v598_v57 = vld [vmem:[%s9594_s2 + $0x2a8] sm:$0xff]  ;;  %v6000_v58 = vcombine.high %v602_v45, %v606_v46  ;;  %v687_v45 = vld [vmem:[%s9594_s2 + $0x570] sm:$0xff]  ;;  %v5961_v46 = vcombine.low %v563_v28, %v567_v29 }
  0x47   : > { %1929 = vmatprep.subr.bf16.mxu1 %v5920_v60  ;;  %v7573_v60 = vld [vmem:[%s7320_s30 + $0x4c] ss:$12 sps:$4 sm:$0xff]   ;;  %v5991_v10 = vcombine.low %v594_v56, %v598_v57  ;;  %v639_v28 = vld [vmem:[%s9594_s2 + $0x3f0] sm:$0xff] }
  0x49   : > { %1800 = vmatpush2.bf16.msra.mxu0 %v5981_v1  ;;  %1907 = vmatmul.mubr.bf16.gmra.mxu1 %v7477_v2  ;;  %v586_v1 = vld [vmem:[%s9594_s2 + $0x248] sm:$0xff] }
  0x4a   : > { %1930 = vmatpush1.bf16.msra.mxu1 %v5919_v3  ;;  %1801 = vmatprep.subr.bf16.mxu0 %v5974_v4  ;;  %v5992_v3 = vcombine.high %v594_v56, %v598_v57  ;;  %v654_v4 = vld [vmem:[%s9594_s2 + $0x468] sm:$0xff] }
  0x4b   : > { %1931 = vmatprep.subr.bf16.mxu1 %v5912_v5  ;;  %1949 = vmatprep.mubr.bf16.mxu1 %v7362_v59  ;;  %v590_v5 = vld [vmem:[%s9594_s2 + $0x268] sm:$0xff]  ;;  %v6047_v17 = vcombine.low %v650_v62, %v654_v4 }
  0x4c   : > { %v5984_v16 = vcombine.high %v586_v1, %v590_v5 }
  0x4d   : > { %1802 = vmatpush2.bf16.msra.mxu0 %v5973_v11  ;;  %v7596_v11 = vld [vmem:[%s7320_s30 + $0x48] ss:$12 sps:$4 sm:$0xff]  }
  0x4e   : > { %1932 = vmatpush1.bf16.msra.mxu1 %v5911_v12  ;;  %1990 = vmatprep.subr.bf16.mxu0 %v6096_v14  ;;  %v6048_v12 = vcombine.high %v650_v62, %v654_v4  ;;  %v578_v14 = vld [vmem:[%s9594_s2 + $0x208] sm:$0xff]  ;;  %v667_v62 = vld [vmem:[%s9594_s2 + $0x4d0] sm:$0xff] }
  0x4f   : > { %1933 = vmatprep.subr.bf16.mxu1 %v6032_v15  ;;  %v582_v15 = vld [vmem:[%s9594_s2 + $0x228] sm:$0xff] }
  0x50   : > { %1804 = vmatmul.mubr.bf16.vlgmr.msra.gmra.mxu0 %v7500_v18 }
  0x51   : > { %1991 = vmatpush1.bf16.msra.mxu0 %v6095_v21  ;;  %1813 = vmatprep.mubr.bf16.mxu0 %v7509_v22  ;;  %v5983_v21 = vcombine.low %v586_v1, %v590_v5  ;;  %v531_v5 = vld [vmem:[%s9594_s2 + $0x90] sm:$0xff] }
  0x52   : > { %1934 = vmatpush2.bf16.msra.mxu1 %v6031_v23  ;;  %1992 = vmatprep.subr.bf16.mxu0 %v6088_v24  ;;  %v6040_v23 = vcombine.high %v642_v7, %v646_v9  ;;  %v5976_v24 = vcombine.high %v578_v14, %v582_v15  ;;  %v663_v7 = vld [vmem:[%s9594_s2 + $0x4b0] sm:$0xff] }
  0x53   : > { %1935 = vmatprep.subr.bf16.mxu1 %v6024_v25  ;;  %v699_v25 = vld [vmem:[%s9594_s2 + $0x5d0] sm:$0xff] }
  0x54   : > { %v6098_v35 = vcombine.high %v699_v25, %v703_v26  ;;  %v523_v9 = vld [vmem:[%s9594_s2 + $0x50] sm:$0xff] }
  0x55   : > { %1993 = vmatpush1.bf16.msra.mxu0 %v6087_v30  ;;  %v5975_v30 = vcombine.low %v578_v14, %v582_v15  ;;  %v651_v15 = vld [vmem:[%s9594_s2 + $0x450] sm:$0xff] }
  0x56   : > { %1936 = vmatpush2.bf16.msra.mxu1 %v6023_v32  ;;  %1994 = vmatprep.subr.bf16.mxu0 %v6080_v33  ;;  %v5970_v32 = vcombine.high %v571_v19, %v575_v20  ;;  %v691_v33 = vld [vmem:[%s9594_s2 + $0x590] sm:$0xff] }
  0x57   : > { %1937 = vmatprep.subr.bf16.mxu1 %v6016_v34  ;;  %v695_v34 = vld [vmem:[%s9594_s2 + $0x5b0] sm:$0xff] }
  0x58   : > { %1814 = vmatmul.mubr.bf16.gmra.mxu0 %v7532_v37  ;;  %v515_v20 = vld [vmem:[%s9594_s2 + $0x10] sm:$0xff] }
  0x59   : > { %1995 = vmatpush1.bf16.msra.mxu0 %v6079_v40  ;;  %1823 = vmatprep.mubr.bf16.mxu0 %v7541_v41  ;;  %v6097_v40 = vcombine.low %v699_v25, %v703_v26 }
  0x5a   : > { %1938 = vmatpush2.bf16.msra.mxu1 %v6015_v43  ;;  %1996 = vmatprep.subr.bf16.mxu0 %v6072_v44  ;;  %v6090_v43 = vcombine.high %v691_v33, %v695_v34  ;;  %v683_v44 = vld [vmem:[%s9594_s2 + $0x550] sm:$0xff] }
  0x5b   : > { %1939 = vmatprep.subr.bf16.mxu1 %v6008_v49  ;;  %v551_v49 = vld [vmem:[%s9594_s2 + $0x130] sm:$0xff]  ;;  %v6082_v52 = vcombine.high %v683_v44, %v687_v45  ;;  %v6081_v56 = vcombine.low %v683_v44, %v687_v45 }
  0x5c   : > { %v5946_v57 = vcombine.high %v547_v47, %v551_v49 }
  0x5d   : > { %1997 = vmatpush1.bf16.msra.mxu0 %v6071_v50  ;;  %v6089_v50 = vcombine.low %v691_v33, %v695_v34 }
  0x5e   : > { %1940 = vmatpush2.bf16.msra.mxu1 %v6007_v53  ;;  %1998 = vmatprep.subr.bf16.mxu0 %v6064_v55  ;;  %v679_v53 = vld [vmem:[%s9594_s2 + $0x530] sm:$0xff]  ;;  %v5953_v55 = vcombine.low %v555_v38, %v559_v39 }
  0x5f   : > { %1941 = vmatprep.subr.bf16.mxu1 %v6000_v58 }
  0x60   : > { %1824 = vmatmul.mubr.bf16.gmra.mxu0 %v7564_v54 }
  0x61   : > { %1999 = vmatpush1.bf16.msra.mxu0 %v6063_v61  ;;  %1833 = vmatprep.mubr.bf16.mxu0 %v7573_v60  ;;  %v543_v61 = vld [vmem:[%s9594_s2 + $0xf0] sm:$0xff] }
  0x62   : > { %1942 = vmatpush2.bf16.msra.mxu1 %v5999_v63  ;;  %2000 = vmatprep.subr.bf16.mxu0 %v6056_v0  ;;  %v671_v63 = vld [vmem:[%s9594_s2 + $0x4f0] sm:$0xff]  ;;  %v5945_v0 = vcombine.low %v547_v47, %v551_v49  ;;  %v560_v49 = vld [vmem:[%s9594_s2 + $0x178] sm:$0xff] }
  0x63   : > { %1943 = vmatprep.subr.bf16.mxu1 %v5992_v3  ;;  %v6066_v4 = vcombine.high %v667_v62, %v671_v63  ;;  %v623_v47 = vld [vmem:[%s9594_s2 + $0x370] sm:$0xff] }
  0x65   : > { %2001 = vmatpush1.bf16.msra.mxu0 %v6055_v6  ;;  %v535_v6 = vld [vmem:[%s9594_s2 + $0xb0] sm:$0xff] }
  0x66   : > { %1944 = vmatpush2.bf16.msra.mxu1 %v5991_v10  ;;  %2002 = vmatprep.subr.bf16.mxu0 %v6048_v12  ;;  %v527_v10 = vld [vmem:[%s9594_s2 + $0x70] sm:$0xff]  ;;  %v6065_v12 = vcombine.low %v667_v62, %v671_v63  ;;  %v5930_v14 = vcombine.high %v531_v5, %v535_v6  ;;  %v5929_v19 = vcombine.low %v531_v5, %v535_v6 }
  0x67   : > { %1945 = vmatprep.subr.bf16.mxu1 %v5984_v16  ;;  %v655_v16 = vld [vmem:[%s9594_s2 + $0x470] sm:$0xff]  ;;  %v5921_v26 = vcombine.low %v523_v9, %v527_v10 }
  0x68   : > { %1834 = vmatmul.mubr.bf16.gmra.mxu0 %v7596_v11  ;;  %v6050_v25 = vcombine.high %v651_v15, %v655_v16  ;;  %v6049_v29 = vcombine.low %v651_v15, %v655_v16  ;;  %v603_v62 = vld [vmem:[%s9594_s2 + $0x2d0] sm:$0xff] }
  0x69   : > { %2003 = vmatpush1.bf16.msra.mxu0 %v6047_v17  ;;  %2022 = vmatprep.mubr.bf16.mxu0 %v7172_v8  ;;  %v607_v63 = vld [vmem:[%s9594_s2 + $0x2f0] sm:$0xff] }
  0x6a   : > { %1946 = vmatpush2.bf16.msra.mxu1 %v5983_v21  ;;  %2004 = vmatprep.subr.bf16.mxu0 %v6040_v23  ;;  %v519_v21 = vld [vmem:[%s9594_s2 + $0x30] sm:$0xff]  ;;  %v6002_v5 = vcombine.high %v603_v62, %v607_v63 }
  0x6b   : > { %1947 = vmatprep.subr.bf16.mxu1 %v5976_v24  ;;  %v5922_v24 = vcombine.high %v523_v9, %v527_v10  ;;  %v5913_v34 = vcombine.low %v515_v20, %v519_v21  ;;  %v6001_v9 = vcombine.low %v603_v62, %v607_v63  ;;  %v587_v10 = vld [vmem:[%s9594_s2 + $0x250] sm:$0xff]  ;;  %v680_v62 = vld [vmem:[%s9594_s2 + $0x538] sm:$0xff] }
  0x6c   : > { %v616_v63 = vld [vmem:[%s9594_s2 + $0x338] sm:$0xff] }
  0x6d   : > { %2005 = vmatpush1.bf16.msra.mxu0 %v6039_v27  ;;  %v635_v27 = vld [vmem:[%s9594_s2 + $0x3d0] sm:$0xff] }
  0x6e   : > { %1948 = vmatpush2.bf16.msra.mxu1 %v5975_v30  ;;  %2063 = vmatprep.subr.bf16.mxu0 %v5970_v32  ;;  %v5914_v30 = vcombine.high %v515_v20, %v519_v21  ;;  %v576_v32 = vld [vmem:[%s9594_s2 + $0x1f8] sm:$0xff]  ;;  %v6034_v39 = vcombine.high %v635_v27, %v639_v28  ;;  %v579_v21 = vld [vmem:[%s9594_s2 + $0x210] sm:$0xff] }
  0x6f   : > { %2136 = vmatprep.subr.bf16.mxu1 %v6098_v35  ;;  %v627_v35 = vld [vmem:[%s9594_s2 + $0x390] sm:$0xff] }
  0x70   : > { %2023 = vmatmul.mubr.bf16.vlgmr.msra.gmra.mxu0 %v7390_v13 }
  0x71   : > { %1950 = vmatmul.mubr.bf16.vlgmr.msra.gmra.mxu1 %v7500_v18  ;;  %2064 = vmatpush1.bf16.msra.mxu0 %v5969_v36  ;;  %v675_v18 = vld [vmem:[%s9594_s2 + $0x510] sm:$0xff] }
  0x72   : > { %2137 = vmatpush1.bf16.msra.mxu1 %v6097_v40  ;;  %2065 = vmatprep.subr.bf16.mxu0 %v5962_v42  ;;  %v6074_v58 = vcombine.high %v675_v18, %v679_v53  ;;  %v6073_v1 = vcombine.low %v675_v18, %v679_v53  ;;  %v631_v36 = vld [vmem:[%s9594_s2 + $0x3b0] sm:$0xff]  ;;  %v6033_v42 = vcombine.low %v635_v27, %v639_v28  ;;  %v520_v27 = vld [vmem:[%s9594_s2 + $0x38] sm:$0xff] }
  0x73   : > { %2138 = vmatprep.subr.bf16.mxu1 %v6090_v43  ;;  %1959 = vmatprep.mubr.bf16.mxu1 %v7509_v22  ;;  %v539_v22 = vld [vmem:[%s9594_s2 + $0xd0] sm:$0xff]  ;;  %v6026_v44 = vcombine.high %v627_v35, %v631_v36 }
  0x74   : > { %2032 = vmatprep.mubr.bf16.mxu0 %v7172_v8  ;;  %v5938_v3 = vcombine.high %v539_v22, %v543_v61  ;;  %v611_v53 = vld [vmem:[%s9594_s2 + $0x310] sm:$0xff] }
  0x75   : > { %2066 = vmatpush1.bf16.msra.mxu0 %v5961_v46  ;;  %v619_v46 = vld [vmem:[%s9594_s2 + $0x350] sm:$0xff] }
  0x76   : > { %2139 = vmatpush1.bf16.msra.mxu1 %v6089_v50  ;;  %2067 = vmatprep.subr.bf16.mxu0 %v5954_v51  ;;  %v6025_v50 = vcombine.low %v627_v35, %v631_v36  ;;  %v640_v35 = vld [vmem:[%s9594_s2 + $0x3f8] sm:$0xff] }
  0x77   : > { %2140 = vmatprep.subr.bf16.mxu1 %v6082_v52  ;;  %v6018_v52 = vcombine.high %v619_v46, %v623_v47 }
  0x78   : > { %2033 = vmatmul.mubr.bf16.gmra.mxu0 %v7419_v31 }
  0x79   : > { %1960 = vmatmul.mubr.bf16.gmra.mxu1 %v7532_v37  ;;  %2068 = vmatpush1.bf16.msra.mxu0 %v5953_v55  ;;  %v659_v37 = vld [vmem:[%s9594_s2 + $0x490] sm:$0xff] }
  0x7a   : > { %2141 = vmatpush1.bf16.msra.mxu1 %v6081_v56  ;;  %2069 = vmatprep.subr.bf16.mxu0 %v5946_v57  ;;  %v6058_v17 = vcombine.high %v659_v37, %v663_v7  ;;  %v6057_v23 = vcombine.low %v659_v37, %v663_v7  ;;  %v615_v55 = vld [vmem:[%s9594_s2 + $0x330] sm:$0xff]  ;;  %v552_v56 = vld [vmem:[%s9594_s2 + $0x138] sm:$0xff]  ;;  %v6017_v57 = vcombine.low %v619_v46, %v623_v47 }
  0x7b   : > { %2142 = vmatprep.subr.bf16.mxu1 %v6074_v58  ;;  %1969 = vmatprep.mubr.bf16.mxu1 %v7541_v41  ;;  %v5937_v41 = vcombine.low %v539_v22, %v543_v61  ;;  %v6010_v22 = vcombine.high %v611_v53, %v615_v55  ;;  %v595_v37 = vld [vmem:[%s9594_s2 + $0x290] sm:$0xff]  ;;  %v684_v47 = vld [vmem:[%s9594_s2 + $0x558] sm:$0xff] }
  0x7c   : > { %2042 = vmatprep.mubr.bf16.mxu0 %v7172_v8  ;;  %v599_v7 = vld [vmem:[%s9594_s2 + $0x2b0] sm:$0xff] }
  0x7d   : > { %2070 = vmatpush1.bf16.msra.mxu0 %v5945_v0  ;;  %v540_v0 = vld [vmem:[%s9594_s2 + $0xd8] sm:$0xff]  ;;  %v5994_v15 = vcombine.high %v595_v37, %v599_v7  ;;  %v5993_v20 = vcombine.low %v595_v37, %v599_v7 }
  0x7e   : > { %2143 = vmatpush1.bf16.msra.mxu1 %v6073_v1  ;;  %2071 = vmatprep.subr.bf16.mxu0 %v5938_v3  ;;  %v544_v1 = vld [vmem:[%s9594_s2 + $0xf8] sm:$0xff]  ;;  %v6009_v3 = vcombine.low %v611_v53, %v615_v55 }
  0x7f   : > { %2144 = vmatprep.subr.bf16.mxu1 %v6066_v4  ;;  %v5940_v6 = vcombine.high %v540_v0, %v544_v1  ;;  %v624_v53 = vld [vmem:[%s9594_s2 + $0x378] sm:$0xff] }
  0x80   : > { %2043 = vmatmul.mubr.bf16.gmra.mxu0 %v7448_v48  ;;  %v643_v48 = vld [vmem:[%s9594_s2 + $0x410] sm:$0xff]  ;;  %v672_v37 = vld [vmem:[%s9594_s2 + $0x4f8] sm:$0xff] }
  0x81   : > { %1970 = vmatmul.mubr.bf16.gmra.mxu1 %v7564_v54  ;;  %2072 = vmatpush1.bf16.msra.mxu0 %v5937_v41  ;;  %v647_v54 = vld [vmem:[%s9594_s2 + $0x430] sm:$0xff]  ;;  %v536_v41 = vld [vmem:[%s9594_s2 + $0xb8] sm:$0xff] }
  0x82   : > { %2145 = vmatpush1.bf16.msra.mxu1 %v6065_v12  ;;  %2073 = vmatprep.subr.bf16.mxu0 %v5930_v14  ;;  %v6042_v33 = vcombine.high %v643_v48, %v647_v54  ;;  %v6041_v38 = vcombine.low %v643_v48, %v647_v54  ;;  %v591_v12 = vld [vmem:[%s9594_s2 + $0x270] sm:$0xff]  ;;  %v5939_v14 = vcombine.low %v540_v0, %v544_v1  ;;  %v668_v1 = vld [vmem:[%s9594_s2 + $0x4d8] sm:$0xff] }
  0x83   : > { %2146 = vmatprep.subr.bf16.mxu1 %v6058_v17  ;;  %1979 = vmatprep.mubr.bf16.mxu1 %v7573_v60  ;;  %v572_v60 = vld [vmem:[%s9594_s2 + $0x1d8] sm:$0xff]  ;;  %v5986_v54 = vcombine.high %v587_v10, %v591_v12  ;;  %v5985_v28 = vcombine.low %v587_v10, %v591_v12 }
  0x84   : > { %2052 = vmatprep.mubr.bf16.mxu0 %v7172_v8  ;;  %v5972_v40 = vcombine.high %v572_v60, %v576_v32  ;;  %v5971_v43 = vcombine.low %v572_v60, %v576_v32  ;;  %v524_v17 = vld [vmem:[%s9594_s2 + $0x58] sm:$0xff] }
  0x85   : > { %2074 = vmatpush1.bf16.msra.mxu0 %v5929_v19  ;;  %v528_v19 = vld [vmem:[%s9594_s2 + $0x78] sm:$0xff] }
  0x86   : > { %2147 = vmatpush1.bf16.msra.mxu1 %v6057_v23  ;;  %2075 = vmatprep.subr.bf16.mxu0 %v5922_v24  ;;  %v583_v23 = vld [vmem:[%s9594_s2 + $0x230] sm:$0xff]  ;;  %v7813_v24 = vld [vmem:[%s7320_s30 + $0x38] ss:$12 sps:$4 sm:$0xff]  }
  0x87   : > { %2148 = vmatprep.subr.bf16.mxu1 %v6050_v25  ;;  %v5924_v25 = vcombine.high %v524_v17, %v528_v19  ;;  %v5978_v60 = vcombine.high %v579_v21, %v583_v23  ;;  %v636_v32 = vld [vmem:[%s9594_s2 + $0x3d8] sm:$0xff]  ;;  %v5977_v36 = vcombine.low %v579_v21, %v583_v23 }
  0x88   : > { %2053 = vmatmul.mubr.bf16.gmra.mxu0 %v7477_v2  ;;  %v564_v2 = vld [vmem:[%s9594_s2 + $0x198] sm:$0xff] }
  0x89   : > { %1980 = vmatmul.mubr.bf16.gmra.mxu1 %v7596_v11  ;;  %2076 = vmatpush1.bf16.msra.mxu0 %v5921_v26  ;;  %v568_v11 = vld [vmem:[%s9594_s2 + $0x1b8] sm:$0xff] }
  0x8a   : > { %2149 = vmatpush1.bf16.msra.mxu1 %v6049_v29  ;;  %2077 = vmatprep.subr.bf16.mxu0 %v5914_v30  ;;  %v5964_v45 = vcombine.high %v564_v2, %v568_v11  ;;  %v5963_v51 = vcombine.low %v564_v2, %v568_v11  ;;  %v516_v26 = vld [vmem:[%s9594_s2 + $0x18] sm:$0xff]  ;;  %v5923_v30 = vcombine.low %v524_v17, %v528_v19 }
  0x8b   : > { %2150 = vmatprep.subr.bf16.mxu1 %v6042_v33  ;;  %2168 = vmatprep.mubr.bf16.mxu1 %v7172_v8  ;;  %v700_v29 = vld [vmem:[%s9594_s2 + $0x5d8] sm:$0xff]  ;;  %v5916_v33 = vcombine.high %v516_v26, %v520_v27  ;;  %v5915_v2 = vcombine.low %v516_v26, %v520_v27 }
  0x8c   : > { %2095 = vmatprep.mubr.bf16.mxu0 %v7362_v59  ;;  %v556_v59 = vld [vmem:[%s9594_s2 + $0x158] sm:$0xff] }
  0x8d   : > { %2078 = vmatpush1.bf16.msra.mxu0 %v5913_v34  ;;  %v5956_v18 = vcombine.high %v556_v59, %v560_v49  ;;  %v5955_v58 = vcombine.low %v556_v59, %v560_v49  ;;  %v704_v34 = vld [vmem:[%s9594_s2 + $0x5f8] sm:$0xff]  ;;  %v6035_v59 = vcombine.low %v636_v32, %v640_v35 }
  0x8e   : > { %2151 = vmatpush1.bf16.msra.mxu1 %v6041_v38  ;;  %2079 = vmatprep.subr.bf16.mxu0 %v6034_v39  ;;  %v692_v38 = vld [vmem:[%s9594_s2 + $0x598] sm:$0xff]  ;;  %v6100_v11 = vcombine.high %v700_v29, %v704_v34  ;;  %v6099_v46 = vcombine.low %v700_v29, %v704_v34 }
  0x8f   : > { %2209 = vmatprep.subr.bf16.mxu1 %v5972_v40  ;;  %v7839_v39 = vld [vmem:[%s7320_s30 + $0x50] ss:$12 sps:$4 sm:$0xff]   ;;  %v7894_v7 = vld [vmem:[%s7320_s30 + $0x18] ss:$12 sps:$4 sm:$0xff]  }
  0x90   : > { %v628_v40 = vld [vmem:[%s9594_s2 + $0x398] sm:$0xff] }
  0x91   : > { %2169 = vmatmul.mubr.bf16.vlgmr.msra.gmra.mxu1 %v7390_v13  ;;  %2080 = vmatpush2.bf16.msra.mxu0 %v6033_v42  ;;  %v548_v13 = vld [vmem:[%s9594_s2 + $0x118] sm:$0xff]  ;;  %v6036_v42 = vcombine.high %v636_v32, %v640_v35 }
  0x92   : > { %2210 = vmatpush1.bf16.msra.mxu1 %v5971_v43  ;;  %2081 = vmatprep.subr.bf16.mxu0 %v6026_v44  ;;  %v5948_v61 = vcombine.high %v548_v13, %v552_v56  ;;  %v5947_v4 = vcombine.low %v548_v13, %v552_v56  ;;  %v696_v43 = vld [vmem:[%s9594_s2 + $0x5b8] sm:$0xff]  ;;  %v7154_v44 = vld [vmem:[%s7320_s30 + $0x4] ss:$12 sps:$4 sm:$0xff]  }
  0x93   : > { %2211 = vmatprep.subr.bf16.mxu1 %v5964_v45  ;;  %2178 = vmatprep.mubr.bf16.mxu1 %v7172_v8  ;;  %v632_v45 = vld [vmem:[%s9594_s2 + $0x3b8] sm:$0xff]  ;;  %v6092_v49 = vcombine.high %v692_v38, %v696_v43  ;;  %v6091_v55 = vcombine.low %v692_v38, %v696_v43  ;;  %v7949_v43 = vld [vmem:[%s7320_s30 + $0x48] ss:$12 sps:$4 sm:$0xff]  }
  0x94   : > { %v7869_v13 = vld [vmem:[%s7320_s30 + $0x1c] ss:$12 sps:$4 sm:$0xff]  }
  0x95   : > { %2082 = vmatpush2.bf16.msra.mxu0 %v6025_v50  ;;  %v620_v50 = vld [vmem:[%s9594_s2 + $0x358] sm:$0xff] }
  0x96   : > { %2212 = vmatpush1.bf16.msra.mxu1 %v5963_v51  ;;  %2083 = vmatprep.subr.bf16.mxu0 %v6018_v52  ;;  %v6028_v51 = vcombine.high %v628_v40, %v632_v45  ;;  %v688_v52 = vld [vmem:[%s9594_s2 + $0x578] sm:$0xff] }
  0x97   : > { %2213 = vmatprep.subr.bf16.mxu1 %v5956_v18  ;;  %v7862_v18 = vld [vmem:[%s7320_s30] ss:$12 sps:$4 sm:$0xff]   ;;  %v676_v56 = vld [vmem:[%s9594_s2 + $0x518] sm:$0xff]  ;;  %v6083_v0 = vcombine.low %v684_v47, %v688_v52 }
  0x98   : > { %v660_v10 = vld [vmem:[%s9594_s2 + $0x498] sm:$0xff] }
  0x99   : > { %2084 = vmatpush2.bf16.msra.mxu0 %v6017_v57  ;;  %2179 = vmatmul.mubr.bf16.gmra.mxu1 %v7419_v31  ;;  %v532_v31 = vld [vmem:[%s9594_s2 + $0x98] sm:$0xff]  ;;  %v6027_v57 = vcombine.low %v628_v40, %v632_v45 }
  0x9a   : > { %2214 = vmatpush1.bf16.msra.mxu1 %v5955_v58  ;;  %2085 = vmatprep.subr.bf16.mxu0 %v6010_v22  ;;  %v5932_v16 = vcombine.high %v532_v31, %v536_v41  ;;  %v5931_v48 = vcombine.low %v532_v31, %v536_v41  ;;  %v6084_v58 = vcombine.high %v684_v47, %v688_v52  ;;  %v612_v22 = vld [vmem:[%s9594_s2 + $0x318] sm:$0xff]  ;;  %v6648_v47 = vld [vmem:[%s9596_s4 + $0x2e4] ss:$16 sps:$4 sm:$0xff]  }
  0x9b   : > { %2215 = vmatprep.subr.bf16.mxu1 %v5948_v61  ;;  %2188 = vmatprep.mubr.bf16.mxu1 %v7172_v8  ;;  %v6020_v61 = vcombine.high %v620_v50, %v624_v53  ;;  %v608_v31 = vld [vmem:[%s9594_s2 + $0x2f8] sm:$0xff]  ;;  %v6075_v41 = vcombine.low %v676_v56, %v680_v62  ;;  %v6011_v12 = vcombine.low %v612_v22, %v616_v63  ;;  %v7162_v52 = vld [vmem:[%s7320_s30 + $0x8] ss:$12 sps:$4 sm:$0xff]  }
  0x9c   : > { %v664_v17 = vld [vmem:[%s9594_s2 + $0x4b8] sm:$0xff] }
  0x9d   : > { %2086 = vmatpush2.bf16.msra.mxu0 %v6009_v3  ;;  %v6019_v3 = vcombine.low %v620_v50, %v624_v53  ;;  %v600_v19 = vld [vmem:[%s9594_s2 + $0x2b8] sm:$0xff]  ;;  %v6060_v23 = vcombine.high %v660_v10, %v664_v17  ;;  %v6059_v29 = vcombine.low %v660_v10, %v664_v17  ;;  %v6646_v50 = vld [vmem:[%s9596_s4 + $0x2e0] ss:$16 sps:$4 sm:$0xff]   ;;  %v6690_v10 = vld [vmem:[%s9596_s4 + $0x204] ss:$16 sps:$4 sm:$0xff]  }
  0x9e   : > { %2216 = vmatpush1.bf16.msra.mxu1 %v5947_v4  ;;  %2087 = vmatprep.subr.bf16.mxu0 %v6002_v5  ;;  %v6076_v4 = vcombine.high %v676_v56, %v680_v62  ;;  %v604_v5 = vld [vmem:[%s9594_s2 + $0x2d8] sm:$0xff]  ;;  %v6622_v53 = vld [vmem:[%s9596_s4 + $0xc0] ss:$16 sps:$4 sm:$0xff]   ;;  %v6651_v17 = vld [vmem:[%s9596_s4 + $0x1c4] ss:$16 sps:$4 sm:$0xff]  }
  0x9f   : > { %2217 = vmatprep.subr.bf16.mxu1 %v5940_v6  ;;  %v6012_v6 = vcombine.high %v612_v22, %v616_v63  ;;  %v6003_v21 = vcombine.low %v604_v5, %v608_v31  ;;  %v656_v27 = vld [vmem:[%s9594_s2 + $0x478] sm:$0xff]  ;;  %v6652_v56 = vld [vmem:[%s9596_s4 + $0x2c0] ss:$16 sps:$4 sm:$0xff]   ;;  %v6666_v22 = vld [vmem:[%s9596_s4 + $0x284] ss:$16 sps:$4 sm:$0xff]  }
  0xa0   : > { %v584_v34 = vld [vmem:[%s9594_s2 + $0x238] sm:$0xff]  ;;  %v6628_v62 = vld [vmem:[%s9596_s4 + $0x80] ss:$16 sps:$4 sm:$0xff]   ;;  %v6633_v63 = vld [vmem:[%s9596_s4 + $0x64] ss:$16 sps:$4 sm:$0xff]  }
  0xa1   : > { %2088 = vmatpush2.bf16.msra.mxu0 %v6001_v9  ;;  %2189 = vmatmul.mubr.bf16.gmra.mxu1 %v7813_v24  ;;  %v7901_v9 = vld [vmem:[%s7320_s30 + $0x34] ss:$12 sps:$4 sm:$0xff]   ;;  %v644_v35 = vld [vmem:[%s9594_s2 + $0x418] sm:$0xff] }
  0xa2   : > { %2218 = vmatpush1.bf16.msra.mxu1 %v5939_v14  ;;  %2089 = vmatprep.subr.bf16.mxu0 %v5994_v15  ;;  %v6068_v14 = vcombine.high %v668_v1, %v672_v37  ;;  %v596_v15 = vld [vmem:[%s9594_s2 + $0x298] sm:$0xff] }
  0xa3   : > { %2219 = vmatprep.subr.bf16.mxu1 %v5932_v16  ;;  %2198 = vmatprep.mubr.bf16.mxu1 %v7172_v8  ;;  %v6004_v16 = vcombine.high %v604_v5, %v608_v31  ;;  %v5996_v26 = vcombine.high %v596_v15, %v600_v19  ;;  %v648_v38 = vld [vmem:[%s9594_s2 + $0x438] sm:$0xff]  ;;  %v6670_v5 = vld [vmem:[%s9596_s4 + $0x260] ss:$16 sps:$4 sm:$0xff]   ;;  %v6684_v31 = vld [vmem:[%s9596_s4 + $0x224] ss:$16 sps:$4 sm:$0xff]  }
  0xa4   : > { %v6044_v40 = vcombine.high %v644_v35, %v648_v38 }
  0xa5   : > { %2090 = vmatpush2.bf16.msra.mxu0 %v5993_v20  ;;  %v6067_v20 = vcombine.low %v668_v1, %v672_v37  ;;  %v6672_v1 = vld [vmem:[%s9596_s4 + $0x264] ss:$16 sps:$4 sm:$0xff]  }
  0xa6   : > { %2220 = vmatpush1.bf16.msra.mxu1 %v5931_v48  ;;  %2091 = vmatprep.subr.bf16.mxu0 %v5986_v54  ;;  %v588_v48 = vld [vmem:[%s9594_s2 + $0x258] sm:$0xff]  ;;  %v6678_v37 = vld [vmem:[%s9596_s4 + $0x244] ss:$16 sps:$4 sm:$0xff]  }
  0xa7   : > { %2221 = vmatprep.subr.bf16.mxu1 %v5924_v25  ;;  %v592_v54 = vld [vmem:[%s9594_s2 + $0x278] sm:$0xff] }
  0xa8   : > { %v652_v25 = vld [vmem:[%s9594_s2 + $0x458] sm:$0xff] }
  0xa9   : > { %2092 = vmatpush2.bf16.msra.mxu0 %v5985_v28  ;;  %2199 = vmatmul.mubr.bf16.gmra.mxu1 %v7839_v39  ;;  %v7929_v28 = vld [vmem:[%s7320_s30 + $0x30] ss:$12 sps:$4 sm:$0xff]   ;;  %v6052_v32 = vcombine.high %v652_v25, %v656_v27 }
  0xaa   : > { %2222 = vmatpush1.bf16.msra.mxu1 %v5923_v30  ;;  %2093 = vmatprep.subr.bf16.mxu0 %v5978_v60  ;;  %v7933_v30 = vld [vmem:[%s7320_s30 + $0x4c] ss:$12 sps:$4 sm:$0xff]   ;;  %v5995_v60 = vcombine.low %v596_v15, %v600_v19  ;;  %v6688_v15 = vld [vmem:[%s9596_s4 + $0x200] ss:$16 sps:$4 sm:$0xff]  }
  0xab   : > { %2223 = vmatprep.subr.bf16.mxu1 %v5916_v33  ;;  %2241 = vmatprep.mubr.bf16.mxu1 %v7154_v44  ;;  %v580_v33 = vld [vmem:[%s9594_s2 + $0x218] sm:$0xff]  ;;  %v6043_v44 = vcombine.low %v644_v35, %v648_v38  ;;  %v6691_v19 = vld [vmem:[%s9596_s4 + $0x3e0] ss:$16 sps:$4 sm:$0xff]   ;;  %v6675_v38 = vld [vmem:[%s9596_s4 + $0x144] ss:$16 sps:$4 sm:$0xff]  }
  0xac   : > { %v5979_v45 = vcombine.low %v580_v33, %v584_v34 }
  0xad   : > { %2094 = vmatpush2.bf16.msra.mxu0 %v5977_v36  ;;  %v5988_v36 = vcombine.high %v588_v48, %v592_v54 }
  0xae   : > { %2224 = vmatpush1.bf16.msra.mxu1 %v5915_v2  ;;  %2282 = vmatprep.subr.bf16.mxu0 %v6100_v11  ;;  %v6051_v2 = vcombine.low %v652_v25, %v656_v27  ;;  %v5987_v11 = vcombine.low %v588_v48, %v592_v54  ;;  %v6694_v48 = vld [vmem:[%s9596_s4 + $0x3c0] ss:$16 sps:$4 sm:$0xff]   ;;  %v6699_v54 = vld [vmem:[%s9596_s4 + $0x3a4] ss:$16 sps:$4 sm:$0xff]  }
  0xaf   : > { %2225 = vmatprep.subr.bf16.mxu1 %v6036_v42  ;;  %v5980_v42 = vcombine.high %v580_v33, %v584_v34  ;;  %v6663_v27 = vld [vmem:[%s9596_s4 + $0x184] ss:$16 sps:$4 sm:$0xff]   ;;  %v6700_v33 = vld [vmem:[%s9596_s4 + $0x380] ss:$16 sps:$4 sm:$0xff]  }
  0xb0   : > { %2096 = vmatmul.mubr.bf16.vlgmr.msra.gmra.mxu0 %v7862_v18  ;;  %v6705_v34 = vld [vmem:[%s9596_s4 + $0x364] ss:$16 sps:$4 sm:$0xff]  }
  0xb1   : > { %2283 = vmatpush1.bf16.msra.mxu0 %v6099_v46  ;;  %2105 = vmatprep.mubr.bf16.mxu0 %v7869_v13  ;;  %v6621_v46 = vld [vmem:[%s9596_s4 + $0xe4] ss:$16 sps:$4 sm:$0xff]  }
  0xb2   : > { %2226 = vmatpush2.bf16.msra.mxu1 %v6035_v59  ;;  %2284 = vmatprep.subr.bf16.mxu0 %v6092_v49  ;;  %v6619_v59 = vld [vmem:[%s9596_s4 + $0xe0] ss:$16 sps:$4 sm:$0xff]   ;;  %v6624_v49 = vld [vmem:[%s9596_s4 + $0xc4] ss:$16 sps:$4 sm:$0xff]  }
  0xb3   : > { %2227 = vmatprep.subr.bf16.mxu1 %v6028_v51  ;;  %v6654_v51 = vld [vmem:[%s9596_s4 + $0x2c4] ss:$16 sps:$4 sm:$0xff]  }
  0xb5   : > { %2285 = vmatpush1.bf16.msra.mxu0 %v6091_v55  ;;  %v6627_v55 = vld [vmem:[%s9596_s4 + $0xa4] ss:$16 sps:$4 sm:$0xff]  }
  0xb6   : > { %2228 = vmatpush2.bf16.msra.mxu1 %v6027_v57  ;;  %2286 = vmatprep.subr.bf16.mxu0 %v6084_v58  ;;  %v6625_v57 = vld [vmem:[%s9596_s4 + $0xa0] ss:$16 sps:$4 sm:$0xff]  }
  0xb7   : > { %2229 = vmatprep.subr.bf16.mxu1 %v6020_v61  ;;  %v6658_v58 = vld [vmem:[%s9596_s4 + $0x2a0] ss:$16 sps:$4 sm:$0xff]  }
  0xb8   : > { %2106 = vmatmul.mubr.bf16.gmra.mxu0 %v7894_v7  ;;  %v7163_v61 = vld [vmem:[%s7320_s30 + $0x20] ss:$12 sps:$4 sm:$0xff]   ;;  %s5896_s30 = sshll.u32 %s9608_s21, 3 }
  0xb9   : > { %2287 = vmatpush1.bf16.msra.mxu0 %v6083_v0  ;;  %2115 = vmatprep.mubr.bf16.mxu0 %v7901_v9  ;;  %v6664_v0 = vld [vmem:[%s9596_s4 + $0x280] ss:$16 sps:$4 sm:$0xff]   ;;  %s494_s22 = scalar_lea.vmem %s9606_s14, %s5896_s30 }
  0xba   : > { %2230 = vmatpush2.bf16.msra.mxu1 %v6019_v3  ;;  %2288 = vmatprep.subr.bf16.mxu0 %v6076_v4  ;;  %v6631_v3 = vld [vmem:[%s9596_s4 + $0x60] ss:$16 sps:$4 sm:$0xff]   ;;  %v6636_v4 = vld [vmem:[%s9596_s4 + $0x44] ss:$16 sps:$4 sm:$0xff]  }
  0xbb   : > { %2231 = vmatprep.subr.bf16.mxu1 %v6012_v6  ;;  %v6634_v6 = vld [vmem:[%s9596_s4 + $0x40] ss:$16 sps:$4 sm:$0xff]  }
  0xbd   : > { %2289 = vmatpush1.bf16.msra.mxu0 %v6075_v41  ;;  %v6642_v41 = vld [vmem:[%s9596_s4 + $0x4] ss:$16 sps:$4 sm:$0xff]  }
  0xbe   : > { %2232 = vmatpush2.bf16.msra.mxu1 %v6011_v12  ;;  %2290 = vmatprep.subr.bf16.mxu0 %v6068_v14  ;;  %v6640_v12 = vld [vmem:[%s9596_s4] ss:$16 sps:$4 sm:$0xff]   ;;  %v6645_v14 = vld [vmem:[%s9596_s4 + $0x1e4] ss:$16 sps:$4 sm:$0xff]  }
  0xbf   : > { %2233 = vmatprep.subr.bf16.mxu1 %v6004_v16  ;;  %v6643_v16 = vld [vmem:[%s9596_s4 + $0x1e0] ss:$16 sps:$4 sm:$0xff]  }
  0xc0   : > { %2116 = vmatmul.mubr.bf16.gmra.mxu0 %v7929_v28 }
  0xc1   : > { %2291 = vmatpush1.bf16.msra.mxu0 %v6067_v20  ;;  %2125 = vmatprep.mubr.bf16.mxu0 %v7933_v30  ;;  %v6696_v20 = vld [vmem:[%s9596_s4 + $0x3c4] ss:$16 sps:$4 sm:$0xff]  }
  0xc2   : > { %2234 = vmatpush2.bf16.msra.mxu1 %v6003_v21  ;;  %2292 = vmatprep.subr.bf16.mxu0 %v6060_v23  ;;  %v6649_v21 = vld [vmem:[%s9596_s4 + $0x1c0] ss:$16 sps:$4 sm:$0xff]   ;;  %v6657_v23 = vld [vmem:[%s9596_s4 + $0x1a4] ss:$16 sps:$4 sm:$0xff]  }
  0xc3   : > { %2235 = vmatprep.subr.bf16.mxu1 %v5996_v26  ;;  %v6655_v26 = vld [vmem:[%s9596_s4 + $0x1a0] ss:$16 sps:$4 sm:$0xff]  }
  0xc5   : > { %2293 = vmatpush1.bf16.msra.mxu0 %v6059_v29  ;;  %v6702_v29 = vld [vmem:[%s9596_s4 + $0x384] ss:$16 sps:$4 sm:$0xff]  }
  0xc6   : > { %2236 = vmatpush2.bf16.msra.mxu1 %v5995_v60  ;;  %2294 = vmatprep.subr.bf16.mxu0 %v6052_v32  ;;  %v6661_v60 = vld [vmem:[%s9596_s4 + $0x180] ss:$16 sps:$4 sm:$0xff]   ;;  %v6669_v32 = vld [vmem:[%s9596_s4 + $0x164] ss:$16 sps:$4 sm:$0xff]  }
  0xc7   : > { %2237 = vmatprep.subr.bf16.mxu1 %v5988_v36  ;;  %v6667_v36 = vld [vmem:[%s9596_s4 + $0x160] ss:$16 sps:$4 sm:$0xff]  }
  0xc8   : > { %2126 = vmatmul.mubr.bf16.gmra.mxu0 %v7949_v43 }
  0xc9   : > { %2295 = vmatpush1.bf16.msra.mxu0 %v6051_v2  ;;  %2314 = vmatprep.mubr.bf16.mxu0 %v7172_v8  ;;  %v6703_v2 = vld [vmem:[%s9596_s4 + $0x360] ss:$16 sps:$4 sm:$0xff]  }
  0xca   : > { %2238 = vmatpush2.bf16.msra.mxu1 %v5987_v11  ;;  %2296 = vmatprep.subr.bf16.mxu0 %v6044_v40  ;;  %v6708_v11 = vld [vmem:[%s9596_s4 + $0x344] ss:$16 sps:$4 sm:$0xff]  }
  0xcb   : > { %2239 = vmatprep.subr.bf16.mxu1 %v5980_v42  ;;  %v6673_v42 = vld [vmem:[%s9596_s4 + $0x140] ss:$16 sps:$4 sm:$0xff]  }
  0xcd   : > { %2297 = vmatpush1.bf16.msra.mxu0 %v6043_v44  ;;  %v6681_v44 = vld [vmem:[%s9596_s4 + $0x124] ss:$16 sps:$4 sm:$0xff]  }
  0xce   : > { %2240 = vmatpush2.bf16.msra.mxu1 %v5979_v45  ;;  %4009 = vmatprep.subr.bf16.mxu0 %v6621_v46  ;;  %v6706_v45 = vld [vmem:[%s9596_s4 + $0x340] ss:$16 sps:$4 sm:$0xff]   ;;  %v707_v46 = vlaneseq }
  0xcf   : > { %4082 = vmatprep.subr.bf16.mxu1 %v6648_v47  ;;  %v6711_v47 = vld [vmem:[%s9596_s4 + $0x324] ss:$16 sps:$4 sm:$0xff]  }
  0xd0   : > { %2315 = vmatmul.mubr.bf16.vlgmr.msra.gmra.mxu0 %v7162_v52  ;;  %v8156_v52 = vshrl.u32 %v707_v46, 7 }
  0xd1   : > { %2242 = vmatmul.mubr.bf16.vlgmr.msra.gmra.mxu1 %v7862_v18  ;;  %2324 = vmatprep.mubr.bf16.mxu0 %v7172_v8  ;;  %v6660_v18 = vld [vmem:[%s9596_s4 + $0x2a4] ss:$16 sps:$4 sm:$0xff]  }
  0xd2   : > { %2251 = vmatprep.mubr.bf16.mxu1 %v7869_v13  ;;  %4010 = vmatpush1.bf16.msra.mxu0 %v6619_v59  ;;  %v6630_v13 = vld [vmem:[%s9596_s4 + $0x84] ss:$16 sps:$4 sm:$0xff]   ;;  %v6679_v59 = vld [vmem:[%s9596_s4 + $0x120] ss:$16 sps:$4 sm:$0xff]  }
  0xd3   : > { %4011 = vmatprep.subr.bf16.mxu0 %v6624_v49  ;;  %4083 = vmatpush1.bf16.msra.mxu1 %v6646_v50  ;;  %v6687_v50 = vld [vmem:[%s9596_s4 + $0x104] ss:$16 sps:$4 sm:$0xff]  }
  0xd4   : > { %4084 = vmatprep.subr.bf16.mxu1 %v6654_v51  ;;  %v6709_v51 = vld [vmem:[%s9596_s4 + $0x320] ss:$16 sps:$4 sm:$0xff]  }
  0xd6   : > { %4012 = vmatpush1.bf16.msra.mxu0 %v6622_v53  ;;  %v6714_v53 = vld [vmem:[%s9596_s4 + $0x304] ss:$16 sps:$4 sm:$0xff]  }
  0xd7   : > { %4013 = vmatprep.subr.bf16.mxu0 %v6627_v55  ;;  %4085 = vmatpush1.bf16.msra.mxu1 %v6652_v56  ;;  %v6685_v55 = vld [vmem:[%s9596_s4 + $0x100] ss:$16 sps:$4 sm:$0xff]   ;;  %v8165_v56 = vsub.s32 1, %v8156_v52 }
  0xd8   : > { %2325 = vmatmul.mubr.bf16.gmra.mxu0 %v7163_v61  ;;  %4086 = vmatprep.subr.bf16.mxu1 %v6660_v18  ;;  %v8182_v61 = vld [vmem:[%s9595_s3] sm:$0xff] }
  0xd9   : > { %2252 = vmatmul.mubr.bf16.gmra.mxu1 %v7894_v7  ;;  %2334 = vmatprep.mubr.bf16.mxu0 %v7172_v8  ;;  %v6639_v7 = vld [vmem:[%s9596_s4 + $0x24] ss:$16 sps:$4 sm:$0xff]  }
  0xda   : > { %2261 = vmatprep.mubr.bf16.mxu1 %v7901_v9  ;;  %4014 = vmatpush1.bf16.msra.mxu0 %v6625_v57  ;;  %v6682_v9 = vld [vmem:[%s9596_s4 + $0x220] ss:$16 sps:$4 sm:$0xff]  }
  0xdb   : > { %4015 = vmatprep.subr.bf16.mxu0 %v6630_v13  ;;  %4087 = vmatpush1.bf16.msra.mxu1 %v6658_v58  ;;  %v6712_v57 = vld [vmem:[%s9596_s4 + $0x300] ss:$16 sps:$4 sm:$0xff]   ;;  %v6717_v13 = vld [vmem:[%s9596_s4 + $0x4e4] ss:$16 sps:$4 sm:$0xff]   ;;  %v8174_v58 = vsub.s32 0, %v8156_v52 }
  0xdc   : > { %4088 = vmatprep.subr.bf16.mxu1 %v6666_v22  ;;  %v6744_v22 = vld [vmem:[%s9596_s4 + $0x6e4] ss:$16 sps:$4 sm:$0xff]  }
  0xde   : > { %4016 = vmatpush1.bf16.msra.mxu0 %v6628_v62  ;;  %v8186_v62 = vrot.slane %v8182_v61, %v8165_v56 }
  0xdf   : > { %4017 = vmatprep.subr.bf16.mxu0 %v6633_v63  ;;  %4089 = vmatpush1.bf16.msra.mxu1 %v6664_v0  ;;  %v8190_v0 = vrot.slane %v8182_v61, %v8174_v58 }
  0xe0   : > { %2335 = vmatmul.mubr.bf16.gmra.mxu0 %v7813_v24  ;;  %4090 = vmatprep.subr.bf16.mxu1 %v6672_v1  ;;  %v6676_v24 = vld [vmem:[%s9596_s4 + $0x240] ss:$16 sps:$4 sm:$0xff]  }
  0xe1   : > { %2262 = vmatmul.mubr.bf16.gmra.mxu1 %v7929_v28  ;;  %2344 = vmatprep.mubr.bf16.mxu0 %v7172_v8  ;;  %v6637_v8 = vld [vmem:[%s9596_s4 + $0x20] ss:$16 sps:$4 sm:$0xff]  }
  0xe2   : > { %2271 = vmatprep.mubr.bf16.mxu1 %v7933_v30  ;;  %4018 = vmatpush1.bf16.msra.mxu0 %v6631_v3  ;;  %v6697_v28 = vld [vmem:[%s9596_s4 + $0x3a0] ss:$16 sps:$4 sm:$0xff]  }
  0xe3   : > { %4019 = vmatprep.subr.bf16.mxu0 %v6636_v4  ;;  %4091 = vmatpush1.bf16.msra.mxu1 %v6670_v5 }
  0xe4   : > { %4092 = vmatprep.subr.bf16.mxu1 %v6678_v37 }
  0xe6   : > { %4020 = vmatpush1.bf16.msra.mxu0 %v6634_v6 }
  0xe7   : > { %4021 = vmatprep.subr.bf16.mxu0 %v6639_v7  ;;  %4093 = vmatpush1.bf16.msra.mxu1 %v6676_v24 }
  0xe8   : > { %2345 = vmatmul.mubr.bf16.gmra.mxu0 %v7839_v39  ;;  %4094 = vmatprep.subr.bf16.mxu1 %v6684_v31  ;;  %v6693_v39 = vld [vmem:[%s9596_s4 + $0x3e4] ss:$16 sps:$4 sm:$0xff]  }
  0xe9   : > { %2272 = vmatmul.mubr.bf16.gmra.mxu1 %v7949_v43 }
  0xea   : > { %4022 = vmatpush1.bf16.msra.mxu0 %v6637_v8 }
  0xeb   : > { %4023 = vmatprep.subr.bf16.mxu0 %v6642_v41  ;;  %4095 = vmatpush1.bf16.msra.mxu1 %v6682_v9 }
  0xec   : > { %4096 = vmatprep.subr.bf16.mxu1 %v6690_v10 }
  0xee   : > { %4024 = vmatpush1.bf16.msra.mxu0 %v6640_v12 }
  0xef   : > { %4025 = vmatprep.subr.bf16.mxu0 %v6645_v14  ;;  %4097 = vmatpush1.bf16.msra.mxu1 %v6688_v15 }
  0xf0   : > { %4098 = vmatprep.subr.bf16.mxu1 %v6693_v39 }
  0xf1   : > { %v8093_v25 = vpop.f32.mrf.mxu1 }
  0xf2   : > { %4026 = vmatpush2.bf16.msra.mxu0 %v6643_v16 }
  0xf3   : > { %4027 = vmatprep.subr.bf16.mxu0 %v6651_v17  ;;  %4099 = vmatpush2.bf16.msra.mxu1 %v6691_v19  ;;  %v8107_v30 = vpop.f32.mrf.mxu1 }
  0xf4   : > { %4100 = vmatprep.subr.bf16.mxu1 %v6696_v20 }
  0xf5   : > { %v1882_v35 = vpop.f32.mrf.mxu1 }
  0xf6   : > { %4028 = vmatpush2.bf16.msra.mxu0 %v6649_v21 }
  0xf7   : > { %4029 = vmatprep.subr.bf16.mxu0 %v6657_v23  ;;  %4101 = vmatpush2.bf16.msra.mxu1 %v6694_v48  ;;  %v1884_v40 = vpop.f32.mrf.mxu1 }
  0xf8   : > { %4102 = vmatprep.subr.bf16.mxu1 %v6699_v54 }
  0xf9   : > { %v8136_v43 = vpop.f32.mrf.mxu1 }
  0xfa   : > { %4030 = vmatpush2.bf16.msra.mxu0 %v6655_v26 }
  0xfb   : > { %4031 = vmatprep.subr.bf16.mxu0 %v6663_v27  ;;  %4103 = vmatpush2.bf16.msra.mxu1 %v6697_v28  ;;  %v1890_v49 = vpop.f32.mrf.mxu1 }
  0xfc   : > { %4104 = vmatprep.subr.bf16.mxu1 %v6702_v29  ;;  %v6720_v29 = vld [vmem:[%s9596_s4 + $0x4c4] ss:$16 sps:$4 sm:$0xff]  }
  0xfd   : > { %v1892_v18 = vpop.f32.mrf.mxu1 }
  0xfe   : > { %4032 = vmatpush2.bf16.msra.mxu0 %v6661_v60 }
  0xff   : > { %4033 = vmatprep.subr.bf16.mxu0 %v6669_v32  ;;  %4105 = vmatpush2.bf16.msra.mxu1 %v6700_v33  ;;  %v1894_v63 = vpop.f32.mrf.mxu1 }
 0x100   : > { %4106 = vmatprep.subr.bf16.mxu1 %v6705_v34 }
 0x101   : > { %v1898_v5 = vpop.f32.mrf.mxu1 }
 0x102   : > { %4034 = vmatpush2.bf16.msra.mxu0 %v6667_v36 }
 0x103   : > { %4035 = vmatprep.subr.bf16.mxu0 %v6675_v38  ;;  %4107 = vmatpush2.bf16.msra.mxu1 %v6703_v2  ;;  %v1900_v9 = vpop.f32.mrf.mxu1  ;;  %v6718_v38 = vld [vmem:[%s9596_s4 + $0x4c0] ss:$16 sps:$4 sm:$0xff]  }
 0x104   : > { %4108 = vmatprep.subr.bf16.mxu1 %v6708_v11 }
 0x105   : > { %v1902_v20 = vpop.f32.mrf.mxu1 }
 0x106   : > { %4036 = vmatpush2.bf16.msra.mxu0 %v6673_v42 }
 0x107   : > { %4037 = vmatprep.subr.bf16.mxu0 %v6681_v44  ;;  %4109 = vmatpush2.bf16.msra.mxu1 %v6706_v45  ;;  %v1904_v33 = vpop.f32.mrf.mxu1 }
 0x108   : > { %4110 = vmatprep.subr.bf16.mxu1 %v6711_v47 }
 0x109   : > { %v1908_v45 = vpop.f32.mrf.mxu1 }
 0x10a   : > { %4038 = vmatpush2.bf16.msra.mxu0 %v6679_v59 }
 0x10b   : > { %4039 = vmatprep.subr.bf16.mxu0 %v6687_v50  ;;  %4111 = vmatpush2.bf16.msra.mxu1 %v6709_v51  ;;  %v6721_v51 = vld [vmem:[%s9596_s4 + $0x4a0] ss:$16 sps:$4 sm:$0xff]  }
 0x10c   : > { %4112 = vmatprep.subr.bf16.mxu1 %v6714_v53 }
 0x10e   : > { %4040 = vmatpush2.bf16.msra.mxu0 %v6685_v55 }
 0x10f   : > { %4113 = vmatpush2.bf16.msra.mxu1 %v6712_v57  ;;  %4155 = vmatprep.subr.bf16.mxu0 %v6717_v13 }
 0x110   : > { %v1805_v1 = vpop.f32.mrf.mxu0  ;;  %4228 = vmatprep.subr.bf16.mxu1 %v6744_v22  ;;  %v1910_v22 = vpop.f32.mrf.mxu1 }
 0x111   : > { %v1806_v6 = vadd.f32 %v1805_v1, %v8190_v0 }
 0x112   : > { %v1807_v3 = vpop.f32.mrf.mxu0 }
 0x113   : > { %v1808_v4 = vadd.f32 %v1807_v3, %v8186_v62  ;;  %v1879_v10 = vadd.f32 %v8093_v25, %v1806_v6  ;;  %v6715_v25 = vld [vmem:[%s9596_s4 + $0x4e0] ss:$16 sps:$4 sm:$0xff]  }
 0x114   : > { %v1809_v37 = vpop.f32.mrf.mxu0  ;;  %v6724_v6 = vld [vmem:[%s9596_s4 + $0x480] ss:$16 sps:$4 sm:$0xff]  }
 0x115   : > { %v1810_v7 = vadd.f32 %v1809_v37, %v8190_v0  ;;  %v1881_v31 = vadd.f32 %v8107_v30, %v1808_v4  ;;  %v2355_v21 = vmax.f32 %v1879_v10, 0.0 }
 0x116   : > { %v1811_v24 = vpop.f32.mrf.mxu0 }
 0x117   : > { %v1883_v8 = vadd.f32 %v1882_v35, %v1810_v7  ;;  %v1812_v41 = vadd.f32 %v1811_v24, %v8186_v62  ;;  %v2356_v16 = vmax.f32 %v1881_v31, 0.0  ;;  %v6729_v24 = vld [vmem:[%s9596_s4 + $0x464] ss:$16 sps:$4 sm:$0xff]  }
 0x118   : > { %v1815_v12 = vpop.f32.mrf.mxu0 }
 0x119   : > { %v1885_v14 = vadd.f32 %v1884_v40, %v1812_v41  ;;  %v2363_v15 = vmax.f32 %v1883_v8, 0.0  ;;  %v1816_v23 = vadd.f32 %v1815_v12, %v8190_v0  ;;  %v6723_v40 = vld [vmem:[%s9596_s4 + $0x4a4] ss:$16 sps:$4 sm:$0xff]   ;;  %v1912_v41 = vpop.f32.mrf.mxu1 }
 0x11a   : > { %v1817_v39 = vpop.f32.mrf.mxu0 }
 0x11b   : > { %v2364_v17 = vmax.f32 %v1885_v14, 0.0  ;;  %v1818_v19 = vadd.f32 %v1817_v39, %v8186_v62  ;;  %v8206_v27 = vpack.c.bf16 %v2363_v15, %v2355_v21  ;;  %v1889_v34 = vadd.f32 %v8136_v43, %v1816_v23  ;;  %v6732_v21 = vld [vmem:[%s9596_s4 + $0x444] ss:$16 sps:$4 sm:$0xff]   ;;  %v1914_v23 = vpop.f32.mrf.mxu1 }
 0x11c   : > { %v1819_v48 = vpop.f32.mrf.mxu0  ;;  %v721_v14 = vsub.s32 3, %v8156_v52 }
 0x11d   : > { %v1820_v54 = vadd.f32 %v1819_v48, %v8190_v0  ;;  %v8201_v26 = vpack.c.bf16 %v2364_v17, %v2356_v16  ;;  %v1891_v30 = vadd.f32 %v1890_v49, %v1818_v19  ;;  %v2371_v46 = vmax.f32 %v1889_v34, 0.0  ;;  %v6727_v17 = vld [vmem:[%s9596_s4 + $0x460] ss:$16 sps:$4 sm:$0xff]  }
 0x11e   : > { %v1821_v28 = vpop.f32.mrf.mxu0  ;;  %v717_v16 = vsub.s32 2, %v8156_v52 }
 0x11f   : > { %v1893_v60 = vadd.f32 %v1892_v18, %v1820_v54  ;;  %v1822_v32 = vadd.f32 %v1821_v28, %v8186_v62  ;;  %4041 = vmatprep.mubr.bf16.mxu0 %v8201_v26  ;;  %v2372_v42 = vmax.f32 %v1891_v30, 0.0  ;;  %v6726_v18 = vld [vmem:[%s9596_s4 + $0x484] ss:$16 sps:$4 sm:$0xff]  }
 0x120   : > { %v1825_v35 = vpop.f32.mrf.mxu0  ;;  %4042 = vmatmul.mubr.bf16.vlgmr.msra.gmra.mxu0 %v8206_v27 }
 0x121   : > { %v1895_v36 = vadd.f32 %v1894_v63, %v1822_v32  ;;  %4156 = vmatpush1.bf16.msra.mxu0 %v6715_v25  ;;  %v2379_v2 = vmax.f32 %v1893_v60, 0.0  ;;  %v1826_v47 = vadd.f32 %v1825_v35, %v8190_v0  ;;  %v8269_v60 = vrot.slane %v8182_v61, %v717_v16  ;;  %v6735_v35 = vld [vmem:[%s9596_s4 + $0x424] ss:$16 sps:$4 sm:$0xff]  }
 0x122   : > { %v1827_v11 = vpop.f32.mrf.mxu0  ;;  %4157 = vmatprep.subr.bf16.mxu0 %v6720_v29  ;;  %v8264_v29 = vrot.slane %v8182_v61, %v721_v14 }
 0x123   : > { %v2380_v44 = vmax.f32 %v1895_v36, 0.0  ;;  %v1828_v43 = vadd.f32 %v1827_v11, %v8186_v62  ;;  %v8229_v55 = vpack.c.bf16 %v2379_v2, %v2371_v46  ;;  %v1899_v1 = vadd.f32 %v1898_v5, %v1826_v47  ;;  %v6733_v46 = vld [vmem:[%s9596_s4 + $0x420] ss:$16 sps:$4 sm:$0xff]  }
 0x124   : > { %v1829_v59 = vpop.f32.mrf.mxu0 }
 0x125   : > { %v1830_v49 = vadd.f32 %v1829_v59, %v8190_v0  ;;  %v8224_v50 = vpack.c.bf16 %v2380_v44, %v2372_v42  ;;  %4158 = vmatpush1.bf16.msra.mxu0 %v6718_v38  ;;  %v1901_v57 = vadd.f32 %v1900_v9, %v1828_v43  ;;  %v2387_v9 = vmax.f32 %v1899_v1, 0.0 }
 0x126   : > { %v1831_v53 = vpop.f32.mrf.mxu0  ;;  %4159 = vmatprep.subr.bf16.mxu0 %v6723_v40 }
 0x127   : > { %v1903_v13 = vadd.f32 %v1902_v20, %v1830_v49  ;;  %v1832_v63 = vadd.f32 %v1831_v53, %v8186_v62  ;;  %4051 = vmatprep.mubr.bf16.mxu0 %v8224_v50  ;;  %v2388_v31 = vmax.f32 %v1901_v57, 0.0 }
 0x128   : > { %v1835_v3 = vpop.f32.mrf.mxu0  ;;  %4052 = vmatmul.mubr.bf16.gmra.mxu0 %v8229_v55 }
 0x129   : > { %v1905_v4 = vadd.f32 %v1904_v33, %v1832_v63  ;;  %4160 = vmatpush1.bf16.msra.mxu0 %v6721_v51  ;;  %v2395_v37 = vmax.f32 %v1903_v13, 0.0  ;;  %v1836_v10 = vadd.f32 %v1835_v3, %v8190_v0  ;;  %v6738_v51 = vld [vmem:[%s9596_s4 + $0x404] ss:$16 sps:$4 sm:$0xff]   ;;  %v6736_v3 = vld [vmem:[%s9596_s4 + $0x400] ss:$16 sps:$4 sm:$0xff]  }
 0x12a   : > { %v1837_v7 = vpop.f32.mrf.mxu0  ;;  %4161 = vmatprep.subr.bf16.mxu0 %v6726_v18 }
 0x12b   : > { %v2396_v8 = vmax.f32 %v1905_v4, 0.0  ;;  %v1838_v5 = vadd.f32 %v1837_v7, %v8186_v62  ;;  %v8253_v20 = vpack.c.bf16 %v2395_v37, %v2387_v9  ;;  %v1909_v25 = vadd.f32 %v1908_v45, %v1836_v10  ;;  %v6741_v37 = vld [vmem:[%s9596_s4 + $0x5e4] ss:$16 sps:$4 sm:$0xff]  }
 0x12c   : > { %v1839_v12 = vpop.f32.mrf.mxu0 }
 0x12d   : > { %v1840_v15 = vadd.f32 %v1839_v12, %v8190_v0  ;;  %v8247_v39 = vpack.c.bf16 %v2396_v8, %v2388_v31  ;;  %4162 = vmatpush1.bf16.msra.mxu0 %v6724_v6  ;;  %v1911_v48 = vadd.f32 %v1910_v22, %v1838_v5  ;;  %v2403_v11 = vmax.f32 %v1909_v25, 0.0  ;;  %v6750_v25 = vld [vmem:[%s9596_s4 + $0x6c4] ss:$16 sps:$4 sm:$0xff]  }
 0x12e   : > { %v1841_v19 = vpop.f32.mrf.mxu0  ;;  %4163 = vmatprep.subr.bf16.mxu0 %v6729_v24 }
 0x12f   : > { %v1913_v0 = vadd.f32 %v1912_v41, %v1840_v15  ;;  %v1842_v54 = vadd.f32 %v1841_v19, %v8186_v62  ;;  %4061 = vmatprep.mubr.bf16.mxu0 %v8247_v39  ;;  %v6730_v62 = vld [vmem:[%s9596_s4 + $0x440] ss:$16 sps:$4 sm:$0xff]   ;;  %v2404_v36 = vmax.f32 %v1911_v48, 0.0  ;;  %v6747_v48 = vld [vmem:[%s9596_s4 + $0x5c4] ss:$16 sps:$4 sm:$0xff]  }
 0x130   : > { %v2024_v28 = vpop.f32.mrf.mxu0  ;;  %4062 = vmatmul.mubr.bf16.gmra.mxu0 %v8253_v20  ;;  %v6739_v15 = vld [vmem:[%s9596_s4 + $0x5e0] ss:$16 sps:$4 sm:$0xff]  }
 0x131   : > { %v1915_v30 = vadd.f32 %v1914_v23, %v1842_v54  ;;  %v1951_v32 = vpop.f32.mrf.mxu1  ;;  %4164 = vmatpush1.bf16.msra.mxu0 %v6727_v17  ;;  %v2411_v33 = vmax.f32 %v1913_v0, 0.0  ;;  %v6742_v23 = vld [vmem:[%s9596_s4 + $0x6e0] ss:$16 sps:$4 sm:$0xff]  }
 0x132   : > { %v2026_v34 = vpop.f32.mrf.mxu0  ;;  %4165 = vmatprep.subr.bf16.mxu0 %v6732_v21  ;;  %v1952_v44 = vadd.f32 %v1951_v32, %v8269_v60 }
 0x133   : > { %v2412_v38 = vmax.f32 %v1915_v30, 0.0  ;;  %v1953_v2 = vpop.f32.mrf.mxu1  ;;  %v8285_v49 = vpack.c.bf16 %v2411_v33, %v2403_v11  ;;  %v6753_v11 = vld [vmem:[%s9596_s4 + $0x5a4] ss:$16 sps:$4 sm:$0xff]  }
 0x134   : > { %v1954_v40 = vadd.f32 %v1953_v2, %v8264_v29  ;;  %v2028_v42 = vpop.f32.mrf.mxu0  ;;  %v2025_v63 = vadd.f32 %v2024_v28, %v1952_v44  ;;  %v6748_v2 = vld [vmem:[%s9596_s4 + $0x6c0] ss:$16 sps:$4 sm:$0xff]   ;;  %v6756_v44 = vld [vmem:[%s9596_s4 + $0x6a4] ss:$16 sps:$4 sm:$0xff]  }
 0x135   : > { %v1955_v43 = vpop.f32.mrf.mxu1  ;;  %v8279_v45 = vpack.c.bf16 %v2412_v38, %v2404_v36  ;;  %4166 = vmatpush1.bf16.msra.mxu0 %v6730_v62 }
 0x136   : > { %v1956_v47 = vadd.f32 %v1955_v43, %v8269_v60  ;;  %v2030_v59 = vpop.f32.mrf.mxu0  ;;  %4167 = vmatprep.subr.bf16.mxu0 %v6735_v35  ;;  %v2027_v18 = vadd.f32 %v2026_v34, %v1954_v40  ;;  %v2357_v9 = vmax.f32 %v2025_v63, 0.0  ;;  %v6745_v35 = vld [vmem:[%s9596_s4 + $0x5c0] ss:$16 sps:$4 sm:$0xff]  }
 0x137   : > { %v1957_v53 = vpop.f32.mrf.mxu1  ;;  %4071 = vmatprep.mubr.bf16.mxu0 %v8279_v45 }
 0x138   : > { %v2029_v57 = vadd.f32 %v2028_v42, %v1956_v47  ;;  %v1958_v13 = vadd.f32 %v1957_v53, %v8264_v29  ;;  %4072 = vmatmul.mubr.bf16.gmra.mxu0 %v8285_v49  ;;  %v2034_v22 = vpop.f32.mrf.mxu0  ;;  %v2358_v31 = vmax.f32 %v2027_v18, 0.0 }
 0x139   : > { %v1961_v1 = vpop.f32.mrf.mxu1  ;;  %4168 = vmatpush1.bf16.msra.mxu0 %v6733_v46 }
 0x13a   : > { %v2031_v4 = vadd.f32 %v2030_v59, %v1958_v13  ;;  %v2036_v6 = vpop.f32.mrf.mxu0  ;;  %4169 = vmatprep.subr.bf16.mxu0 %v6738_v51  ;;  %v2365_v7 = vmax.f32 %v2029_v57, 0.0  ;;  %v1962_v10 = vadd.f32 %v1961_v1, %v8269_v60  ;;  %v6751_v57 = vld [vmem:[%s9596_s4 + $0x5a0] ss:$16 sps:$4 sm:$0xff]  }
 0x13b   : > { %v1963_v24 = vpop.f32.mrf.mxu1  ;;  %v6754_v1 = vld [vmem:[%s9596_s4 + $0x6a0] ss:$16 sps:$4 sm:$0xff]  }
 0x13c   : > { %v2366_v8 = vmax.f32 %v2031_v4, 0.0  ;;  %v1964_v41 = vadd.f32 %v1963_v24, %v8264_v29  ;;  %v2038_v5 = vpop.f32.mrf.mxu0  ;;  %v8313_v0 = vpack.c.bf16 %v2365_v7, %v2357_v9  ;;  %v2035_v33 = vadd.f32 %v2034_v22, %v1962_v10  ;;  %v6757_v9 = vld [vmem:[%s9596_s4 + $0x580] ss:$16 sps:$4 sm:$0xff]  }
 0x13d   : > { %v1965_v12 = vpop.f32.mrf.mxu1  ;;  %4170 = vmatpush1.bf16.msra.mxu0 %v6736_v3  ;;  %v6759_v3 = vld [vmem:[%s9596_s4 + $0x584] ss:$16 sps:$4 sm:$0xff]  }
 0x13e   : > { %v1966_v17 = vadd.f32 %v1965_v12, %v8269_v60  ;;  %v8305_v19 = vpack.c.bf16 %v2366_v8, %v2358_v31  ;;  %v2040_v21 = vpop.f32.mrf.mxu0  ;;  %4171 = vmatprep.subr.bf16.mxu0 %v6741_v37  ;;  %v2037_v28 = vadd.f32 %v2036_v6, %v1964_v41  ;;  %v2373_v51 = vmax.f32 %v2035_v33, 0.0  ;;  %v6762_v37 = vld [vmem:[%s9596_s4 + $0x684] ss:$16 sps:$4 sm:$0xff]  }
 0x13f   : > { %v1967_v54 = vpop.f32.mrf.mxu1 }
 0x140   : > { %v1968_v30 = vadd.f32 %v1967_v54, %v8264_v29  ;;  %v2039_v32 = vadd.f32 %v2038_v5, %v1966_v17  ;;  %4114 = vmatprep.mubr.bf16.mxu1 %v8305_v19  ;;  %v2044_v62 = vpop.f32.mrf.mxu0  ;;  %v2374_v43 = vmax.f32 %v2037_v28, 0.0  ;;  %v6765_v17 = vld [vmem:[%s9596_s4 + $0x564] ss:$16 sps:$4 sm:$0xff]  }
 0x141   : > { %v1971_v34 = vpop.f32.mrf.mxu1  ;;  %4115 = vmatmul.mubr.bf16.vlgmr.msra.gmra.mxu1 %v8313_v0  ;;  %4172 = vmatpush2.bf16.msra.mxu0 %v6739_v15  ;;  %v6760_v15 = vld [vmem:[%s9596_s4 + $0x680] ss:$16 sps:$4 sm:$0xff]  }
 0x142   : > { %v2041_v36 = vadd.f32 %v2040_v21, %v1968_v30  ;;  %v2046_v38 = vpop.f32.mrf.mxu0  ;;  %4229 = vmatpush1.bf16.msra.mxu1 %v6742_v23  ;;  %4173 = vmatprep.subr.bf16.mxu0 %v6747_v48  ;;  %v2381_v40 = vmax.f32 %v2039_v32, 0.0  ;;  %v1972_v53 = vadd.f32 %v1971_v34, %v8269_v60  ;;  %v6768_v48 = vld [vmem:[%s9596_s4 + $0x664] ss:$16 sps:$4 sm:$0xff]   ;;  %v6763_v34 = vld [vmem:[%s9596_s4 + $0x560] ss:$16 sps:$4 sm:$0xff]  }
 0x143   : > { %v1973_v42 = vpop.f32.mrf.mxu1  ;;  %4230 = vmatprep.subr.bf16.mxu1 %v6750_v25 }
 0x144   : > { %v2382_v46 = vmax.f32 %v2041_v36, 0.0  ;;  %v1974_v47 = vadd.f32 %v1973_v42, %v8264_v29  ;;  %v2048_v59 = vpop.f32.mrf.mxu0  ;;  %v8347_v4 = vpack.c.bf16 %v2381_v40, %v2373_v51  ;;  %v2045_v41 = vadd.f32 %v2044_v62, %v1972_v53  ;;  %v6772_v53 = vld [vmem:[%s9596_s4 + $0x640] ss:$16 sps:$4 sm:$0xff]  }
 0x145   : > { %v1975_v18 = vpop.f32.mrf.mxu1  ;;  %4174 = vmatpush2.bf16.msra.mxu0 %v6745_v35 }
 0x146   : > { %v1976_v13 = vadd.f32 %v1975_v18, %v8269_v60  ;;  %v8339_v22 = vpack.c.bf16 %v2382_v46, %v2374_v43  ;;  %v2050_v63 = vpop.f32.mrf.mxu0  ;;  %4231 = vmatpush1.bf16.msra.mxu1 %v6748_v2  ;;  %4175 = vmatprep.subr.bf16.mxu0 %v6753_v11  ;;  %v2047_v7 = vadd.f32 %v2046_v38, %v1974_v47  ;;  %v2389_v32 = vmax.f32 %v2045_v41, 0.0  ;;  %v6766_v38 = vld [vmem:[%s9596_s4 + $0x660] ss:$16 sps:$4 sm:$0xff]   ;;  %v6771_v2 = vld [vmem:[%s9596_s4 + $0x544] ss:$16 sps:$4 sm:$0xff]  }
 0x147   : > { %v1977_v6 = vpop.f32.mrf.mxu1  ;;  %4232 = vmatprep.subr.bf16.mxu1 %v6756_v44 }
 0x148   : > { %v1978_v24 = vadd.f32 %v1977_v6, %v8264_v29  ;;  %v2049_v31 = vadd.f32 %v2048_v59, %v1976_v13  ;;  %4124 = vmatprep.mubr.bf16.mxu1 %v8339_v22  ;;  %v2054_v8 = vpop.f32.mrf.mxu0  ;;  %v2390_v54 = vmax.f32 %v2047_v7, 0.0  ;;  %v6769_v59 = vld [vmem:[%s9596_s4 + $0x540] ss:$16 sps:$4 sm:$0xff]  }
 0x149   : > { %v1981_v5 = vpop.f32.mrf.mxu1  ;;  %4125 = vmatmul.mubr.bf16.gmra.mxu1 %v8347_v4  ;;  %4176 = vmatpush2.bf16.msra.mxu0 %v6751_v57  ;;  %v6780_v57 = vld [vmem:[%s9596_s4 + $0x624] ss:$16 sps:$4 sm:$0xff]   ;;  %v6775_v6 = vld [vmem:[%s9596_s4 + $0x520] ss:$16 sps:$4 sm:$0xff]  }
 0x14a   : > { %v2051_v10 = vadd.f32 %v2050_v63, %v1978_v24  ;;  %v2056_v12 = vpop.f32.mrf.mxu0  ;;  %4233 = vmatpush1.bf16.msra.mxu1 %v6754_v1  ;;  %4177 = vmatprep.subr.bf16.mxu0 %v6759_v3  ;;  %v2397_v21 = vmax.f32 %v2049_v31, 0.0  ;;  %v1982_v62 = vadd.f32 %v1981_v5, %v8269_v60  ;;  %v6778_v7 = vld [vmem:[%s9596_s4 + $0x620] ss:$16 sps:$4 sm:$0xff]   ;;  %v6783_v24 = vld [vmem:[%s9596_s4 + $0x504] ss:$16 sps:$4 sm:$0xff]  }
 0x14b   : > { %v1983_v23 = vpop.f32.mrf.mxu1  ;;  %4234 = vmatprep.subr.bf16.mxu1 %v6762_v37  ;;  %v6781_v5 = vld [vmem:[%s9596_s4 + $0x500] ss:$16 sps:$4 sm:$0xff]  }
 0x14c   : > { %v2398_v25 = vmax.f32 %v2051_v10, 0.0  ;;  %v1984_v28 = vadd.f32 %v1983_v23, %v8264_v29  ;;  %v2058_v30 = vpop.f32.mrf.mxu0  ;;  %v8381_v11 = vpack.c.bf16 %v2397_v21, %v2389_v32  ;;  %v2055_v47 = vadd.f32 %v2054_v8, %v1982_v62  ;;  %v6786_v8 = vld [vmem:[%s9596_s4 + $0x604] ss:$16 sps:$4 sm:$0xff]   ;;  %v6792_v10 = vld [vmem:[%s9596_s4 + $0xec] ss:$16 sps:$4 sm:$0xff]  }
 0x14d   : > { %v1985_v33 = vpop.f32.mrf.mxu1  ;;  %4178 = vmatpush2.bf16.msra.mxu0 %v6757_v9  ;;  %v6784_v9 = vld [vmem:[%s9596_s4 + $0x600] ss:$16 sps:$4 sm:$0xff]   ;;  %v6795_v21 = vld [vmem:[%s9596_s4 + $0x7c4] ss:$16 sps:$4 sm:$0xff]  }
 0x14e   : > { %v1986_v35 = vadd.f32 %v1985_v33, %v8269_v60  ;;  %v8373_v36 = vpack.c.bf16 %v2398_v25, %v2390_v54  ;;  %4235 = vmatpush1.bf16.msra.mxu1 %v6760_v15  ;;  %4179 = vmatprep.subr.bf16.mxu0 %v6765_v17  ;;  %v2060_v42 = vpop.f32.mrf.mxu0  ;;  %v6774_v60 = vld [vmem:[%s9596_s4 + $0x644] ss:$16 sps:$4 sm:$0xff]   ;;  %v2057_v44 = vadd.f32 %v2056_v12, %v1984_v28  ;;  %v2405_v1 = vmax.f32 %v2055_v47, 0.0  ;;  %v6787_v17 = vld [vmem:[%s9596_s4 + $0x7e0] ss:$16 sps:$4 sm:$0xff]  }
 0x14f   : > { %v1987_v40 = vpop.f32.mrf.mxu1  ;;  %4236 = vmatprep.subr.bf16.mxu1 %v6768_v48  ;;  %v6789_v12 = vld [vmem:[%s9596_s4 + $0x7e4] ss:$16 sps:$4 sm:$0xff]   ;;  %v6793_v48 = vld [vmem:[%s9596_s4 + $0x7c0] ss:$16 sps:$4 sm:$0xff]   ;;  %v729_v33 = vsub.s32 5, %v8156_v52 }
 0x150   : > { %v1988_v43 = vadd.f32 %v1987_v40, %v8264_v29  ;;  %v2059_v46 = vadd.f32 %v2058_v30, %v1986_v35  ;;  %4134 = vmatprep.mubr.bf16.mxu1 %v8373_v36  ;;  %v6777_v29 = vld [vmem:[%s9596_s4 + $0x524] ss:$16 sps:$4 sm:$0xff]   ;;  %v2406_v13 = vmax.f32 %v2057_v44, 0.0  ;;  %v6799_v28 = vld [vmem:[%s9596_s4 + $0x7a0] ss:$16 sps:$4 sm:$0xff]  }
 0x151   : > { %4135 = vmatmul.mubr.bf16.gmra.mxu1 %v8381_v11  ;;  %4180 = vmatpush2.bf16.msra.mxu0 %v6763_v34  ;;  %v8401_v3 = vpop.f32.mrf.mxu1  ;;  %v6801_v25 = vld [vmem:[%s9596_s4 + $0x7a4] ss:$16 sps:$4 sm:$0xff]   ;;  %v6805_v62 = vld [vmem:[%s9596_s4 + $0x780] ss:$16 sps:$4 sm:$0xff]   ;;  %v8465_v40 = vrot.slane %v8182_v61, %v729_v33 }
 0x152   : > { %v2061_v51 = vadd.f32 %v2060_v42, %v1988_v43  ;;  %4237 = vmatpush1.bf16.msra.mxu1 %v6766_v38  ;;  %4181 = vmatprep.subr.bf16.mxu0 %v6771_v2  ;;  %v2413_v18 = vmax.f32 %v2059_v46, 0.0  ;;  %v6807_v32 = vld [vmem:[%s9596_s4 + $0x784] ss:$16 sps:$4 sm:$0xff]   ;;  %v725_v38 = vsub.s32 4, %v8156_v52  ;;  %v6811_v2 = vld [vmem:[%s9596_s4 + $0x760] ss:$16 sps:$4 sm:$0xff]  }
 0x153   : > { %4238 = vmatprep.subr.bf16.mxu1 %v6774_v60  ;;  %v2172_v41 = vpop.f32.mrf.mxu1  ;;  %v6813_v35 = vld [vmem:[%s9596_s4 + $0x764] ss:$16 sps:$4 sm:$0xff]   ;;  %v6817_v47 = vld [vmem:[%s9596_s4 + $0x740] ss:$16 sps:$4 sm:$0xff]  }
 0x154   : > { %v2414_v63 = vmax.f32 %v2061_v51, 0.0  ;;  %v8414_v31 = vpack.c.bf16 %v2413_v18, %v2405_v1  ;;  %v6819_v60 = vld [vmem:[%s9596_s4 + $0x744] ss:$16 sps:$4 sm:$0xff]   ;;  %v8471_v44 = vrot.slane %v8182_v61, %v725_v38 }
 0x155   : > { %4182 = vmatpush2.bf16.msra.mxu0 %v6769_v59  ;;  %v2174_v15 = vpop.f32.mrf.mxu1 }
 0x156   : > { %v8406_v37 = vpack.c.bf16 %v2414_v63, %v2406_v13  ;;  %4239 = vmatpush1.bf16.msra.mxu1 %v6772_v53  ;;  %4183 = vmatprep.subr.bf16.mxu0 %v6777_v29  ;;  %v6825_v53 = vld [vmem:[%s9596_s4 + $0x724] ss:$16 sps:$4 sm:$0xff]   ;;  %v6823_v63 = vld [vmem:[%s9596_s4 + $0x720] ss:$16 sps:$4 sm:$0xff]  }
 0x157   : > { %4240 = vmatprep.subr.bf16.mxu1 %v6780_v57  ;;  %v2176_v23 = vpop.f32.mrf.mxu1 }
 0x158   : > { %4144 = vmatprep.mubr.bf16.mxu1 %v8406_v37 }
 0x159   : > { %4145 = vmatmul.mubr.bf16.gmra.mxu1 %v8414_v31  ;;  %4184 = vmatpush2.bf16.msra.mxu0 %v6775_v6  ;;  %v8442_v54 = vpop.f32.mrf.mxu1 }
 0x15a   : > { %4241 = vmatpush1.bf16.msra.mxu1 %v6778_v7  ;;  %4185 = vmatprep.subr.bf16.mxu0 %v6783_v24 }
 0x15b   : > { %4242 = vmatprep.subr.bf16.mxu1 %v6786_v8  ;;  %v2182_v30 = vpop.f32.mrf.mxu1  ;;  %v6831_v8 = vld [vmem:[%s9596_s4 + $0x704] ss:$16 sps:$4 sm:$0xff]  }
 0x15d   : > { %4186 = vmatpush2.bf16.msra.mxu0 %v6781_v5  ;;  %v2184_v34 = vpop.f32.mrf.mxu1 }
 0x15e   : > { %4243 = vmatpush1.bf16.msra.mxu1 %v6784_v9  ;;  %4301 = vmatprep.subr.bf16.mxu0 %v6792_v10 }
 0x15f   : > { %4244 = vmatprep.subr.bf16.mxu1 %v6789_v12  ;;  %v2186_v42 = vpop.f32.mrf.mxu1 }
 0x161   : > { %v8477_v51 = vpop.f32.mrf.mxu1 }
 0x162   : > { %4245 = vmatpush2.bf16.msra.mxu1 %v6787_v17 }
 0x163   : > { %4246 = vmatprep.subr.bf16.mxu1 %v6795_v21  ;;  %v2192_v24 = vpop.f32.mrf.mxu1 }
 0x166   : > { %4247 = vmatpush2.bf16.msra.mxu1 %v6793_v48 }
 0x167   : > { %4248 = vmatprep.subr.bf16.mxu1 %v6801_v25  ;;  %v2194_v25 = vpop.f32.mrf.mxu1 }
 0x16a   : > { %4249 = vmatpush2.bf16.msra.mxu1 %v6799_v28  ;;  %v6840_v28 = vld [vmem:[%s9596_s4 + $0x2ec] ss:$16 sps:$4 sm:$0xff]  }
 0x16b   : > { %4250 = vmatprep.subr.bf16.mxu1 %v6807_v32 }
 0x16e   : > { %4251 = vmatpush2.bf16.msra.mxu1 %v6805_v62 }
 0x16f   : > { %4252 = vmatprep.subr.bf16.mxu1 %v6813_v35  ;;  %v6790_v35 = vld [vmem:[%s9596_s4 + $0xe8] ss:$16 sps:$4 sm:$0xff]  }
 0x170   : > { %v2097_v43 = vpop.f32.mrf.mxu0 }
 0x171   : > { %v2098_v29 = vadd.f32 %v2097_v43, %v8471_v44 }
 0x172   : > { %v2099_v46 = vpop.f32.mrf.mxu0  ;;  %4253 = vmatpush2.bf16.msra.mxu1 %v6811_v2 }
 0x173   : > { %v2100_v59 = vadd.f32 %v2099_v46, %v8465_v40  ;;  %4254 = vmatprep.subr.bf16.mxu1 %v6819_v60  ;;  %v2171_v5 = vadd.f32 %v8401_v3, %v2098_v29  ;;  %v6798_v60 = vld [vmem:[%s9596_s4 + $0xcc] ss:$16 sps:$4 sm:$0xff]  }
 0x174   : > { %v2101_v18 = vpop.f32.mrf.mxu0 }
 0x175   : > { %v2102_v57 = vadd.f32 %v2101_v18, %v8471_v44  ;;  %v2173_v1 = vadd.f32 %v2172_v41, %v2100_v59  ;;  %v6829_v41 = vld [vmem:[%s9596_s4 + $0x700] ss:$16 sps:$4 sm:$0xff]   ;;  %v2359_v3 = vmax.f32 %v2171_v5, 0.0  ;;  %v2196_v59 = vpop.f32.mrf.mxu1 }
 0x176   : > { %v2103_v13 = vpop.f32.mrf.mxu0  ;;  %4255 = vmatpush2.bf16.msra.mxu1 %v6817_v47 }
 0x177   : > { %v2175_v6 = vadd.f32 %v2174_v15, %v2102_v57  ;;  %v2104_v7 = vadd.f32 %v2103_v13, %v8465_v40  ;;  %4256 = vmatprep.subr.bf16.mxu1 %v6825_v53  ;;  %v2360_v15 = vmax.f32 %v2173_v1, 0.0  ;;  %v6796_v57 = vld [vmem:[%s9596_s4 + $0xc8] ss:$16 sps:$4 sm:$0xff]  }
 0x178   : > { %v2107_v9 = vpop.f32.mrf.mxu0 }
 0x179   : > { %v2177_v10 = vadd.f32 %v2176_v23, %v2104_v7  ;;  %v2367_v12 = vmax.f32 %v2175_v6, 0.0  ;;  %v2108_v23 = vadd.f32 %v2107_v9, %v8471_v44  ;;  %v2200_v6 = vpop.f32.mrf.mxu1 }
 0x17a   : > { %v2109_v17 = vpop.f32.mrf.mxu0  ;;  %4257 = vmatpush2.bf16.msra.mxu1 %v6823_v63 }
 0x17b   : > { %v2368_v21 = vmax.f32 %v2177_v10, 0.0  ;;  %v2110_v48 = vadd.f32 %v2109_v17, %v8465_v40  ;;  %4258 = vmatprep.subr.bf16.mxu1 %v6831_v8  ;;  %v8506_v38 = vpack.c.bf16 %v2367_v12, %v2359_v3  ;;  %v2181_v53 = vadd.f32 %v8442_v54, %v2108_v23  ;;  %v6802_v10 = vld [vmem:[%s9596_s4 + $0xa8] ss:$16 sps:$4 sm:$0xff]  }
 0x17c   : > { %v2111_v32 = vpop.f32.mrf.mxu0 }
 0x17d   : > { %v2112_v62 = vadd.f32 %v2111_v32, %v8471_v44  ;;  %v8501_v33 = vpack.c.bf16 %v2368_v21, %v2360_v15  ;;  %v2183_v43 = vadd.f32 %v2182_v30, %v2110_v48  ;;  %v2375_v7 = vmax.f32 %v2181_v53, 0.0  ;;  %v2202_v48 = vpop.f32.mrf.mxu1 }
 0x17e   : > { %v2113_v2 = vpop.f32.mrf.mxu0  ;;  %4259 = vmatpush2.bf16.msra.mxu1 %v6829_v41  ;;  %v6810_v41 = vld [vmem:[%s9596_s4 + $0x8c] ss:$16 sps:$4 sm:$0xff]   ;;  %v737_v53 = vsub.s32 7, %v8156_v52 }
 0x17f   : > { %v2185_v46 = vadd.f32 %v2184_v34, %v2112_v62  ;;  %v2114_v47 = vadd.f32 %v2113_v2, %v8465_v40  ;;  %4187 = vmatprep.mubr.bf16.mxu0 %v8501_v33  ;;  %4374 = vmatprep.subr.bf16.mxu1 %v6840_v28  ;;  %v6804_v34 = vld [vmem:[%s9596_s4 + $0xac] ss:$16 sps:$4 sm:$0xff]   ;;  %v2376_v63 = vmax.f32 %v2183_v43, 0.0  ;;  %v6808_v62 = vld [vmem:[%s9596_s4 + $0x88] ss:$16 sps:$4 sm:$0xff]   ;;  %v2204_v43 = vpop.f32.mrf.mxu1 }
 0x180   : > { %v2117_v29 = vpop.f32.mrf.mxu0  ;;  %4188 = vmatmul.mubr.bf16.vlgmr.msra.gmra.mxu0 %v8506_v38 }
 0x181   : > { %v2187_v18 = vadd.f32 %v2186_v42, %v2114_v47  ;;  %4302 = vmatpush1.bf16.msra.mxu0 %v6790_v35  ;;  %v2383_v13 = vmax.f32 %v2185_v46, 0.0  ;;  %v2118_v42 = vadd.f32 %v2117_v29, %v8471_v44 }
 0x182   : > { %v2119_v30 = vpop.f32.mrf.mxu0  ;;  %4303 = vmatprep.subr.bf16.mxu0 %v6798_v60 }
 0x183   : > { %v2384_v1 = vmax.f32 %v2187_v18, 0.0  ;;  %v2120_v54 = vadd.f32 %v2119_v30, %v8465_v40  ;;  %v8529_v17 = vpack.c.bf16 %v2383_v13, %v2375_v7  ;;  %v2191_v3 = vadd.f32 %v8477_v51, %v2118_v42 }
 0x184   : > { %v2121_v8 = vpop.f32.mrf.mxu0  ;;  %v733_v13 = vsub.s32 6, %v8156_v52 }
 0x185   : > { %v2122_v5 = vadd.f32 %v2121_v8, %v8471_v44  ;;  %4304 = vmatpush1.bf16.msra.mxu0 %v6796_v57  ;;  %v8524_v9 = vpack.c.bf16 %v2384_v1, %v2376_v63  ;;  %v2193_v15 = vadd.f32 %v2192_v24, %v2120_v54  ;;  %v6816_v24 = vld [vmem:[%s9596_s4 + $0x6c] ss:$16 sps:$4 sm:$0xff]   ;;  %v2391_v46 = vmax.f32 %v2191_v3, 0.0  ;;  %v6814_v57 = vld [vmem:[%s9596_s4 + $0x68] ss:$16 sps:$4 sm:$0xff]   ;;  %v2206_v1 = vpop.f32.mrf.mxu1 }
 0x186   : > { %v2123_v12 = vpop.f32.mrf.mxu0  ;;  %4305 = vmatprep.subr.bf16.mxu0 %v6804_v34  ;;  %v6822_v63 = vld [vmem:[%s9596_s4 + $0x4c] ss:$16 sps:$4 sm:$0xff]  }
 0x187   : > { %v2195_v21 = vadd.f32 %v2194_v25, %v2122_v5  ;;  %v2124_v28 = vadd.f32 %v2123_v12, %v8465_v40  ;;  %4197 = vmatprep.mubr.bf16.mxu0 %v8524_v9  ;;  %v2392_v25 = vmax.f32 %v2193_v15, 0.0  ;;  %v8563_v5 = vrot.slane %v8182_v61, %v737_v53  ;;  %v6820_v15 = vld [vmem:[%s9596_s4 + $0x48] ss:$16 sps:$4 sm:$0xff]  }
 0x188   : > { %v2127_v23 = vpop.f32.mrf.mxu0  ;;  %4198 = vmatmul.mubr.bf16.gmra.mxu0 %v8529_v17  ;;  %v8566_v12 = vrot.slane %v8182_v61, %v733_v13 }
 0x189   : > { %v2197_v32 = vadd.f32 %v2196_v59, %v2124_v28  ;;  %4306 = vmatpush1.bf16.msra.mxu0 %v6802_v10  ;;  %v2399_v35 = vmax.f32 %v2195_v21, 0.0  ;;  %v2128_v47 = vadd.f32 %v2127_v23, %v8471_v44 }
 0x18a   : > { %v2129_v2 = vpop.f32.mrf.mxu0  ;;  %4307 = vmatprep.subr.bf16.mxu0 %v6810_v41 }
 0x18b   : > { %v2400_v60 = vmax.f32 %v2197_v32, 0.0  ;;  %v2130_v51 = vadd.f32 %v2129_v2, %v8465_v40  ;;  %v8554_v34 = vpack.c.bf16 %v2399_v35, %v2391_v46  ;;  %v2201_v42 = vadd.f32 %v2200_v6, %v2128_v47  ;;  %v6828_v6 = vld [vmem:[%s9596_s4 + $0x2c] ss:$16 sps:$4 sm:$0xff]  }
 0x18c   : > { %v2131_v59 = vpop.f32.mrf.mxu0 }
 0x18d   : > { %v2132_v29 = vadd.f32 %v2131_v59, %v8471_v44  ;;  %4308 = vmatpush1.bf16.msra.mxu0 %v6808_v62  ;;  %v8548_v18 = vpack.c.bf16 %v2400_v60, %v2392_v25  ;;  %v2203_v54 = vadd.f32 %v2202_v48, %v2130_v51  ;;  %v2407_v23 = vmax.f32 %v2201_v42, 0.0  ;;  %v6834_v51 = vld [vmem:[%s9596_s4 + $0xc] ss:$16 sps:$4 sm:$0xff]  }
 0x18e   : > { %v2133_v30 = vpop.f32.mrf.mxu0  ;;  %4309 = vmatprep.subr.bf16.mxu0 %v6816_v24  ;;  %v6826_v24 = vld [vmem:[%s9596_s4 + $0x28] ss:$16 sps:$4 sm:$0xff]  }
 0x18f   : > { %v2205_v44 = vadd.f32 %v2204_v43, %v2132_v29  ;;  %v2134_v7 = vadd.f32 %v2133_v30, %v8465_v40  ;;  %4207 = vmatprep.mubr.bf16.mxu0 %v8548_v18  ;;  %v2408_v48 = vmax.f32 %v2203_v54, 0.0  ;;  %v6832_v30 = vld [vmem:[%s9596_s4 + $0x8] ss:$16 sps:$4 sm:$0xff]  }
 0x190   : > { %v2316_v8 = vpop.f32.mrf.mxu0  ;;  %4208 = vmatmul.mubr.bf16.gmra.mxu0 %v8554_v34 }
 0x191   : > { %v2207_v10 = vadd.f32 %v2206_v1, %v2134_v7  ;;  %v2243_v41 = vpop.f32.mrf.mxu1  ;;  %4310 = vmatpush1.bf16.msra.mxu0 %v6814_v57  ;;  %v2415_v40 = vmax.f32 %v2205_v44, 0.0  ;;  %v6837_v44 = vld [vmem:[%s9596_s4 + $0x1ec] ss:$16 sps:$4 sm:$0xff]  }
 0x192   : > { %v2318_v21 = vpop.f32.mrf.mxu0  ;;  %4311 = vmatprep.subr.bf16.mxu0 %v6822_v63  ;;  %v2244_v62 = vadd.f32 %v2243_v41, %v8566_v12 }
 0x193   : > { %v2416_v28 = vmax.f32 %v2207_v10, 0.0  ;;  %v2245_v3 = vpop.f32.mrf.mxu1  ;;  %v8582_v43 = vpack.c.bf16 %v2415_v40, %v2407_v23  ;;  %v6838_v23 = vld [vmem:[%s9596_s4 + $0x2e8] ss:$16 sps:$4 sm:$0xff]  }
 0x194   : > { %v2246_v61 = vadd.f32 %v2245_v3, %v8563_v5  ;;  %v2320_v32 = vpop.f32.mrf.mxu0  ;;  %v2317_v57 = vadd.f32 %v2316_v8, %v2244_v62 }
 0x195   : > { %v2247_v35 = vpop.f32.mrf.mxu1  ;;  %4312 = vmatpush1.bf16.msra.mxu0 %v6820_v15  ;;  %v8576_v2 = vpack.c.bf16 %v2416_v28, %v2408_v48 }
 0x196   : > { %v2248_v25 = vadd.f32 %v2247_v35, %v8566_v12  ;;  %v2322_v60 = vpop.f32.mrf.mxu0  ;;  %4313 = vmatprep.subr.bf16.mxu0 %v6828_v6  ;;  %v2319_v47 = vadd.f32 %v2318_v21, %v2246_v61  ;;  %v2361_v15 = vmax.f32 %v2317_v57, 0.0  ;;  %v6835_v6 = vld [vmem:[%s9596_s4 + $0x1e8] ss:$16 sps:$4 sm:$0xff]  }
 0x197   : > { %v2249_v46 = vpop.f32.mrf.mxu1  ;;  %4217 = vmatprep.mubr.bf16.mxu0 %v8576_v2 }
 0x198   : > { %v2321_v59 = vadd.f32 %v2320_v32, %v2248_v25  ;;  %v2250_v53 = vadd.f32 %v2249_v46, %v8563_v5  ;;  %4218 = vmatmul.mubr.bf16.gmra.mxu0 %v8582_v43  ;;  %v2326_v29 = vpop.f32.mrf.mxu0  ;;  %v2362_v8 = vmax.f32 %v2319_v47, 0.0  ;;  %v6843_v32 = vld [vmem:[%s9596_s4 + $0x1cc] ss:$16 sps:$4 sm:$0xff]  }
 0x199   : > { %v2253_v13 = vpop.f32.mrf.mxu1  ;;  %4314 = vmatpush1.bf16.msra.mxu0 %v6826_v24  ;;  %4333 = vmatprep.mubr.bf16.mxu0 %v8201_v26  ;;  %v6846_v24 = vld [vmem:[%s9596_s4 + $0x2cc] ss:$16 sps:$4 sm:$0xff]  }
 0x19a   : > { %v2323_v63 = vadd.f32 %v2322_v60, %v2250_v53  ;;  %v2254_v1 = vadd.f32 %v2253_v13, %v8566_v12  ;;  %4315 = vmatprep.subr.bf16.mxu0 %v6834_v51  ;;  %v2328_v54 = vpop.f32.mrf.mxu0  ;;  %v2369_v7 = vmax.f32 %v2321_v59, 0.0  ;;  %v6841_v59 = vld [vmem:[%s9596_s4 + $0x1c8] ss:$16 sps:$4 sm:$0xff]  }
 0x19b   : > { %v2255_v42 = vpop.f32.mrf.mxu1 }
 0x19c   : > { %v2370_v10 = vmax.f32 %v2323_v63, 0.0  ;;  %v2256_v41 = vadd.f32 %v2255_v42, %v8563_v5  ;;  %v2330_v26 = vpop.f32.mrf.mxu0  ;;  %v2327_v40 = vadd.f32 %v2326_v29, %v2254_v1  ;;  %v8611_v62 = vpack.c.bf16 %v2369_v7, %v2361_v15  ;;  %v6849_v1 = vld [vmem:[%s9596_s4 + $0x1ac] ss:$16 sps:$4 sm:$0xff]   ;;  %v6847_v15 = vld [vmem:[%s9596_s4 + $0x1a8] ss:$16 sps:$4 sm:$0xff]  }
 0x19d   : > { %v2257_v21 = vpop.f32.mrf.mxu1  ;;  %4316 = vmatpush1.bf16.msra.mxu0 %v6832_v30  ;;  %v6844_v30 = vld [vmem:[%s9596_s4 + $0x2c8] ss:$16 sps:$4 sm:$0xff]  }
 0x19e   : > { %v2258_v48 = vadd.f32 %v2257_v21, %v8566_v12  ;;  %v2329_v28 = vadd.f32 %v2328_v54, %v2256_v41  ;;  %v8603_v3 = vpack.c.bf16 %v2370_v10, %v2362_v8  ;;  %4317 = vmatprep.subr.bf16.mxu0 %v6837_v44  ;;  %v2332_v61 = vpop.f32.mrf.mxu0  ;;  %v2377_v46 = vmax.f32 %v2327_v40, 0.0  ;;  %v6852_v44 = vld [vmem:[%s9596_s4 + $0x2ac] ss:$16 sps:$4 sm:$0xff]  }
 0x19f   : > { %v2259_v35 = vpop.f32.mrf.mxu1 }
 0x1a0   : > { %v2260_v25 = vadd.f32 %v2259_v35, %v8563_v5  ;;  %v2331_v60 = vadd.f32 %v2330_v26, %v2258_v48  ;;  %4260 = vmatprep.mubr.bf16.mxu1 %v8603_v3  ;;  %v2336_v51 = vpop.f32.mrf.mxu0  ;;  %v2378_v53 = vmax.f32 %v2329_v28, 0.0  ;;  %v6850_v48 = vld [vmem:[%s9596_s4 + $0x2a8] ss:$16 sps:$4 sm:$0xff]  }
 0x1a1   : > { %v2263_v47 = vpop.f32.mrf.mxu1  ;;  %4261 = vmatmul.mubr.bf16.vlgmr.msra.gmra.mxu1 %v8611_v62  ;;  %4318 = vmatpush2.bf16.msra.mxu0 %v6835_v6 }
 0x1a2   : > { %v2385_v29 = vmax.f32 %v2331_v60, 0.0  ;;  %v2264_v57 = vadd.f32 %v2263_v47, %v8566_v12  ;;  %v2333_v13 = vadd.f32 %v2332_v61, %v2260_v25  ;;  %4375 = vmatpush1.bf16.msra.mxu1 %v6838_v23  ;;  %4319 = vmatprep.subr.bf16.mxu0 %v6843_v32  ;;  %v2338_v63 = vpop.f32.mrf.mxu0  ;;  %v6855_v23 = vld [vmem:[%s9596_s4 + $0x18c] ss:$16 sps:$4 sm:$0xff]  }
 0x1a3   : > { %v2265_v54 = vpop.f32.mrf.mxu1  ;;  %4376 = vmatprep.subr.bf16.mxu1 %v6846_v24  ;;  %v6858_v32 = vld [vmem:[%s9596_s4 + $0x28c] ss:$16 sps:$4 sm:$0xff]  }
 0x1a4   : > { %v2386_v7 = vmax.f32 %v2333_v13, 0.0  ;;  %v2266_v42 = vadd.f32 %v2265_v54, %v8563_v5  ;;  %v2340_v8 = vpop.f32.mrf.mxu0  ;;  %v8633_v10 = vpack.c.bf16 %v2385_v29, %v2377_v46  ;;  %v2337_v41 = vadd.f32 %v2336_v51, %v2264_v57  ;;  %v6853_v46 = vld [vmem:[%s9596_s4 + $0x188] ss:$16 sps:$4 sm:$0xff]  }
 0x1a5   : > { %v2267_v26 = vpop.f32.mrf.mxu1  ;;  %4320 = vmatpush2.bf16.msra.mxu0 %v6841_v59  ;;  %v6856_v57 = vld [vmem:[%s9596_s4 + $0x288] ss:$16 sps:$4 sm:$0xff]  }
 0x1a6   : > { %v2268_v40 = vadd.f32 %v2267_v26, %v8566_v12  ;;  %v2339_v21 = vadd.f32 %v2338_v63, %v2266_v42  ;;  %4377 = vmatpush1.bf16.msra.mxu1 %v6844_v30  ;;  %v8639_v6 = vpack.c.bf16 %v2386_v7, %v2378_v53  ;;  %4321 = vmatprep.subr.bf16.mxu0 %v6849_v1  ;;  %v2342_v28 = vpop.f32.mrf.mxu0  ;;  %v2393_v60 = vmax.f32 %v2337_v41, 0.0  ;;  %v6861_v30 = vld [vmem:[%s9596_s4 + $0x16c] ss:$16 sps:$4 sm:$0xff]   ;;  %v6859_v26 = vld [vmem:[%s9596_s4 + $0x168] ss:$16 sps:$4 sm:$0xff]  }
 0x1a7   : > { %v2269_v61 = vpop.f32.mrf.mxu1  ;;  %4378 = vmatprep.subr.bf16.mxu1 %v6852_v44  ;;  %v6864_v1 = vld [vmem:[%s9596_s4 + $0x26c] ss:$16 sps:$4 sm:$0xff]  }
 0x1a8   : > { %v2270_v35 = vadd.f32 %v2269_v61, %v8563_v5  ;;  %v2341_v24 = vadd.f32 %v2340_v8, %v2268_v40  ;;  %4270 = vmatprep.mubr.bf16.mxu1 %v8639_v6  ;;  %v2346_v25 = vpop.f32.mrf.mxu0  ;;  %v2394_v47 = vmax.f32 %v2339_v21, 0.0 }
 0x1a9   : > { %v2273_v51 = vpop.f32.mrf.mxu1  ;;  %4271 = vmatmul.mubr.bf16.gmra.mxu1 %v8633_v10  ;;  %4322 = vmatpush2.bf16.msra.mxu0 %v6847_v15 }
 0x1aa   : > { %v2401_v59 = vmax.f32 %v2341_v24, 0.0  ;;  %v2274_v53 = vadd.f32 %v2273_v51, %v8566_v12  ;;  %v2343_v29 = vadd.f32 %v2342_v28, %v2270_v35  ;;  %4379 = vmatpush1.bf16.msra.mxu1 %v6850_v48  ;;  %4323 = vmatprep.subr.bf16.mxu0 %v6855_v23  ;;  %v2348_v13 = vpop.f32.mrf.mxu0  ;;  %v6862_v48 = vld [vmem:[%s9596_s4 + $0x268] ss:$16 sps:$4 sm:$0xff]   ;;  %v6867_v28 = vld [vmem:[%s9596_s4 + $0x14c] ss:$16 sps:$4 sm:$0xff]  }
 0x1ab   : > { %v2275_v63 = vpop.f32.mrf.mxu1  ;;  %4380 = vmatprep.subr.bf16.mxu1 %v6858_v32  ;;  %v6870_v32 = vld [vmem:[%s9596_s4 + $0x24c] ss:$16 sps:$4 sm:$0xff]  }
 0x1ac   : > { %v2402_v54 = vmax.f32 %v2343_v29, 0.0  ;;  %v2276_v44 = vadd.f32 %v2275_v63, %v8563_v5  ;;  %v2350_v7 = vpop.f32.mrf.mxu0  ;;  %v8667_v42 = vpack.c.bf16 %v2401_v59, %v2393_v60  ;;  %v2347_v8 = vadd.f32 %v2346_v25, %v2274_v53  ;;  %v6865_v25 = vld [vmem:[%s9596_s4 + $0x148] ss:$16 sps:$4 sm:$0xff]   ;;  %v6876_v59 = vld [vmem:[%s9596_s4 + $0x22c] ss:$16 sps:$4 sm:$0xff]  }
 0x1ad   : > { %v2277_v41 = vpop.f32.mrf.mxu1  ;;  %4324 = vmatpush2.bf16.msra.mxu0 %v6853_v46  ;;  %v6879_v63 = vld [vmem:[%s9596_s4 + $0x10c] ss:$16 sps:$4 sm:$0xff]  }
 0x1ae   : > { %v8672_v15 = vpack.c.bf16 %v2402_v54, %v2394_v47  ;;  %v2278_v40 = vadd.f32 %v2277_v41, %v8566_v12  ;;  %v2349_v21 = vadd.f32 %v2348_v13, %v2276_v44  ;;  %4381 = vmatpush1.bf16.msra.mxu1 %v6856_v57  ;;  %4325 = vmatprep.subr.bf16.mxu0 %v6861_v30  ;;  %v2352_v61 = vpop.f32.mrf.mxu0  ;;  %v2409_v24 = vmax.f32 %v2347_v8, 0.0  ;;  %v6873_v47 = vld [vmem:[%s9596_s4 + $0x12c] ss:$16 sps:$4 sm:$0xff]   ;;  %v6871_v57 = vld [vmem:[%s9596_s4 + $0x128] ss:$16 sps:$4 sm:$0xff]  }
 0x1af   : > { %v2279_v23 = vpop.f32.mrf.mxu1  ;;  %4382 = vmatprep.subr.bf16.mxu1 %v6864_v1  ;;  %v6874_v30 = vld [vmem:[%s9596_s4 + $0x228] ss:$16 sps:$4 sm:$0xff]   ;;  %v6882_v1 = vld [vmem:[%s9596_s4 + $0x20c] ss:$16 sps:$4 sm:$0xff]  }
 0x1b0   : > { %v2280_v12 = vadd.f32 %v2279_v23, %v8563_v5  ;;  %v2351_v35 = vadd.f32 %v2350_v7, %v2278_v40  ;;  %4280 = vmatprep.mubr.bf16.mxu1 %v8672_v15  ;;  %v2410_v60 = vmax.f32 %v2349_v21, 0.0  ;;  %v6868_v5 = vld [vmem:[%s9596_s4 + $0x248] ss:$16 sps:$4 sm:$0xff]   ;;  %v6888_v7 = vld [vmem:[%s9596_s4 + $0x4ec] ss:$16 sps:$4 sm:$0xff]  }
 0x1b1   : > { %4281 = vmatmul.mubr.bf16.gmra.mxu1 %v8667_v42  ;;  %4326 = vmatpush2.bf16.msra.mxu0 %v6859_v26  ;;  %v6877_v54 = vld [vmem:[%s9596_s4 + $0x108] ss:$16 sps:$4 sm:$0xff]   ;;  %v6885_v8 = vld [vmem:[%s9596_s4 + $0x3ec] ss:$16 sps:$4 sm:$0xff]  }
 0x1b2   : > { %v2417_v51 = vmax.f32 %v2351_v35, 0.0  ;;  %v2353_v46 = vadd.f32 %v2352_v61, %v2280_v12  ;;  %4383 = vmatpush1.bf16.msra.mxu1 %v6862_v48  ;;  %4327 = vmatprep.subr.bf16.mxu0 %v6867_v28  ;;  %v6880_v44 = vld [vmem:[%s9596_s4 + $0x208] ss:$16 sps:$4 sm:$0xff]   ;;  %v6894_v26 = vld [vmem:[%s9596_s4 + $0x4cc] ss:$16 sps:$4 sm:$0xff]  }
 0x1b3   : > { %4384 = vmatprep.subr.bf16.mxu1 %v6870_v32  ;;  %v6886_v41 = vld [vmem:[%s9596_s4 + $0x4e8] ss:$16 sps:$4 sm:$0xff]   ;;  %v6891_v40 = vld [vmem:[%s9596_s4 + $0x3cc] ss:$16 sps:$4 sm:$0xff]  }
 0x1b4   : > { %v2418_v53 = vmax.f32 %v2353_v46, 0.0  ;;  %v8699_v29 = vpack.c.bf16 %v2417_v51, %v2409_v24  ;;  %v6892_v21 = vld [vmem:[%s9596_s4 + $0x4c8] ss:$16 sps:$4 sm:$0xff]   ;;  %v6900_v28 = vld [vmem:[%s9596_s4 + $0x4ac] ss:$16 sps:$4 sm:$0xff]  }
 0x1b5   : > { %4328 = vmatpush2.bf16.msra.mxu0 %v6865_v25  ;;  %v6889_v48 = vld [vmem:[%s9596_s4 + $0x3c8] ss:$16 sps:$4 sm:$0xff]   ;;  %v6906_v61 = vld [vmem:[%s9596_s4 + $0x48c] ss:$16 sps:$4 sm:$0xff]  }
 0x1b6   : > { %v8704_v13 = vpack.c.bf16 %v2418_v53, %v2410_v60  ;;  %4385 = vmatpush1.bf16.msra.mxu1 %v6868_v5  ;;  %4329 = vmatprep.subr.bf16.mxu0 %v6873_v47  ;;  %v6895_v23 = vld [vmem:[%s9596_s4 + $0x3a8] ss:$16 sps:$4 sm:$0xff]   ;;  %v6903_v32 = vld [vmem:[%s9596_s4 + $0x38c] ss:$16 sps:$4 sm:$0xff]  }
 0x1b7   : > { %4386 = vmatprep.subr.bf16.mxu1 %v6876_v59  ;;  %v6904_v12 = vld [vmem:[%s9596_s4 + $0x488] ss:$16 sps:$4 sm:$0xff]   ;;  %v6912_v24 = vld [vmem:[%s9596_s4 + $0x46c] ss:$16 sps:$4 sm:$0xff]  }
 0x1b8   : > { %4290 = vmatprep.mubr.bf16.mxu1 %v8704_v13  ;;  %v6901_v35 = vld [vmem:[%s9596_s4 + $0x388] ss:$16 sps:$4 sm:$0xff]   ;;  %v6918_v60 = vld [vmem:[%s9596_s4 + $0x44c] ss:$16 sps:$4 sm:$0xff]  }
 0x1b9   : > { %4291 = vmatmul.mubr.bf16.gmra.mxu1 %v8699_v29  ;;  %4330 = vmatpush2.bf16.msra.mxu0 %v6871_v57  ;;  %v6907_v25 = vld [vmem:[%s9596_s4 + $0x368] ss:$16 sps:$4 sm:$0xff]   ;;  %v6915_v51 = vld [vmem:[%s9596_s4 + $0x34c] ss:$16 sps:$4 sm:$0xff]  }
 0x1ba   : > { %4387 = vmatpush1.bf16.msra.mxu1 %v6874_v30  ;;  %4406 = vmatprep.mubr.bf16.mxu1 %v8305_v19  ;;  %v6883_v19 = vld [vmem:[%s9596_s4 + $0x3e8] ss:$16 sps:$4 sm:$0xff]   ;;  %v6924_v47 = vld [vmem:[%s9596_s4 + $0x42c] ss:$16 sps:$4 sm:$0xff]  }
 0x1bb   : > { %4331 = vmatprep.subr.bf16.mxu0 %v6879_v63  ;;  %4388 = vmatprep.subr.bf16.mxu1 %v6882_v1  ;;  %v6916_v46 = vld [vmem:[%s9596_s4 + $0x448] ss:$16 sps:$4 sm:$0xff]   ;;  %v6930_v53 = vld [vmem:[%s9596_s4 + $0x40c] ss:$16 sps:$4 sm:$0xff]  }
 0x1bc   : > { %v6913_v5 = vld [vmem:[%s9596_s4 + $0x348] ss:$16 sps:$4 sm:$0xff]   ;;  %v6927_v57 = vld [vmem:[%s9596_s4 + $0x30c] ss:$16 sps:$4 sm:$0xff]  }
 0x1bd   : > { %4332 = vmatpush2.bf16.msra.mxu0 %v6877_v54  ;;  %v6919_v59 = vld [vmem:[%s9596_s4 + $0x328] ss:$16 sps:$4 sm:$0xff]   ;;  %v6933_v1 = vld [vmem:[%s9596_s4 + $0x5ec] ss:$16 sps:$4 sm:$0xff]  }
 0x1be   : > { %4389 = vmatpush1.bf16.msra.mxu1 %v6880_v44  ;;  %4447 = vmatprep.subr.bf16.mxu0 %v6888_v7  ;;  %v6928_v30 = vld [vmem:[%s9596_s4 + $0x408] ss:$16 sps:$4 sm:$0xff]   ;;  %v6939_v44 = vld [vmem:[%s9596_s4 + $0x5cc] ss:$16 sps:$4 sm:$0xff]  }
 0x1bf   : > { %4390 = vmatprep.subr.bf16.mxu1 %v6885_v8  ;;  %v6925_v63 = vld [vmem:[%s9596_s4 + $0x308] ss:$16 sps:$4 sm:$0xff]   ;;  %v6942_v7 = vld [vmem:[%s9596_s4 + $0x6cc] ss:$16 sps:$4 sm:$0xff]  }
 0x1c0   : > { %4334 = vmatmul.mubr.bf16.vlgmr.msra.gmra.mxu0 %v8206_v27  ;;  %v6897_v27 = vld [vmem:[%s9596_s4 + $0x3ac] ss:$16 sps:$4 sm:$0xff]   ;;  %v6934_v54 = vld [vmem:[%s9596_s4 + $0x6e8] ss:$16 sps:$4 sm:$0xff]  }
 0x1c1   : > { %4343 = vmatprep.mubr.bf16.mxu0 %v8224_v50  ;;  %4448 = vmatpush1.bf16.msra.mxu0 %v6886_v41  ;;  %v6898_v50 = vld [vmem:[%s9596_s4 + $0x4a8] ss:$16 sps:$4 sm:$0xff]  }
 0x1c2   : > { %4391 = vmatpush2.bf16.msra.mxu1 %v6883_v19  ;;  %4449 = vmatprep.subr.bf16.mxu0 %v6894_v26  ;;  %v6937_v8 = vld [vmem:[%s9596_s4 + $0x5c8] ss:$16 sps:$4 sm:$0xff]   ;;  %v6945_v19 = vld [vmem:[%s9596_s4 + $0x5ac] ss:$16 sps:$4 sm:$0xff]  }
 0x1c3   : > { %4392 = vmatprep.subr.bf16.mxu1 %v6891_v40  ;;  %v6940_v41 = vld [vmem:[%s9596_s4 + $0x6c8] ss:$16 sps:$4 sm:$0xff]   ;;  %v6951_v40 = vld [vmem:[%s9596_s4 + $0x58c] ss:$16 sps:$4 sm:$0xff]  }
 0x1c4   : > { %v6946_v26 = vld [vmem:[%s9596_s4 + $0x6a8] ss:$16 sps:$4 sm:$0xff]  }
 0x1c5   : > { %4450 = vmatpush1.bf16.msra.mxu0 %v6892_v21  ;;  %v6954_v21 = vld [vmem:[%s9596_s4 + $0x68c] ss:$16 sps:$4 sm:$0xff]  }
 0x1c6   : > { %4393 = vmatpush2.bf16.msra.mxu1 %v6889_v48  ;;  %4451 = vmatprep.subr.bf16.mxu0 %v6900_v28  ;;  %v6949_v48 = vld [vmem:[%s9596_s4 + $0x588] ss:$16 sps:$4 sm:$0xff]  }
 0x1c7   : > { %4394 = vmatprep.subr.bf16.mxu1 %v6897_v27  ;;  %v6952_v28 = vld [vmem:[%s9596_s4 + $0x688] ss:$16 sps:$4 sm:$0xff]   ;;  %v6957_v27 = vld [vmem:[%s9596_s4 + $0x56c] ss:$16 sps:$4 sm:$0xff]  }
 0x1c8   : > { %4344 = vmatmul.mubr.bf16.gmra.mxu0 %v8229_v55  ;;  %v6909_v55 = vld [vmem:[%s9596_s4 + $0x36c] ss:$16 sps:$4 sm:$0xff]  }
 0x1c9   : > { %4353 = vmatprep.mubr.bf16.mxu0 %v8247_v39  ;;  %4452 = vmatpush1.bf16.msra.mxu0 %v6898_v50  ;;  %v6910_v39 = vld [vmem:[%s9596_s4 + $0x468] ss:$16 sps:$4 sm:$0xff]  }
 0x1ca   : > { %4395 = vmatpush2.bf16.msra.mxu1 %v6895_v23  ;;  %4453 = vmatprep.subr.bf16.mxu0 %v6906_v61  ;;  %v6958_v50 = vld [vmem:[%s9596_s4 + $0x668] ss:$16 sps:$4 sm:$0xff]   ;;  %v6963_v23 = vld [vmem:[%s9596_s4 + $0x54c] ss:$16 sps:$4 sm:$0xff]  }
 0x1cb   : > { %4396 = vmatprep.subr.bf16.mxu1 %v6903_v32  ;;  %v6966_v61 = vld [vmem:[%s9596_s4 + $0x64c] ss:$16 sps:$4 sm:$0xff]   ;;  %v6961_v32 = vld [vmem:[%s9596_s4 + $0x548] ss:$16 sps:$4 sm:$0xff]  }
 0x1cd   : > { %4454 = vmatpush1.bf16.msra.mxu0 %v6904_v12  ;;  %v6964_v12 = vld [vmem:[%s9596_s4 + $0x648] ss:$16 sps:$4 sm:$0xff]  }
 0x1ce   : > { %4397 = vmatpush2.bf16.msra.mxu1 %v6901_v35  ;;  %4455 = vmatprep.subr.bf16.mxu0 %v6912_v24  ;;  %v6969_v35 = vld [vmem:[%s9596_s4 + $0x52c] ss:$16 sps:$4 sm:$0xff]   ;;  %v6970_v24 = vld [vmem:[%s9596_s4 + $0x628] ss:$16 sps:$4 sm:$0xff]  }
 0x1cf   : > { %4398 = vmatprep.subr.bf16.mxu1 %v6909_v55  ;;  %v6975_v55 = vld [vmem:[%s9596_s4 + $0x50c] ss:$16 sps:$4 sm:$0xff]  }
 0x1d0   : > { %4354 = vmatmul.mubr.bf16.gmra.mxu0 %v8253_v20  ;;  %v6921_v20 = vld [vmem:[%s9596_s4 + $0x32c] ss:$16 sps:$4 sm:$0xff]  }
 0x1d1   : > { %4363 = vmatprep.mubr.bf16.mxu0 %v8279_v45  ;;  %4456 = vmatpush1.bf16.msra.mxu0 %v6910_v39  ;;  %v6922_v45 = vld [vmem:[%s9596_s4 + $0x428] ss:$16 sps:$4 sm:$0xff]   ;;  %v6978_v39 = vld [vmem:[%s9596_s4 + $0x60c] ss:$16 sps:$4 sm:$0xff]  }
 0x1d2   : > { %4399 = vmatpush2.bf16.msra.mxu1 %v6907_v25  ;;  %4457 = vmatprep.subr.bf16.mxu0 %v6918_v60  ;;  %v6973_v25 = vld [vmem:[%s9596_s4 + $0x508] ss:$16 sps:$4 sm:$0xff]  }
 0x1d3   : > { %4400 = vmatprep.subr.bf16.mxu1 %v6915_v51  ;;  %v6976_v60 = vld [vmem:[%s9596_s4 + $0x608] ss:$16 sps:$4 sm:$0xff]   ;;  %v7005_v51 = vld [vmem:[%s9598_s6 + $0x74] ss:$8 sps:$4 sm:$0xff]  }
 0x1d5   : > { %4458 = vmatpush1.bf16.msra.mxu0 %v6916_v46  ;;  %v7003_v46 = vld [vmem:[%s9598_s6 + $0x70] ss:$8 sps:$4 sm:$0xff]  }
 0x1d6   : > { %4401 = vmatpush2.bf16.msra.mxu1 %v6913_v5  ;;  %4459 = vmatprep.subr.bf16.mxu0 %v6924_v47  ;;  %v7008_v5 = vld [vmem:[%s9598_s6 + $0x64] ss:$8 sps:$4 sm:$0xff]  }
 0x1d7   : > { %4402 = vmatprep.subr.bf16.mxu1 %v6921_v20  ;;  %v6984_v47 = vld [vmem:[%s9596_s4 + $0x7cc] ss:$16 sps:$4 sm:$0xff]   ;;  %v7006_v20 = vld [vmem:[%s9598_s6 + $0x60] ss:$8 sps:$4 sm:$0xff]  }
 0x1d8   : > { %4364 = vmatmul.mubr.bf16.gmra.mxu0 %v8285_v49  ;;  %v6936_v49 = vld [vmem:[%s9596_s4 + $0x6ec] ss:$16 sps:$4 sm:$0xff]  }
 0x1d9   : > { %4460 = vmatpush1.bf16.msra.mxu0 %v6922_v45  ;;  %4479 = vmatprep.mubr.bf16.mxu0 %v8501_v33  ;;  %v6931_v33 = vld [vmem:[%s9596_s4 + $0x5e8] ss:$16 sps:$4 sm:$0xff]  }
 0x1da   : > { %4403 = vmatpush2.bf16.msra.mxu1 %v6919_v59  ;;  %4461 = vmatprep.subr.bf16.mxu0 %v6930_v53  ;;  %v6982_v59 = vld [vmem:[%s9596_s4 + $0x7c8] ss:$16 sps:$4 sm:$0xff]   ;;  %v7011_v53 = vld [vmem:[%s9598_s6 + $0x54] ss:$8 sps:$4 sm:$0xff]  }
 0x1db   : > { %4404 = vmatprep.subr.bf16.mxu1 %v6927_v57 }
 0x1dd   : > { %4462 = vmatpush1.bf16.msra.mxu0 %v6928_v30  ;;  %v6985_v30 = vld [vmem:[%s9596_s4 + $0x7a8] ss:$16 sps:$4 sm:$0xff]  }
 0x1de   : > { %4405 = vmatpush2.bf16.msra.mxu1 %v6925_v63  ;;  %4463 = vmatprep.subr.bf16.mxu0 %v6933_v1  ;;  %v7014_v63 = vld [vmem:[%s9598_s6 + $0x44] ss:$8 sps:$4 sm:$0xff]  }
 0x1df   : > { %4520 = vmatprep.subr.bf16.mxu1 %v6936_v49  ;;  %v6990_v1 = vld [vmem:[%s9596_s4 + $0x78c] ss:$16 sps:$4 sm:$0xff]   ;;  %v7012_v49 = vld [vmem:[%s9598_s6 + $0x40] ss:$8 sps:$4 sm:$0xff]  }
 0x1e0   : > { %v8955_v45 = vpop.f32.mrf.mxu0 }
 0x1e1   : > { %4407 = vmatmul.mubr.bf16.vlgmr.msra.gmra.mxu1 %v8313_v0  ;;  %4464 = vmatpush2.bf16.msra.mxu0 %v6931_v33  ;;  %v6948_v0 = vld [vmem:[%s9596_s4 + $0x6ac] ss:$16 sps:$4 sm:$0xff]  }
 0x1e2   : > { %4416 = vmatprep.mubr.bf16.mxu1 %v8339_v22  ;;  %4521 = vmatpush1.bf16.msra.mxu1 %v6934_v54  ;;  %v6943_v22 = vld [vmem:[%s9596_s4 + $0x5a8] ss:$16 sps:$4 sm:$0xff]   ;;  %v8969_v57 = vpop.f32.mrf.mxu0 }
 0x1e3   : > { %4465 = vmatprep.subr.bf16.mxu0 %v6939_v44  ;;  %4522 = vmatprep.subr.bf16.mxu1 %v6942_v7  ;;  %v6988_v54 = vld [vmem:[%s9596_s4 + $0x788] ss:$16 sps:$4 sm:$0xff]   ;;  %v7017_v44 = vld [vmem:[%s9598_s6 + $0x34] ss:$8 sps:$4 sm:$0xff]  }
 0x1e4   : > { %v8985_v33 = vpop.f32.mrf.mxu0 }
 0x1e5   : > { %4466 = vmatpush2.bf16.msra.mxu0 %v6937_v8  ;;  %v6991_v8 = vld [vmem:[%s9596_s4 + $0x768] ss:$16 sps:$4 sm:$0xff]  }
 0x1e6   : > { %4523 = vmatpush1.bf16.msra.mxu1 %v6940_v41  ;;  %4467 = vmatprep.subr.bf16.mxu0 %v6945_v19  ;;  %v8999_v7 = vpop.f32.mrf.mxu0  ;;  %v7020_v41 = vld [vmem:[%s9598_s6 + $0x24] ss:$8 sps:$4 sm:$0xff]  }
 0x1e7   : > { %4524 = vmatprep.subr.bf16.mxu1 %v6948_v0  ;;  %v6996_v19 = vld [vmem:[%s9596_s4 + $0x74c] ss:$16 sps:$4 sm:$0xff]   ;;  %v7018_v0 = vld [vmem:[%s9598_s6 + $0x20] ss:$8 sps:$4 sm:$0xff]  }
 0x1e9   : > { %4417 = vmatmul.mubr.bf16.gmra.mxu1 %v8347_v4  ;;  %4468 = vmatpush2.bf16.msra.mxu0 %v6943_v22  ;;  %v6960_v4 = vld [vmem:[%s9596_s4 + $0x66c] ss:$16 sps:$4 sm:$0xff]   ;;  %v9015_v22 = vpop.f32.mrf.mxu0 }
 0x1ea   : > { %4426 = vmatprep.mubr.bf16.mxu1 %v8373_v36  ;;  %4525 = vmatpush1.bf16.msra.mxu1 %v6946_v26  ;;  %v6955_v36 = vld [vmem:[%s9596_s4 + $0x568] ss:$16 sps:$4 sm:$0xff]  }
 0x1eb   : > { %4469 = vmatprep.subr.bf16.mxu0 %v6951_v40  ;;  %4526 = vmatprep.subr.bf16.mxu1 %v6954_v21  ;;  %v6994_v26 = vld [vmem:[%s9596_s4 + $0x748] ss:$16 sps:$4 sm:$0xff]   ;;  %v7023_v40 = vld [vmem:[%s9598_s6 + $0x14] ss:$8 sps:$4 sm:$0xff]   ;;  %v9029_v21 = vpop.f32.mrf.mxu0 }
 0x1ed   : > { %4470 = vmatpush2.bf16.msra.mxu0 %v6949_v48  ;;  %v6997_v48 = vld [vmem:[%s9596_s4 + $0x728] ss:$16 sps:$4 sm:$0xff]  }
 0x1ee   : > { %4527 = vmatpush1.bf16.msra.mxu1 %v6952_v28  ;;  %4471 = vmatprep.subr.bf16.mxu0 %v6957_v27  ;;  %v7026_v28 = vld [vmem:[%s9598_s6 + $0x4] ss:$8 sps:$4 sm:$0xff]  }
 0x1ef   : > { %4528 = vmatprep.subr.bf16.mxu1 %v6960_v4  ;;  %v7002_v27 = vld [vmem:[%s9596_s4 + $0x70c] ss:$16 sps:$4 sm:$0xff]   ;;  %v7024_v4 = vld [vmem:[%s9598_s6] ss:$8 sps:$4 sm:$0xff]  }
 0x1f1   : > { %4427 = vmatmul.mubr.bf16.gmra.mxu1 %v8381_v11  ;;  %4472 = vmatpush2.bf16.msra.mxu0 %v6955_v36  ;;  %v6972_v11 = vld [vmem:[%s9596_s4 + $0x62c] ss:$16 sps:$4 sm:$0xff]   ;;  %v9044_v36 = vpop.f32.mrf.mxu0 }
 0x1f2   : > { %4436 = vmatprep.mubr.bf16.mxu1 %v8406_v37  ;;  %4529 = vmatpush1.bf16.msra.mxu1 %v6958_v50  ;;  %v6967_v37 = vld [vmem:[%s9596_s4 + $0x528] ss:$16 sps:$4 sm:$0xff]  }
 0x1f3   : > { %4473 = vmatprep.subr.bf16.mxu0 %v6963_v23  ;;  %4530 = vmatprep.subr.bf16.mxu1 %v6966_v61  ;;  %v7000_v50 = vld [vmem:[%s9596_s4 + $0x708] ss:$16 sps:$4 sm:$0xff]   ;;  %v7029_v23 = vld [vmem:[%s9598_s6 + $0xf4] ss:$8 sps:$4 sm:$0xff]   ;;  %v9055_v61 = vpop.f32.mrf.mxu0 }
 0x1f5   : > { %4474 = vmatpush2.bf16.msra.mxu0 %v6961_v32  ;;  %v7032_v32 = vld [vmem:[%s9598_s6 + $0xe4] ss:$8 sps:$4 sm:$0xff]  }
 0x1f6   : > { %4531 = vmatpush1.bf16.msra.mxu1 %v6964_v12  ;;  %4475 = vmatprep.subr.bf16.mxu0 %v6969_v35  ;;  %v7030_v12 = vld [vmem:[%s9598_s6 + $0xe0] ss:$8 sps:$4 sm:$0xff]   ;;  %v9064_v35 = vpop.f32.mrf.mxu0 }
 0x1f7   : > { %4532 = vmatprep.subr.bf16.mxu1 %v6972_v11  ;;  %v7035_v11 = vld [vmem:[%s9598_s6 + $0xd4] ss:$8 sps:$4 sm:$0xff]  }
 0x1f9   : > { %4437 = vmatmul.mubr.bf16.gmra.mxu1 %v8414_v31  ;;  %4476 = vmatpush2.bf16.msra.mxu0 %v6967_v37  ;;  %v6981_v31 = vld [vmem:[%s9596_s4 + $0x7ec] ss:$16 sps:$4 sm:$0xff]  }
 0x1fa   : > { %4533 = vmatpush1.bf16.msra.mxu1 %v6970_v24  ;;  %4552 = vmatprep.mubr.bf16.mxu1 %v8603_v3  ;;  %v6979_v3 = vld [vmem:[%s9596_s4 + $0x7e8] ss:$16 sps:$4 sm:$0xff]   ;;  %v9075_v24 = vpop.f32.mrf.mxu0 }
 0x1fb   : > { %4477 = vmatprep.subr.bf16.mxu0 %v6975_v55  ;;  %4534 = vmatprep.subr.bf16.mxu1 %v6978_v39  ;;  %v7038_v55 = vld [vmem:[%s9598_s6 + $0xc4] ss:$8 sps:$4 sm:$0xff]   ;;  %v7036_v39 = vld [vmem:[%s9598_s6 + $0xc0] ss:$8 sps:$4 sm:$0xff]  }
 0x1fd   : > { %4478 = vmatpush2.bf16.msra.mxu0 %v6973_v25  ;;  %v9086_v25 = vpop.f32.mrf.mxu0 }
 0x1fe   : > { %4535 = vmatpush1.bf16.msra.mxu1 %v6976_v60  ;;  %5037 = vmatprep.subr.bf16.mxu0 %v7005_v51  ;;  %v7041_v60 = vld [vmem:[%s9598_s6 + $0xb4] ss:$8 sps:$4 sm:$0xff]  }
 0x1ff   : > { %4536 = vmatprep.subr.bf16.mxu1 %v6981_v31  ;;  %v7053_v31 = vld [vmem:[%s9598_s6 + $0x174] ss:$8 sps:$4 sm:$0xff]  }
 0x200   : > { %4480 = vmatmul.mubr.bf16.vlgmr.msra.gmra.mxu0 %v8506_v38  ;;  %v6987_v38 = vld [vmem:[%s9596_s4 + $0x7ac] ss:$16 sps:$4 sm:$0xff]  }
 0x201   : > { %4489 = vmatprep.mubr.bf16.mxu0 %v8524_v9  ;;  %5038 = vmatpush1.bf16.msra.mxu0 %v7003_v46  ;;  %v7009_v9 = vld [vmem:[%s9598_s6 + $0x50] ss:$8 sps:$4 sm:$0xff]   ;;  %v9070_v37 = vpop.f32.mrf.mxu1  ;;  %v9100_v46 = vpop.f32.mrf.mxu0 }
 0x202   : > { %4537 = vmatpush2.bf16.msra.mxu1 %v6979_v3  ;;  %5039 = vmatprep.subr.bf16.mxu0 %v7008_v5  ;;  %v7051_v3 = vld [vmem:[%s9598_s6 + $0x170] ss:$8 sps:$4 sm:$0xff]  }
 0x203   : > { %4538 = vmatprep.subr.bf16.mxu1 %v6984_v47  ;;  %v7042_v47 = vld [vmem:[%s9598_s6 + $0xa0] ss:$8 sps:$4 sm:$0xff]  }
 0x205   : > { %5040 = vmatpush1.bf16.msra.mxu0 %v7006_v20  ;;  %v7056_v20 = vld [vmem:[%s9598_s6 + $0x164] ss:$8 sps:$4 sm:$0xff]  }
 0x206   : > { %4539 = vmatpush2.bf16.msra.mxu1 %v6982_v59  ;;  %5041 = vmatprep.subr.bf16.mxu0 %v7011_v53  ;;  %v9117_v59 = vpop.f32.mrf.mxu0  ;;  %v7047_v53 = vld [vmem:[%s9598_s6 + $0x94] ss:$8 sps:$4 sm:$0xff]  }
 0x207   : > { %4540 = vmatprep.subr.bf16.mxu1 %v6987_v38 }
 0x208   : > { %4490 = vmatmul.mubr.bf16.gmra.mxu0 %v8529_v17  ;;  %v6993_v17 = vld [vmem:[%s9596_s4 + $0x76c] ss:$16 sps:$4 sm:$0xff]  }
 0x209   : > { %4499 = vmatprep.mubr.bf16.mxu0 %v8548_v18  ;;  %5042 = vmatpush1.bf16.msra.mxu0 %v7009_v9  ;;  %v7015_v18 = vld [vmem:[%s9598_s6 + $0x30] ss:$8 sps:$4 sm:$0xff]  }
 0x20a   : > { %4541 = vmatpush2.bf16.msra.mxu1 %v6985_v30  ;;  %5043 = vmatprep.subr.bf16.mxu0 %v7014_v63  ;;  %v7045_v9 = vld [vmem:[%s9598_s6 + $0x90] ss:$8 sps:$4 sm:$0xff]   ;;  %v9134_v30 = vpop.f32.mrf.mxu0  ;;  %v7050_v63 = vld [vmem:[%s9598_s6 + $0x84] ss:$8 sps:$4 sm:$0xff]  }
 0x20b   : > { %4542 = vmatprep.subr.bf16.mxu1 %v6990_v1  ;;  %v7057_v1 = vld [vmem:[%s9598_s6 + $0x150] ss:$8 sps:$4 sm:$0xff]  }
 0x20d   : > { %5044 = vmatpush1.bf16.msra.mxu0 %v7012_v49 }
 0x20e   : > { %4543 = vmatpush2.bf16.msra.mxu1 %v6988_v54  ;;  %5045 = vmatprep.subr.bf16.mxu0 %v7017_v44  ;;  %v7048_v54 = vld [vmem:[%s9598_s6 + $0x80] ss:$8 sps:$4 sm:$0xff]   ;;  %v7062_v44 = vld [vmem:[%s9598_s6 + $0x144] ss:$8 sps:$4 sm:$0xff]  }
 0x20f   : > { %4544 = vmatprep.subr.bf16.mxu1 %v6993_v17  ;;  %v9151_v17 = vpop.f32.mrf.mxu0 }
 0x210   : > { %4500 = vmatmul.mubr.bf16.gmra.mxu0 %v8554_v34  ;;  %v6999_v34 = vld [vmem:[%s9596_s4 + $0x72c] ss:$16 sps:$4 sm:$0xff]  }
 0x211   : > { %4509 = vmatprep.mubr.bf16.mxu0 %v8576_v2  ;;  %5046 = vmatpush1.bf16.msra.mxu0 %v7015_v18  ;;  %v7021_v2 = vld [vmem:[%s9598_s6 + $0x10] ss:$8 sps:$4 sm:$0xff]   ;;  %v7060_v18 = vld [vmem:[%s9598_s6 + $0x140] ss:$8 sps:$4 sm:$0xff]  }
 0x212   : > { %4545 = vmatpush2.bf16.msra.mxu1 %v6991_v8  ;;  %5047 = vmatprep.subr.bf16.mxu0 %v7020_v41  ;;  %v9161_v41 = vpop.f32.mrf.mxu0 }
 0x213   : > { %4546 = vmatprep.subr.bf16.mxu1 %v6996_v19  ;;  %v7063_v19 = vld [vmem:[%s9598_s6 + $0x130] ss:$8 sps:$4 sm:$0xff]  }
 0x215   : > { %5048 = vmatpush1.bf16.msra.mxu0 %v7018_v0 }
 0x216   : > { %4547 = vmatpush2.bf16.msra.mxu1 %v6994_v26  ;;  %5049 = vmatprep.subr.bf16.mxu0 %v7023_v40  ;;  %v7068_v40 = vld [vmem:[%s9598_s6 + $0x124] ss:$8 sps:$4 sm:$0xff]  }
 0x217   : > { %4548 = vmatprep.subr.bf16.mxu1 %v6999_v34  ;;  %v7066_v34 = vld [vmem:[%s9598_s6 + $0x120] ss:$8 sps:$4 sm:$0xff]  }
 0x218   : > { %4510 = vmatmul.mubr.bf16.gmra.mxu0 %v8582_v43  ;;  %v7027_v43 = vld [vmem:[%s9598_s6 + $0xf0] ss:$8 sps:$4 sm:$0xff]  }
 0x219   : > { %5050 = vmatpush1.bf16.msra.mxu0 %v7021_v2 }
 0x21a   : > { %4549 = vmatpush2.bf16.msra.mxu1 %v6997_v48  ;;  %5051 = vmatprep.subr.bf16.mxu0 %v7026_v28  ;;  %v7071_v28 = vld [vmem:[%s9598_s6 + $0x114] ss:$8 sps:$4 sm:$0xff]  }
 0x21b   : > { %4550 = vmatprep.subr.bf16.mxu1 %v7002_v27  ;;  %v7069_v27 = vld [vmem:[%s9598_s6 + $0x110] ss:$8 sps:$4 sm:$0xff]  }
 0x21d   : > { %5052 = vmatpush1.bf16.msra.mxu0 %v7024_v4 }
 0x21e   : > { %4551 = vmatpush2.bf16.msra.mxu1 %v7000_v50  ;;  %5053 = vmatprep.subr.bf16.mxu0 %v7029_v23  ;;  %v7074_v23 = vld [vmem:[%s9598_s6 + $0x104] ss:$8 sps:$4 sm:$0xff]  }
 0x21f   : > { %5110 = vmatprep.subr.bf16.mxu1 %v7053_v31 }
 0x221   : > { %4553 = vmatmul.mubr.bf16.vlgmr.msra.gmra.mxu1 %v8611_v62  ;;  %5054 = vmatpush2.bf16.msra.mxu0 %v7027_v43  ;;  %v7033_v62 = vld [vmem:[%s9598_s6 + $0xd0] ss:$8 sps:$4 sm:$0xff]   ;;  %v7072_v43 = vld [vmem:[%s9598_s6 + $0x100] ss:$8 sps:$4 sm:$0xff]  }
 0x222   : > { %4562 = vmatprep.mubr.bf16.mxu1 %v8639_v6  ;;  %5055 = vmatprep.subr.bf16.mxu0 %v7032_v32  ;;  %v9080_v6 = vpop.f32.mrf.mxu1 }
 0x223   : > { %5111 = vmatpush1.bf16.msra.mxu1 %v7051_v3  ;;  %v7083_v3 = vld [vmem:[%s9598_s6 + $0x1d4] ss:$8 sps:$4 sm:$0xff]  }
 0x224   : > { %v9092_v51 = vpop.f32.mrf.mxu1  ;;  %5112 = vmatprep.subr.bf16.mxu1 %v7056_v20 }
 0x225   : > { %5056 = vmatpush2.bf16.msra.mxu0 %v7030_v12 }
 0x226   : > { %5057 = vmatprep.subr.bf16.mxu0 %v7035_v11  ;;  %v9108_v5 = vpop.f32.mrf.mxu1  ;;  %v7077_v11 = vld [vmem:[%s9598_s6 + $0x1f4] ss:$8 sps:$4 sm:$0xff]  }
 0x228   : > { %v9126_v38 = vpop.f32.mrf.mxu1 }
 0x229   : > { %4563 = vmatmul.mubr.bf16.gmra.mxu1 %v8633_v10  ;;  %5058 = vmatpush2.bf16.msra.mxu0 %v7033_v62  ;;  %v7039_v10 = vld [vmem:[%s9598_s6 + $0xb0] ss:$8 sps:$4 sm:$0xff]  }
 0x22a   : > { %4572 = vmatprep.mubr.bf16.mxu1 %v8672_v15  ;;  %5059 = vmatprep.subr.bf16.mxu0 %v7038_v55  ;;  %v7044_v15 = vld [vmem:[%s9598_s6 + $0xa4] ss:$8 sps:$4 sm:$0xff]   ;;  %v9142_v49 = vpop.f32.mrf.mxu1  ;;  %v7075_v62 = vld [vmem:[%s9598_s6 + $0x1f0] ss:$8 sps:$4 sm:$0xff]  }
 0x22c   : > { %v9156_v8 = vpop.f32.mrf.mxu1 }
 0x22d   : > { %5060 = vmatpush2.bf16.msra.mxu0 %v7036_v39 }
 0x22e   : > { %5061 = vmatprep.subr.bf16.mxu0 %v7041_v60  ;;  %v9166_v0 = vpop.f32.mrf.mxu1  ;;  %v7080_v60 = vld [vmem:[%s9598_s6 + $0x1e4] ss:$8 sps:$4 sm:$0xff]  }
 0x230   : > { %v9176_v2 = vpop.f32.mrf.mxu1 }
 0x231   : > { %4573 = vmatmul.mubr.bf16.gmra.mxu1 %v8667_v42  ;;  %5062 = vmatpush2.bf16.msra.mxu0 %v7039_v10  ;;  %v7054_v42 = vld [vmem:[%s9598_s6 + $0x160] ss:$8 sps:$4 sm:$0xff]  }
 0x232   : > { %4582 = vmatprep.mubr.bf16.mxu1 %v8704_v13  ;;  %5063 = vmatprep.subr.bf16.mxu0 %v7044_v15  ;;  %v7059_v13 = vld [vmem:[%s9598_s6 + $0x154] ss:$8 sps:$4 sm:$0xff]   ;;  %v9184_v4 = vpop.f32.mrf.mxu1  ;;  %v7078_v10 = vld [vmem:[%s9598_s6 + $0x1e0] ss:$8 sps:$4 sm:$0xff]  }
 0x233   : > { %5113 = vmatpush1.bf16.msra.mxu1 %v7054_v42  ;;  %v7086_v42 = vld [vmem:[%s9598_s6 + $0x1c4] ss:$8 sps:$4 sm:$0xff]  }
 0x234   : > { %5114 = vmatprep.subr.bf16.mxu1 %v7059_v13  ;;  %v9192_v32 = vpop.f32.mrf.mxu1  ;;  %v7084_v13 = vld [vmem:[%s9598_s6 + $0x1c0] ss:$8 sps:$4 sm:$0xff]  }
 0x235   : > { %5064 = vmatpush2.bf16.msra.mxu0 %v7042_v47  ;;  %v7081_v47 = vld [vmem:[%s9598_s6 + $0x1d0] ss:$8 sps:$4 sm:$0xff]  }
 0x236   : > { %5065 = vmatprep.subr.bf16.mxu0 %v7047_v53  ;;  %v9200_v55 = vpop.f32.mrf.mxu1 }
 0x237   : > { %5115 = vmatpush1.bf16.msra.mxu1 %v7057_v1 }
 0x238   : > { %5116 = vmatprep.subr.bf16.mxu1 %v7062_v44  ;;  %v9210_v31 = vpop.f32.mrf.mxu1 }
 0x239   : > { %4583 = vmatmul.mubr.bf16.gmra.mxu1 %v8699_v29  ;;  %5066 = vmatpush2.bf16.msra.mxu0 %v7045_v9  ;;  %v7065_v29 = vld [vmem:[%s9598_s6 + $0x134] ss:$8 sps:$4 sm:$0xff]   ;;  %v9230_v9 = vld [vmem:[%s9597_s5] sm:$0xf] }
 0x23a   : > { %5067 = vmatprep.subr.bf16.mxu0 %v7050_v63  ;;  %v9220_v20 = vpop.f32.mrf.mxu1  ;;  %v9245_v44 = vrot.slane %v9230_v9, %v8174_v58 }
 0x23b   : > { %5117 = vmatpush1.bf16.msra.mxu1 %v7060_v18  ;;  %v7089_v18 = vld [vmem:[%s9598_s6 + $0x1b4] ss:$8 sps:$4 sm:$0xff]  }
 0x23c   : > { %5118 = vmatprep.subr.bf16.mxu1 %v7065_v29  ;;  %v9235_v63 = vpop.f32.mrf.mxu1  ;;  %v7087_v29 = vld [vmem:[%s9598_s6 + $0x1b0] ss:$8 sps:$4 sm:$0xff]  }
 0x23d   : > { %5068 = vmatpush2.bf16.msra.mxu0 %v7048_v54  ;;  %v9241_v54 = vrot.slane %v9230_v9, %v8165_v56 }
 0x23f   : > { %5119 = vmatpush1.bf16.msra.mxu1 %v7063_v19  ;;  %v9253_v19 = vpop.f32.mrf.mxu1 }
 0x240   : > { %v9168_v26 = vpop.f32.mrf.mxu0  ;;  %5120 = vmatprep.subr.bf16.mxu1 %v7068_v40 }
 0x242   : > { %v4191_v48 = vpop.f32.mrf.mxu0 }
 0x243   : > { %5121 = vmatpush1.bf16.msra.mxu1 %v7066_v34  ;;  %v4046_v34 = vadd.f32 %v8969_v57, %v9241_v54  ;;  %v7090_v57 = vld [vmem:[%s9598_s6 + $0x1a0] ss:$8 sps:$4 sm:$0xff]  }
 0x244   : > { %v4193_v50 = vpop.f32.mrf.mxu0  ;;  %5122 = vmatprep.subr.bf16.mxu1 %v7071_v28  ;;  %v4048_v28 = vadd.f32 %v8985_v33, %v9245_v44 }
 0x246   : > { %v4195_v12 = vpop.f32.mrf.mxu0 }
 0x247   : > { %5123 = vmatpush1.bf16.msra.mxu1 %v7069_v27  ;;  %v4044_v27 = vadd.f32 %v8955_v45, %v9245_v44 }
 0x248   : > { %5124 = vmatprep.subr.bf16.mxu1 %v7074_v23  ;;  %v9202_v39 = vpop.f32.mrf.mxu0 }
 0x249   : > { %v4117_v33 = vadd.f32 %v9070_v37, %v4044_v27  ;;  %v7093_v37 = vld [vmem:[%s9598_s6 + $0x190] ss:$8 sps:$4 sm:$0xff]   ;;  %v4060_v27 = vadd.f32 %v9055_v61, %v9241_v54 }
 0x24a   : > { %v9212_v15 = vpop.f32.mrf.mxu0 }
 0x24b   : > { %5125 = vmatpush1.bf16.msra.mxu1 %v7072_v43  ;;  %v7092_v43 = vld [vmem:[%s9598_s6 + $0x1a4] ss:$8 sps:$4 sm:$0xff]  }
 0x24c   : > { %5126 = vmatprep.subr.bf16.mxu1 %v7077_v11  ;;  %v9222_v53 = vpop.f32.mrf.mxu0  ;;  %v4050_v11 = vadd.f32 %v8999_v7, %v9241_v54  ;;  %v4190_v7 = vadd.f32 %v9168_v26, %v4117_v33  ;;  %v4058_v26 = vadd.f32 %v9044_v36, %v9245_v44 }
 0x24e   : > { %v9237_v1 = vpop.f32.mrf.mxu0 }
 0x24f   : > { %5127 = vmatpush2.bf16.msra.mxu1 %v7075_v62  ;;  %v4119_v62 = vadd.f32 %v9080_v6, %v4046_v34 }
 0x250   : > { %5128 = vmatprep.subr.bf16.mxu1 %v7080_v60  ;;  %v9255_v40 = vpop.f32.mrf.mxu0  ;;  %v4121_v60 = vadd.f32 %v9092_v51, %v4048_v28  ;;  %v7095_v51 = vld [vmem:[%s9598_s6 + $0x194] ss:$8 sps:$4 sm:$0xff]  }
 0x253   : > { %5129 = vmatpush2.bf16.msra.mxu1 %v7078_v10  ;;  %v9274_v10 = vpop.f32.mrf.mxu0 }
 0x254   : > { %5130 = vmatprep.subr.bf16.mxu1 %v7083_v3  ;;  %v4123_v3 = vadd.f32 %v9108_v5, %v4050_v11 }
 0x255   : > { %v4213_v34 = vpop.f32.mrf.mxu0 }
 0x257   : > { %5131 = vmatpush2.bf16.msra.mxu1 %v7081_v47  ;;  %v4192_v47 = vadd.f32 %v4191_v48, %v4119_v62  ;;  %v4056_v48 = vadd.f32 %v9029_v21, %v9241_v54  ;;  %v4131_v21 = vadd.f32 %v9156_v8, %v4058_v26  ;;  %v4215_v33 = vpop.f32.mrf.mxu0 }
 0x258   : > { %5132 = vmatprep.subr.bf16.mxu1 %v7086_v42  ;;  %v4194_v42 = vadd.f32 %v4193_v50, %v4121_v60 }
 0x259   : > { %v4129_v62 = vadd.f32 %v9142_v49, %v4056_v48  ;;  %v4204_v49 = vadd.f32 %v9222_v53, %v4131_v21 }
 0x25b   : > { %5133 = vmatpush2.bf16.msra.mxu1 %v7084_v13  ;;  %v4196_v13 = vadd.f32 %v4195_v12, %v4123_v3  ;;  %v4054_v12 = vadd.f32 %v9015_v22, %v9245_v44  ;;  %v4133_v3 = vadd.f32 %v9166_v0, %v4060_v27  ;;  %v4066_v0 = vadd.f32 %v9075_v24, %v9241_v54 }
 0x25c   : > { %5134 = vmatprep.subr.bf16.mxu1 %v7089_v18 }
 0x25d   : > { %v4127_v22 = vadd.f32 %v9126_v38, %v4054_v12  ;;  %v4139_v48 = vadd.f32 %v9184_v4, %v4066_v0 }
 0x25f   : > { %5135 = vmatpush2.bf16.msra.mxu1 %v7087_v29  ;;  %v4200_v8 = vadd.f32 %v9202_v39, %v4127_v22  ;;  %v4064_v39 = vadd.f32 %v9064_v35, %v9245_v44  ;;  %v4212_v35 = vadd.f32 %v9274_v10, %v4139_v48 }
 0x260   : > { %5136 = vmatprep.subr.bf16.mxu1 %v7092_v43 }
 0x261   : > { %v4262_v23 = vpop.f32.mrf.mxu1  ;;  %v4137_v24 = vadd.f32 %v9176_v2, %v4064_v39 }
 0x262   : > { %v4263_v28 = vadd.f32 %v4262_v23, %v4190_v7  ;;  %v7098_v23 = vld [vmem:[%s9598_s6 + $0x184] ss:$8 sps:$4 sm:$0xff]  }
 0x263   : > { %v4264_v45 = vpop.f32.mrf.mxu1  ;;  %5137 = vmatpush2.bf16.msra.mxu1 %v7090_v57  ;;  %v7096_v57 = vld [vmem:[%s9598_s6 + $0x180] ss:$8 sps:$4 sm:$0xff]  }
 0x264   : > { %v4265_v18 = vadd.f32 %v4264_v45, %v4192_v47  ;;  %5138 = vmatprep.subr.bf16.mxu1 %v7095_v51  ;;  %v4593_v61 = vmax.f32 %v4263_v28, 0.0  ;;  %v4202_v47 = vadd.f32 %v9212_v15, %v4129_v62  ;;  %v4206_v51 = vadd.f32 %v9237_v1, %v4133_v3 }
 0x265   : > { %v4266_v6 = vpop.f32.mrf.mxu1  ;;  %v4068_v15 = vadd.f32 %v9086_v25, %v9245_v44  ;;  %v4070_v1 = vadd.f32 %v9100_v46, %v9241_v54  ;;  %v4210_v46 = vadd.f32 %v9255_v40, %v4137_v24  ;;  %v4074_v40 = vadd.f32 %v9117_v59, %v9245_v44 }
 0x266   : > { %v4267_v29 = vadd.f32 %v4266_v6, %v4194_v42  ;;  %v4594_v60 = vmax.f32 %v4265_v18, 0.0  ;;  %v4219_v18 = vpop.f32.mrf.mxu0 }
 0x267   : > { %v4268_v5 = vpop.f32.mrf.mxu1  ;;  %5139 = vmatpush2.bf16.msra.mxu1 %v7093_v37  ;;  %v4141_v26 = vadd.f32 %v9192_v32, %v4068_v15 }
 0x268   : > { %v4269_v50 = vadd.f32 %v4268_v5, %v4196_v13  ;;  %v4597_v43 = vmax.f32 %v4267_v29, 0.0  ;;  %5140 = vmatprep.subr.bf16.mxu1 %v7098_v23  ;;  %v4221_v27 = vpop.f32.mrf.mxu0 }
 0x269   : > { %v4272_v11 = vpop.f32.mrf.mxu1  ;;  %v4214_v23 = vadd.f32 %v4213_v34, %v4141_v26  ;;  %v4080_v34 = vadd.f32 %v9161_v41, %v9241_v54 }
 0x26a   : > { %v4598_v36 = vmax.f32 %v4269_v50, 0.0  ;;  %v4625_v7 = vpack.c.bf16 %v4597_v43, %v4593_v61  ;;  %v4273_v29 = vadd.f32 %v4272_v11, %v4200_v8  ;;  %v4143_v11 = vadd.f32 %v9200_v55, %v4070_v1 }
 0x26b   : > { %v4274_v45 = vpop.f32.mrf.mxu1  ;;  %5141 = vmatpush2.bf16.msra.mxu1 %v7096_v57  ;;  %v4223_v57 = vpop.f32.mrf.mxu0  ;;  %v4076_v61 = vadd.f32 %v9134_v30, %v9241_v54  ;;  %v4078_v55 = vadd.f32 %v9151_v17, %v9245_v44  ;;  %v4147_v30 = vadd.f32 %v9210_v31, %v4074_v40 }
 0x26c   : > { %v4626_v42 = vpack.c.bf16 %v4598_v36, %v4594_v60  ;;  %v4275_v13 = vadd.f32 %v4274_v45, %v4202_v47  ;;  %v4601_v43 = vmax.f32 %v4273_v29, 0.0  ;;  %v4216_v4 = vadd.f32 %v4215_v33, %v4143_v11 }
 0x26d   : > { %v4276_v6 = vpop.f32.mrf.mxu1  ;;  %v4149_v3 = vadd.f32 %v9220_v20, %v4076_v61  ;;  %v4151_v47 = vadd.f32 %v9235_v63, %v4078_v55  ;;  %v4225_v8 = vpop.f32.mrf.mxu0 }
 0x26e   : > { %v4277_v38 = vadd.f32 %v4276_v6, %v4204_v49  ;;  %5069 = vmatprep.mubr.bf16.mxu0 %v4626_v42  ;;  %v4602_v50 = vmax.f32 %v4275_v13, 0.0  ;;  %v4153_v6 = vadd.f32 %v9253_v19, %v4080_v34  ;;  %v4220_v13 = vadd.f32 %v4219_v18, %v4147_v30 }
 0x26f   : > { %v4278_v37 = vpop.f32.mrf.mxu1  ;;  %5070 = vmatmul.mubr.bf16.vlgmr.msra.gmra.mxu0 %v4625_v7  ;;  %v4224_v59 = vadd.f32 %v4223_v57, %v4151_v47  ;;  %v7100_v47 = vld [vmem:[%s9600_s8 + $0x38] sm:$0xff]  }
 0x270   : > { %v4279_v53 = vadd.f32 %v4278_v37, %v4206_v51  ;;  %v4605_v28 = vmax.f32 %v4277_v38, 0.0  ;;  %v4222_v51 = vadd.f32 %v4221_v27, %v4149_v3  ;;  %v4226_v38 = vadd.f32 %v4225_v8, %v4153_v6  ;;  %v7099_v3 = vld [vmem:[%s9600_s8 + $0x78] sm:$0xff]   ;;  %v7102_v8 = vld [vmem:[%s9600_s8 + $0x30] sm:$0xff]  }
 0x271   : > { %v4282_v5 = vpop.f32.mrf.mxu1  ;;  %6466 = vmatprep.subr.bf16.mxu0 %v7099_v3 }
 0x272   : > { %v4606_v12 = vmax.f32 %v4279_v53, 0.0  ;;  %v4629_v21 = vpack.c.bf16 %v4605_v28, %v4601_v43  ;;  %v4283_v22 = vadd.f32 %v4282_v5, %v4210_v46  ;;  %6467 = vmatpush3.bf16.msra.mxu0 %v7100_v47 }
 0x273   : > { %v4284_v25 = vpop.f32.mrf.mxu1 }
 0x274   : > { %v4630_v62 = vpack.c.bf16 %v4606_v12, %v4602_v50  ;;  %v4285_v36 = vadd.f32 %v4284_v25, %v4212_v35  ;;  %v4609_v7 = vmax.f32 %v4283_v22, 0.0 }
 0x275   : > { %v4286_v60 = vpop.f32.mrf.mxu1 }
 0x276   : > { %v4287_v32 = vadd.f32 %v4286_v60, %v4214_v23  ;;  %5079 = vmatprep.mubr.bf16.mxu0 %v4630_v62  ;;  %v4610_v49 = vmax.f32 %v4285_v36, 0.0 }
 0x277   : > { %v4288_v2 = vpop.f32.mrf.mxu1  ;;  %5080 = vmatmul.mubr.bf16.gmra.mxu0 %v4629_v21 }
 0x278   : > { %v4289_v10 = vadd.f32 %v4288_v2, %v4216_v4  ;;  %v4613_v33 = vmax.f32 %v4287_v32, 0.0 }
 0x279   : > { %v4292_v45 = vpop.f32.mrf.mxu1 }
 0x27a   : > { %v4614_v42 = vmax.f32 %v4289_v10, 0.0  ;;  %v4633_v41 = vpack.c.bf16 %v4613_v33, %v4609_v7  ;;  %v4293_v63 = vadd.f32 %v4292_v45, %v4220_v13  ;;  %v7103_v7 = vld [vmem:[%s9600_s8 + $0x68] sm:$0xff]  }
 0x27b   : > { %v4294_v17 = vpop.f32.mrf.mxu1 }
 0x27c   : > { %v4634_v44 = vpack.c.bf16 %v4614_v42, %v4610_v49  ;;  %v4295_v29 = vadd.f32 %v4294_v17, %v4222_v51  ;;  %v4617_v19 = vmax.f32 %v4293_v63, 0.0  ;;  %v7101_v49 = vld [vmem:[%s9600_s8 + $0x70] sm:$0xff]   ;;  %v7104_v51 = vld [vmem:[%s9600_s8 + $0x28] sm:$0xff]   ;;  %v9421_v63 = vrot.slane %v9230_v9, %v717_v16 }
 0x27d   : > { %v4296_v54 = vpop.f32.mrf.mxu1  ;;  %6468 = vmatprep.subr.bf16.mxu0 %v7101_v49 }
 0x27e   : > { %v4297_v20 = vadd.f32 %v4296_v54, %v4224_v59  ;;  %5089 = vmatprep.mubr.bf16.mxu0 %v4634_v44  ;;  %v4618_v15 = vmax.f32 %v4295_v29, 0.0  ;;  %6469 = vmatpush3.bf16.msra.mxu0 %v7102_v8  ;;  %v7105_v59 = vld [vmem:[%s9600_s8 + $0x60] sm:$0xff]   ;;  %v7107_v54 = vld [vmem:[%s9600_s8 + $0x58] sm:$0xff]  }
 0x27f   : > { %v4298_v37 = vpop.f32.mrf.mxu1  ;;  %5090 = vmatmul.mubr.bf16.gmra.mxu0 %v4633_v41  ;;  %6470 = vmatprep.subr.bf16.mxu0 %v7103_v7  ;;  %v7106_v41 = vld [vmem:[%s9600_s8 + $0x20] sm:$0xff]  }
 0x280   : > { %v4299_v0 = vadd.f32 %v4298_v37, %v4226_v38  ;;  %v4621_v31 = vmax.f32 %v4297_v20, 0.0  ;;  %v9332_v39 = vpop.f32.mrf.mxu0  ;;  %v9416_v20 = vrot.slane %v9230_v9, %v721_v14  ;;  %v7108_v37 = vld [vmem:[%s9600_s8 + $0x18] sm:$0xff]  }
 0x281   : > { %v4336_v52 = vadd.f32 %v9332_v39, %v9421_v63 }
 0x282   : > { %v4622_v53 = vmax.f32 %v4299_v0, 0.0  ;;  %v4637_v28 = vpack.c.bf16 %v4621_v31, %v4617_v19  ;;  %v9334_v5 = vpop.f32.mrf.mxu0  ;;  %6471 = vmatpush3.bf16.msra.mxu0 %v7104_v51 }
 0x283   : > { %6472 = vmatprep.subr.bf16.mxu0 %v7105_v59 }
 0x284   : > { %v4638_v1 = vpack.c.bf16 %v4622_v53, %v4618_v15  ;;  %v4339_v18 = vpop.f32.mrf.mxu0  ;;  %v4338_v15 = vadd.f32 %v9334_v5, %v9416_v20 }
 0x285   : > { %v4340_v14 = vadd.f32 %v4339_v18, %v9421_v63 }
 0x286   : > { %5099 = vmatprep.mubr.bf16.mxu0 %v4638_v1  ;;  %v9336_v48 = vpop.f32.mrf.mxu0  ;;  %6473 = vmatpush3.bf16.msra.mxu0 %v7106_v41 }
 0x287   : > { %5100 = vmatmul.mubr.bf16.gmra.mxu0 %v4637_v28  ;;  %6474 = vmatprep.subr.bf16.mxu0 %v7107_v54  ;;  %v4342_v9 = vadd.f32 %v9336_v48, %v9416_v20 }
 0x288   : > { %v9338_v26 = vpop.f32.mrf.mxu0 }
 0x28a   : > { %v9340_v50 = vpop.f32.mrf.mxu0  ;;  %6475 = vmatpush3.bf16.msra.mxu0 %v7108_v37 }
 0x28b   : > { %v4348_v37 = vadd.f32 %v9340_v50, %v9416_v20 }
 0x28c   : > { %v9342_v12 = vpop.f32.mrf.mxu0 }
 0x28d   : > { %v4350_v48 = vadd.f32 %v9342_v12, %v9421_v63 }
 0x28e   : > { %v9344_v24 = vpop.f32.mrf.mxu0 }
 0x290   : > { %v9346_v27 = vpop.f32.mrf.mxu0 }
 0x292   : > { %v9348_v25 = vpop.f32.mrf.mxu0 }
 0x294   : > { %v9350_v35 = vpop.f32.mrf.mxu0 }
 0x296   : > { %v9352_v62 = vpop.f32.mrf.mxu0 }
 0x298   : > { %v9354_v21 = vpop.f32.mrf.mxu0 }
 0x29a   : > { %v9358_v4 = vpop.f32.mrf.mxu0 }
 0x29c   : > { %v9362_v32 = vpop.f32.mrf.mxu0 }
 0x29e   : > { %v9366_v22 = vpop.f32.mrf.mxu0 }
 0x2a1   : > { %v4408_v43 = vpop.f32.mrf.mxu1 }
 0x2a2   : > { %v4409_v1 = vadd.f32 %v4408_v43, %v4336_v52 }
 0x2a3   : > { %v4410_v11 = vpop.f32.mrf.mxu1 }
 0x2a4   : > { %v4411_v53 = vadd.f32 %v4410_v11, %v4338_v15  ;;  %v4346_v11 = vadd.f32 %v9338_v26, %v9421_v63 }
 0x2a5   : > { %v4412_v23 = vpop.f32.mrf.mxu1 }
 0x2a6   : > { %v4413_v19 = vadd.f32 %v4412_v23, %v4340_v14  ;;  %v4352_v23 = vadd.f32 %v9344_v24, %v9416_v20 }
 0x2a7   : > { %v4414_v46 = vpop.f32.mrf.mxu1 }
 0x2a8   : > { %v4415_v47 = vadd.f32 %v4414_v46, %v4342_v9 }
 0x2a9   : > { %v9356_v60 = vpop.f32.mrf.mxu1 }
 0x2aa   : > { %v4419_v50 = vadd.f32 %v9356_v60, %v4346_v11  ;;  %v4358_v60 = vadd.f32 %v9348_v25, %v9416_v20 }
 0x2ab   : > { %v9360_v36 = vpop.f32.mrf.mxu1 }
 0x2ad   : > { %v9364_v57 = vpop.f32.mrf.mxu1 }
 0x2af   : > { %v9368_v2 = vpop.f32.mrf.mxu1 }
 0x2b1   : > { %v9370_v55 = vpop.f32.mrf.mxu1 }
 0x2b3   : > { %v9372_v40 = vpop.f32.mrf.mxu1 }
 0x2b5   : > { %v9374_v33 = vpop.f32.mrf.mxu1 }
 0x2b7   : > { %v9385_v42 = vpop.f32.mrf.mxu1 }
 0x2b9   : > { %v9395_v17 = vpop.f32.mrf.mxu1 }
 0x2bb   : > { %v9403_v44 = vpop.f32.mrf.mxu1 }
 0x2bd   : > { %v9411_v38 = vpop.f32.mrf.mxu1 }
 0x2bf   : > { %v9426_v0 = vpop.f32.mrf.mxu1 }
 0x2c0   : > { %v4481_v61 = vpop.f32.mrf.mxu0 }
 0x2c1   : > { %v4482_v7 = vadd.f32 %v4481_v61, %v4409_v1 }
 0x2c2   : > { %v4483_v10 = vpop.f32.mrf.mxu0 }
 0x2c3   : > { %v4484_v49 = vadd.f32 %v4483_v10, %v4411_v53  ;;  %v4421_v10 = vadd.f32 %v9360_v36, %v4348_v37 }
 0x2c4   : > { %v4485_v34 = vpop.f32.mrf.mxu0 }
 0x2c5   : > { %v4486_v8 = vadd.f32 %v4485_v34, %v4413_v19  ;;  %v4423_v34 = vadd.f32 %v9364_v57, %v4350_v48 }
 0x2c6   : > { %v4487_v45 = vpop.f32.mrf.mxu0 }
 0x2c7   : > { %v4488_v51 = vadd.f32 %v4487_v45, %v4415_v47 }
 0x2c8   : > { %v9387_v30 = vpop.f32.mrf.mxu0 }
 0x2c9   : > { %v4492_v24 = vadd.f32 %v9387_v30, %v4419_v50  ;;  %v4356_v30 = vadd.f32 %v9346_v27, %v9421_v63 }
 0x2ca   : > { %v4493_v6 = vpop.f32.mrf.mxu0 }
 0x2cb   : > { %v4494_v9 = vadd.f32 %v4493_v6, %v4421_v10  ;;  %v4429_v25 = vadd.f32 %v9370_v55, %v4356_v30  ;;  %v4368_v55 = vadd.f32 %v9358_v4, %v9416_v20  ;;  %v7112_v30 = vld [vmem:[%s9600_s8 + $0x8] sm:$0xff]  }
 0x2cc   : > { %v4495_v13 = vpop.f32.mrf.mxu0 }
 0x2cd   : > { %v4496_v26 = vadd.f32 %v4495_v13, %v4423_v34  ;;  %v4362_v13 = vadd.f32 %v9352_v62, %v9416_v20  ;;  %v4441_v50 = vadd.f32 %v9403_v44, %v4368_v55 }
 0x2ce   : > { %v4497_v29 = vpop.f32.mrf.mxu0 }
 0x2cf   : > { %v4435_v37 = vadd.f32 %v9385_v42, %v4362_v13  ;;  %v4370_v42 = vadd.f32 %v9362_v32, %v9421_v63  ;;  %v7113_v13 = vld [vmem:[%s9600_s8 + $0x40] sm:$0xff]  }
 0x2d0   : > { %v9428_v31 = vpop.f32.mrf.mxu0 }
 0x2d1   : > { %v4502_v62 = vadd.f32 %v9428_v31, %v4429_v25  ;;  %v4366_v31 = vadd.f32 %v9354_v21, %v9421_v63 }
 0x2d2   : > { %v4503_v28 = vpop.f32.mrf.mxu0 }
 0x2d3   : > { %v4439_v4 = vadd.f32 %v9395_v17, %v4366_v31 }
 0x2d4   : > { %v4505_v41 = vpop.f32.mrf.mxu0 }
 0x2d6   : > { %v4507_v14 = vpop.f32.mrf.mxu0 }
 0x2d8   : > { %v4511_v57 = vpop.f32.mrf.mxu0 }
 0x2e1   : > { %v4554_v16 = vpop.f32.mrf.mxu1 }
 0x2e2   : > { %v4555_v39 = vadd.f32 %v4554_v16, %v4482_v7  ;;  %v4425_v16 = vadd.f32 %v9368_v2, %v4352_v23  ;;  %v4360_v2 = vadd.f32 %v9350_v35, %v9421_v63 }
 0x2e3   : > { %v4556_v3 = vpop.f32.mrf.mxu1 }
 0x2e4   : > { %v4557_v18 = vadd.f32 %v4556_v3, %v4484_v49  ;;  %v4595_v52 = vmax.f32 %v4555_v39, 0.0  ;;  %v4498_v3 = vadd.f32 %v4497_v29, %v4425_v16  ;;  %v4513_v39 = vpop.f32.mrf.mxu0 }
 0x2e5   : > { %v4558_v5 = vpop.f32.mrf.mxu1 }
 0x2e6   : > { %v4559_v59 = vadd.f32 %v4558_v5, %v4486_v8  ;;  %v4596_v45 = vmax.f32 %v4557_v18, 0.0  ;;  %v4431_v5 = vadd.f32 %v9372_v40, %v4358_v60 }
 0x2e7   : > { %v4560_v54 = vpop.f32.mrf.mxu1 }
 0x2e8   : > { %v4561_v43 = vadd.f32 %v4560_v54, %v4488_v51  ;;  %v4599_v46 = vmax.f32 %v4559_v59, 0.0  ;;  %v4433_v51 = vadd.f32 %v9374_v33, %v4360_v2  ;;  %v4504_v48 = vadd.f32 %v4503_v28, %v4431_v5  ;;  %v4515_v33 = vpop.f32.mrf.mxu0  ;;  %v7110_v2 = vld [vmem:[%s9600_s8 + $0x10] sm:$0xff]  }
 0x2e9   : > { %v4564_v61 = vpop.f32.mrf.mxu1  ;;  %v7116_v5 = vld [vmem:[%s9602_s10 + $0x30] sm:$0xff]  }
 0x2ea   : > { %v4600_v15 = vmax.f32 %v4561_v43, 0.0  ;;  %v4627_v19 = vpack.c.bf16 %v4599_v46, %v4595_v52  ;;  %v4565_v49 = vadd.f32 %v4564_v61, %v4492_v24  ;;  %v4506_v27 = vadd.f32 %v4505_v41, %v4433_v51  ;;  %v4517_v16 = vpop.f32.mrf.mxu0  ;;  %v7117_v51 = vld [vmem:[%s9602_s10 + $0x28] sm:$0xff]  }
 0x2eb   : > { %v4566_v12 = vpop.f32.mrf.mxu1  ;;  %v4508_v46 = vadd.f32 %v4507_v14, %v4435_v37  ;;  %v4372_v41 = vadd.f32 %v9366_v22, %v9416_v20  ;;  %v4443_v14 = vadd.f32 %v9411_v38, %v4370_v42  ;;  %v4512_v24 = vadd.f32 %v4511_v57, %v4439_v4  ;;  %v7109_v57 = vld [vmem:[%s9600_s8 + $0x50] sm:$0xff]  }
 0x2ec   : > { %v4628_v53 = vpack.c.bf16 %v4600_v15, %v4596_v45  ;;  %v4567_v36 = vadd.f32 %v4566_v12, %v4494_v9  ;;  %v4603_v54 = vmax.f32 %v4565_v49, 0.0  ;;  %6476 = vmatprep.subr.bf16.mxu0 %v7109_v57 }
 0x2ed   : > { %v4568_v1 = vpop.f32.mrf.mxu1  ;;  %v4516_v21 = vadd.f32 %v4515_v33, %v4443_v14  ;;  %6477 = vmatpush3.bf16.msra.mxu0 %v7110_v2 }
 0x2ee   : > { %v4569_v47 = vadd.f32 %v4568_v1, %v4496_v26  ;;  %5142 = vmatprep.mubr.bf16.mxu1 %v4628_v53  ;;  %v4604_v18 = vmax.f32 %v4567_v36, 0.0  ;;  %v4445_v26 = vadd.f32 %v9426_v0, %v4372_v41  ;;  %v4514_v53 = vadd.f32 %v4513_v39, %v4441_v50 }
 0x2ef   : > { %v4570_v8 = vpop.f32.mrf.mxu1  ;;  %5143 = vmatmul.mubr.bf16.vlgmr.msra.gmra.mxu1 %v4627_v19 }
 0x2f0   : > { %v4571_v6 = vadd.f32 %v4570_v8, %v4498_v3  ;;  %v4607_v29 = vmax.f32 %v4569_v47, 0.0  ;;  %v4518_v19 = vadd.f32 %v4517_v16, %v4445_v26 }
 0x2f1   : > { %v4574_v7 = vpop.f32.mrf.mxu1 }
 0x2f2   : > { %v4608_v59 = vmax.f32 %v4571_v6, 0.0  ;;  %v4631_v11 = vpack.c.bf16 %v4607_v29, %v4603_v54  ;;  %v4575_v10 = vadd.f32 %v4574_v7, %v4502_v62  ;;  %v7111_v6 = vld [vmem:[%s9600_s8 + $0x48] sm:$0xff]   ;;  %v7114_v29 = vld [vmem:[%s9600_s8] sm:$0xff]   ;;  %v7115_v7 = vld [vmem:[%s9602_s10 + $0x38] sm:$0xff]  }
 0x2f3   : > { %v4576_v35 = vpop.f32.mrf.mxu1  ;;  %6478 = vmatprep.subr.bf16.mxu0 %v7111_v6  ;;  %6535 = vmatprep.subr.bf16.mxu1 %v7115_v7 }
 0x2f4   : > { %v4632_v43 = vpack.c.bf16 %v4608_v59, %v4604_v18  ;;  %v4577_v40 = vadd.f32 %v4576_v35, %v4504_v48  ;;  %v4611_v9 = vmax.f32 %v4575_v10, 0.0  ;;  %6479 = vmatpush3.bf16.msra.mxu0 %v7112_v30  ;;  %6536 = vmatpush3.bf16.msra.mxu1 %v7115_v7 }
 0x2f5   : > { %v4578_v23 = vpop.f32.mrf.mxu1  ;;  %6480 = vmatprep.subr.bf16.mxu0 %v7113_v13  ;;  %6537 = vmatprep.subr.bf16.mxu1 %v7116_v5 }
 0x2f6   : > { %v4579_v61 = vadd.f32 %v4578_v23, %v4506_v27  ;;  %5152 = vmatprep.mubr.bf16.mxu1 %v4632_v43  ;;  %v4612_v52 = vmax.f32 %v4577_v40, 0.0  ;;  %v4705_v27 = vld [vmem:[%s9599_s7] sm:$0x3] }
 0x2f7   : > { %v4580_v34 = vpop.f32.mrf.mxu1  ;;  %5153 = vmatmul.mubr.bf16.gmra.mxu1 %v4631_v11  ;;  %v9506_v62 = vrot.slane %v4705_v27, %v8165_v56  ;;  %v9509_v11 = vrot.slane %v4705_v27, %v8174_v58 }
 0x2f8   : > { %v4581_v28 = vadd.f32 %v4580_v34, %v4508_v46  ;;  %v4615_v45 = vmax.f32 %v4579_v61, 0.0  ;;  %6481 = vmatpush3.bf16.msra.mxu0 %v7114_v29  ;;  %6538 = vmatpush3.bf16.msra.mxu1 %v7116_v5 }
 0x2f9   : > { %v4584_v15 = vpop.f32.mrf.mxu1  ;;  %6539 = vmatprep.subr.bf16.mxu1 %v7117_v51 }
 0x2fa   : > { %v4616_v12 = vmax.f32 %v4581_v28, 0.0  ;;  %v4635_v22 = vpack.c.bf16 %v4615_v45, %v4611_v9  ;;  %v4585_v38 = vadd.f32 %v4584_v15, %v4512_v24 }
 0x2fb   : > { %v4586_v32 = vpop.f32.mrf.mxu1 }
 0x2fc   : > { %v4636_v63 = vpack.c.bf16 %v4616_v12, %v4612_v52  ;;  %v4587_v1 = vadd.f32 %v4586_v32, %v4514_v53  ;;  %v4619_v8 = vmax.f32 %v4585_v38, 0.0  ;;  %6540 = vmatpush3.bf16.msra.mxu1 %v7117_v51 }
 0x2fd   : > { %v4588_v20 = vpop.f32.mrf.mxu1 }
 0x2fe   : > { %v4589_v44 = vadd.f32 %v4588_v20, %v4516_v21  ;;  %5162 = vmatprep.mubr.bf16.mxu1 %v4636_v63  ;;  %v4620_v47 = vmax.f32 %v4587_v1, 0.0 }
 0x2ff   : > { %v4590_v3 = vpop.f32.mrf.mxu1  ;;  %5163 = vmatmul.mubr.bf16.gmra.mxu1 %v4635_v22 }
 0x300   : > { %v4591_v36 = vadd.f32 %v4590_v3, %v4518_v19  ;;  %v4623_v17 = vmax.f32 %v4589_v44, 0.0 }
 0x302   : > { %v4624_v49 = vmax.f32 %v4591_v36, 0.0  ;;  %v4639_v0 = vpack.c.bf16 %v4623_v17, %v4619_v8 }
 0x304   : > { %v4640_v60 = vpack.c.bf16 %v4624_v49, %v4620_v47 }
 0x306   : > { %5172 = vmatprep.mubr.bf16.mxu1 %v4640_v60 }
 0x307   : > { %5173 = vmatmul.mubr.bf16.gmra.mxu1 %v4639_v0 }
 0x32f   : > { %v5071_v18 = vpop.f32.mrf.mxu0 }
 0x330   : > { %v5072_v10 = vadd.f32 %v5071_v18, %v9509_v11 }
 0x331   : > { %v5073_v59 = vpop.f32.mrf.mxu0 }
 0x332   : > { %v5074_v61 = vadd.f32 %v5073_v59, %v9506_v62 }
 0x333   : > { %v5075_v25 = vpop.f32.mrf.mxu0 }
 0x334   : > { %v5076_v33 = vadd.f32 %v5075_v25, %v9509_v11 }
 0x335   : > { %v5077_v39 = vpop.f32.mrf.mxu0 }
 0x336   : > { %v5078_v55 = vadd.f32 %v5077_v39, %v9506_v62 }
 0x337   : > { %v5081_v54 = vpop.f32.mrf.mxu0 }
 0x338   : > { %v5082_v26 = vadd.f32 %v5081_v54, %v9509_v11 }
 0x339   : > { %v5083_v35 = vpop.f32.mrf.mxu0 }
 0x33a   : > { %v5084_v16 = vadd.f32 %v5083_v35, %v9506_v62 }
 0x33b   : > { %v5085_v37 = vpop.f32.mrf.mxu0 }
 0x33c   : > { %v5086_v9 = vadd.f32 %v5085_v37, %v9509_v11 }
 0x33d   : > { %v5087_v48 = vpop.f32.mrf.mxu0 }
 0x33e   : > { %v5088_v63 = vadd.f32 %v5087_v48, %v9506_v62 }
 0x33f   : > { %v5091_v43 = vpop.f32.mrf.mxu0 }
 0x340   : > { %v5092_v2 = vadd.f32 %v5091_v43, %v9509_v11 }
 0x341   : > { %v5093_v46 = vpop.f32.mrf.mxu0 }
 0x342   : > { %v5094_v60 = vadd.f32 %v5093_v46, %v9506_v62 }
 0x343   : > { %v5095_v31 = vpop.f32.mrf.mxu0 }
 0x344   : > { %v5096_v0 = vadd.f32 %v5095_v31, %v9509_v11 }
 0x345   : > { %v5097_v52 = vpop.f32.mrf.mxu0 }
 0x346   : > { %v5098_v13 = vadd.f32 %v5097_v52, %v9506_v62  ;;  %v7121_v52 = vld [vmem:[%s9602_s10 + $0x8] sm:$0xff]  }
 0x347   : > { %v5101_v20 = vpop.f32.mrf.mxu0 }
 0x349   : > { %v5103_v47 = vpop.f32.mrf.mxu0 }
 0x34a   : > { %v5104_v43 = vadd.f32 %v5103_v47, %v9506_v62 }
 0x34b   : > { %v5105_v5 = vpop.f32.mrf.mxu0 }
 0x34d   : > { %v5107_v37 = vpop.f32.mrf.mxu0 }
 0x3af   : > { %v5144_v23 = vpop.f32.mrf.mxu1 }
 0x3b0   : > { %v5145_v56 = vadd.f32 %v5144_v23, %v5072_v10  ;;  %v5106_v23 = vadd.f32 %v5105_v5, %v9509_v11  ;;  %v5108_v10 = vadd.f32 %v5107_v37, %v9506_v62  ;;  %v7119_v62 = vld [vmem:[%s9602_s10 + $0x18] sm:$0xff]  }
 0x3b1   : > { %v5146_v40 = vpop.f32.mrf.mxu1 }
 0x3b2   : > { %v5147_v42 = vadd.f32 %v5146_v40, %v5074_v61  ;;  %v5183_v12 = vmax.f32 %v5145_v56, 0.0  ;;  %v5102_v40 = vadd.f32 %v5101_v20, %v9509_v11  ;;  %v7118_v11 = vld [vmem:[%s9602_s10 + $0x20] sm:$0xff]  }
 0x3b3   : > { %v5148_v34 = vpop.f32.mrf.mxu1  ;;  %6541 = vmatprep.subr.bf16.mxu1 %v7118_v11 }
 0x3b4   : > { %v5149_v28 = vadd.f32 %v5148_v34, %v5076_v33  ;;  %v5184_v50 = vmax.f32 %v5147_v42, 0.0  ;;  %6542 = vmatpush3.bf16.msra.mxu1 %v7118_v11 }
 0x3b5   : > { %v5150_v41 = vpop.f32.mrf.mxu1  ;;  %6543 = vmatprep.subr.bf16.mxu1 %v7119_v62 }
 0x3b6   : > { %v5151_v45 = vadd.f32 %v5150_v41, %v5078_v55  ;;  %v5185_v58 = vmax.f32 %v5149_v28, 0.0 }
 0x3b7   : > { %v5154_v15 = vpop.f32.mrf.mxu1 }
 0x3b8   : > { %v5186_v14 = vmax.f32 %v5151_v45, 0.0  ;;  %v5199_v53 = vpack.c.bf16 %v5185_v58, %v5183_v12  ;;  %v5155_v19 = vadd.f32 %v5154_v15, %v5082_v26  ;;  %6544 = vmatpush3.bf16.msra.mxu1 %v7119_v62  ;;  %v7122_v12 = vld [vmem:[%s9602_s10] sm:$0xff]  }
 0x3b9   : > { %v5156_v4 = vpop.f32.mrf.mxu1  ;;  %v6421_v26 = vld [vmem:[%s9601_s9] ss:$0 sm:$0xff] }
 0x3ba   : > { %v5200_v32 = vpack.c.bf16 %v5186_v14, %v5184_v50  ;;  %v5157_v24 = vadd.f32 %v5156_v4, %v5084_v16  ;;  %v5187_v49 = vmax.f32 %v5155_v19, 0.0  ;;  %v7120_v14 = vld [vmem:[%s9602_s10 + $0x10] sm:$0xff]   ;;  %v7123_v4 = vld [vmem:[%s9603_s11] sm:$0xff]  }
 0x3bb   : > { %v5158_v21 = vpop.f32.mrf.mxu1  ;;  %6545 = vmatprep.subr.bf16.mxu1 %v7120_v14 }
 0x3bc   : > { %v5159_v22 = vadd.f32 %v5158_v21, %v5086_v9  ;;  %5374 = vmatprep.mubr.bf16.mxu0 %v5200_v32  ;;  %v5188_v36 = vmax.f32 %v5157_v24, 0.0  ;;  %6546 = vmatpush3.bf16.msra.mxu1 %v7120_v14 }
 0x3bd   : > { %v5160_v1 = vpop.f32.mrf.mxu1  ;;  %5375 = vmatmul.mubr.bf16.vlgmr.msra.gmra.mxu0 %v5199_v53  ;;  %6547 = vmatprep.subr.bf16.mxu1 %v7121_v52 }
 0x3be   : > { %v5161_v44 = vadd.f32 %v5160_v1, %v5088_v63  ;;  %v5189_v38 = vmax.f32 %v5159_v22, 0.0 }
 0x3bf   : > { %v5164_v3 = vpop.f32.mrf.mxu1 }
 0x3c0   : > { %v5190_v17 = vmax.f32 %v5161_v44, 0.0  ;;  %v5201_v6 = vpack.c.bf16 %v5189_v38, %v5187_v49  ;;  %v5165_v51 = vadd.f32 %v5164_v3, %v5092_v2  ;;  %6548 = vmatpush3.bf16.msra.mxu1 %v7121_v52 }
 0x3c1   : > { %v5166_v8 = vpop.f32.mrf.mxu1  ;;  %6549 = vmatprep.subr.bf16.mxu1 %v7122_v12 }
 0x3c2   : > { %v5202_v57 = vpack.c.bf16 %v5190_v17, %v5188_v36  ;;  %v5167_v29 = vadd.f32 %v5166_v8, %v5094_v60  ;;  %v5191_v48 = vmax.f32 %v5165_v51, 0.0 }
 0x3c3   : > { %v5168_v30 = vpop.f32.mrf.mxu1 }
 0x3c4   : > { %v5169_v7 = vadd.f32 %v5168_v30, %v5096_v0  ;;  %5382 = vmatprep.mubr.bf16.mxu0 %v5202_v57  ;;  %v5192_v54 = vmax.f32 %v5167_v29, 0.0  ;;  %6550 = vmatpush3.bf16.msra.mxu1 %v7122_v12 }
 0x3c5   : > { %v5170_v18 = vpop.f32.mrf.mxu1  ;;  %5383 = vmatmul.mubr.bf16.gmra.mxu0 %v5201_v6  ;;  %6559 = vmatprep.subr.bf16.mxu1 %v7123_v4 }
 0x3c6   : > { %v5171_v59 = vadd.f32 %v5170_v18, %v5098_v13  ;;  %v5193_v25 = vmax.f32 %v5169_v7, 0.0 }
 0x3c7   : > { %v5174_v39 = vpop.f32.mrf.mxu1 }
 0x3c8   : > { %v5194_v35 = vmax.f32 %v5171_v59, 0.0  ;;  %v5203_v61 = vpack.c.bf16 %v5193_v25, %v5191_v48  ;;  %v5175_v42 = vadd.f32 %v5174_v39, %v5102_v40 }
 0x3c9   : > { %v5176_v27 = vpop.f32.mrf.mxu1 }
 0x3ca   : > { %v5204_v46 = vpack.c.bf16 %v5194_v35, %v5192_v54  ;;  %v5177_v34 = vadd.f32 %v5176_v27, %v5104_v43  ;;  %v5195_v58 = vmax.f32 %v5175_v42, 0.0  ;;  %v7128_v42 = vld [vmem:[%s9604_s12 + $0x38] sm:$0xff]  }
 0x3cb   : > { %v5178_v33 = vpop.f32.mrf.mxu1  ;;  %6569 = vmatprep.subr.bf16.mxu0 %v7128_v42 }
 0x3cc   : > { %v5179_v55 = vadd.f32 %v5178_v33, %v5106_v23  ;;  %5390 = vmatprep.mubr.bf16.mxu0 %v5204_v46  ;;  %v5196_v41 = vmax.f32 %v5177_v34, 0.0  ;;  %v7126_v34 = vld [vmem:[%s9549_s25 + $0x10] sm:$0xff]   ;;  %6570 = vmatpush3.bf16.msra.mxu0 %v7128_v42 }
 0x3cd   : > { %v5180_v28 = vpop.f32.mrf.mxu1  ;;  %5391 = vmatmul.mubr.bf16.gmra.mxu0 %v5203_v61  ;;  %v7124_v61 = vld [vmem:[%s9549_s25] sm:$0xff]  }
 0x3ce   : > { %v5181_v31 = vadd.f32 %v5180_v28, %v5108_v10  ;;  %v5197_v56 = vmax.f32 %v5179_v55, 0.0  ;;  %v7125_v10 = vld [vmem:[%s9549_s25 + $0x8] sm:$0xff]   ;;  %v7127_v55 = vld [vmem:[%s9549_s25 + $0x18] sm:$0xff]   ;;  %v7129_v28 = vld [vmem:[%s9604_s12 + $0x30] sm:$0xff]  }
 0x3cf   : > { %6571 = vmatprep.subr.bf16.mxu0 %v7129_v28 }
 0x3d0   : > { %v5198_v45 = vmax.f32 %v5181_v31, 0.0  ;;  %v5205_v50 = vpack.c.bf16 %v5197_v56, %v5195_v58  ;;  %6572 = vmatpush3.bf16.msra.mxu0 %v7129_v28  ;;  %v7130_v31 = vld [vmem:[%s9604_s12 + $0x28] sm:$0xff]   ;;  %v7131_v56 = vld [vmem:[%s9604_s12 + $0x20] sm:$0xff]  }
 0x3d1   : > { %6573 = vmatprep.subr.bf16.mxu0 %v7130_v31  ;;  %v7134_v58 = vld [vmem:[%s9604_s12 + $0x8] sm:$0xff]  }
 0x3d2   : > { %v5206_v15 = vpack.c.bf16 %v5198_v45, %v5196_v41  ;;  %v7132_v41 = vld [vmem:[%s9604_s12 + $0x18] sm:$0xff]   ;;  %v7133_v45 = vld [vmem:[%s9604_s12 + $0x10] sm:$0xff]  }
 0x3d4   : > { %5398 = vmatprep.mubr.bf16.mxu0 %v5206_v15  ;;  %6574 = vmatpush3.bf16.msra.mxu0 %v7130_v31  ;;  %v7135_v15 = vld [vmem:[%s9604_s12] sm:$0xff]  }
 0x3d5   : > { %5399 = vmatmul.mubr.bf16.gmra.mxu0 %v5205_v50  ;;  %6575 = vmatprep.subr.bf16.mxu0 %v7131_v56 }
 0x3d8   : > { %6576 = vmatpush3.bf16.msra.mxu0 %v7131_v56 }
 0x3d9   : > { %6577 = vmatprep.subr.bf16.mxu0 %v7132_v41 }
 0x3dc   : > { %6578 = vmatpush3.bf16.msra.mxu0 %v7132_v41 }
 0x3dd   : > { %6579 = vmatprep.subr.bf16.mxu0 %v7133_v45 }
 0x3e0   : > { %6580 = vmatpush3.bf16.msra.mxu0 %v7133_v45 }
 0x3e1   : > { %6581 = vmatprep.subr.bf16.mxu0 %v7134_v58 }
 0x3e4   : > { %6582 = vmatpush3.bf16.msra.mxu0 %v7134_v58 }
 0x3e5   : > { %6583 = vmatprep.subr.bf16.mxu0 %v7135_v15 }
 0x3e8   : > { %6584 = vmatpush3.bf16.msra.mxu0 %v7135_v15 }
 0x47d   : > { %v6482_v16 = vpop.f32.mrf.mxu0 }
 0x47f   : > { %v6483_v9 = vpop.f32.mrf.mxu0 }
 0x480   : > { %v6484_v32 = vadd.f32 %v6483_v9, %v6482_v16 }
 0x481   : > { %v6485_v53 = vpop.f32.mrf.mxu0 }
 0x482   : > { %v5377_v63 = vadd.f32 %v6484_v32, %v6421_v26 }
 0x483   : > { %v6486_v21 = vpop.f32.mrf.mxu0 }
 0x484   : > { %v6487_v24 = vadd.f32 %v6486_v21, %v6485_v53  ;;  %v5407_v1 = vmax.f32 %v5377_v63, 0.0 }
 0x485   : > { %v6488_v22 = vpop.f32.mrf.mxu0 }
 0x486   : > { %v5380_v20 = vadd.f32 %v6487_v24, %v6421_v26 }
 0x487   : > { %v6489_v19 = vpop.f32.mrf.mxu0 }
 0x488   : > { %v5408_v44 = vmax.f32 %v5380_v20, 0.0  ;;  %v6490_v38 = vadd.f32 %v6489_v19, %v6488_v22 }
 0x489   : > { %v6491_v3 = vpop.f32.mrf.mxu0 }
 0x48a   : > { %v5415_v36 = vpack.c.bf16 %v5408_v44, %v5407_v1  ;;  %v5385_v47 = vadd.f32 %v6490_v38, %v6421_v26 }
 0x48b   : > { %v6492_v17 = vpop.f32.mrf.mxu0 }
 0x48c   : > { %v6493_v49 = vadd.f32 %v6492_v17, %v6491_v3  ;;  %6551 = vmatprep.mubr.bf16.mxu1 %v5415_v36  ;;  %v5409_v57 = vmax.f32 %v5385_v47, 0.0 }
 0x48d   : > { %v6494_v8 = vpop.f32.mrf.mxu0 }
 0x48e   : > { %v5388_v60 = vadd.f32 %v6493_v49, %v6421_v26 }
 0x48f   : > { %v6495_v0 = vpop.f32.mrf.mxu0 }
 0x490   : > { %v5410_v2 = vmax.f32 %v5388_v60, 0.0  ;;  %v6496_v6 = vadd.f32 %v6495_v0, %v6494_v8 }
 0x491   : > { %v6497_v30 = vpop.f32.mrf.mxu0 }
 0x492   : > { %v5416_v13 = vpack.c.bf16 %v5410_v2, %v5409_v57  ;;  %v5393_v7 = vadd.f32 %v6496_v6, %v6421_v26 }
 0x493   : > { %v6498_v29 = vpop.f32.mrf.mxu0 }
 0x494   : > { %v6499_v5 = vadd.f32 %v6498_v29, %v6497_v30  ;;  %6552 = vmatmul.mubr.bf16.vlgmr.msra.gmra.mxu1 %v5416_v13  ;;  %v5411_v25 = vmax.f32 %v5393_v7, 0.0 }
 0x495   : > { %v6500_v51 = vpop.f32.mrf.mxu0  ;;  %6560 = vmatpush3.bf16.msra.mxu1 %v7123_v4 }
 0x496   : > { %v5396_v18 = vadd.f32 %v6499_v5, %v6421_v26  ;;  %v6455_v5 = vld [vmem:[%s9605_s13] ss:$0 sm:$0xff] }
 0x497   : > { %v6501_v59 = vpop.f32.mrf.mxu0 }
 0x498   : > { %v5412_v39 = vmax.f32 %v5396_v18, 0.0  ;;  %v6502_v54 = vadd.f32 %v6501_v59, %v6500_v51 }
 0x499   : > { %v6503_v35 = vpop.f32.mrf.mxu0 }
 0x49a   : > { %v5417_v37 = vpack.c.bf16 %v5412_v39, %v5411_v25  ;;  %v5401_v27 = vadd.f32 %v6502_v54, %v6421_v26 }
 0x49b   : > { %v6504_v48 = vpop.f32.mrf.mxu0 }
 0x49c   : > { %v6505_v43 = vadd.f32 %v6504_v48, %v6503_v35  ;;  %6555 = vmatprep.mubr.bf16.mxu1 %v5417_v37  ;;  %v5413_v46 = vmax.f32 %v5401_v27, 0.0 }
 0x49e   : > { %v5404_v23 = vadd.f32 %v6505_v43, %v6421_v26 }
 0x4a0   : > { %v5414_v40 = vmax.f32 %v5404_v23, 0.0 }
 0x4a2   : > { %v5418_v33 = vpack.c.bf16 %v5414_v40, %v5413_v46 }
 0x4a4   : > { %6556 = vmatmul.mubr.bf16.gmra.mxu1 %v5418_v33 }
 0x4a5   : > { %6561 = vmatprep.mubr.msk.bf16.mxu1 %vm5584_vm0, %v7124_v61 }
 0x4ac   : > { %6562 = vmatmul.mubr.msk.bf16.vlgmr.msra.gmra.mxu1 %vm5584_vm0, %v7125_v10 }
 0x4ad   : > { %6565 = vmatprep.mubr.msk.bf16.mxu1 %vm5584_vm0, %v7126_v34 }
 0x4b4   : > { %6566 = vmatmul.mubr.msk.bf16.gmra.mxu1 %vm5584_vm0, %v7127_v55 }
 0x554   : > { %v6553_v50 = vpop.f32.mrf.mxu1 }
 0x556   : > { %v5527_v11 = vpop.f32.mrf.mxu1 }
 0x558   : > { %v6554_v62 = vpop.f32.mrf.mxu1 }
 0x55a   : > { %v5530_v14 = vpop.f32.mrf.mxu1 }
 0x564   : > { %v6557_v52 = vpop.f32.mrf.mxu1 }
 0x566   : > { %v5543_v12 = vpop.f32.mrf.mxu1 }
 0x568   : > { %v6558_v4 = vpop.f32.mrf.mxu1 }
 0x56a   : > { %v5546_v16 = vpop.f32.mrf.mxu1 }
 0x56c   : > { %v6563_v9 = vpop.f32.mrf.mxu1 }
 0x56d   : > { %v5640_v63 = vadd.f32 %v6563_v9, %v6553_v50 }
 0x56e   : > { %v5631_v32 = vpop.f32.mrf.mxu1 }
 0x56f   : > { %v5632_v26 = vadd.f32 %v5631_v32, %v5527_v11 }
 0x570   : > { %v6564_v53 = vpop.f32.mrf.mxu1 }
 0x571   : > { %v5643_v21 = vadd.f32 %v6564_v53, %v6554_v62  ;;  %7136 = vtanh.f32 %v5632_v26 }
 0x572   : > { %v5634_v24 = vpop.f32.mrf.mxu1 }
 0x573   : > { %v5635_v22 = vadd.f32 %v5634_v24, %v5530_v14  ;;  %7138 = vtanh.f32 %v5643_v21 }
 0x574   : > { %v6567_v20 = vpop.f32.mrf.mxu1 }
 0x575   : > { %7140 = vtanh.f32 %v5635_v22  ;;  %v5656_v3 = vadd.f32 %v6567_v20, %v6557_v52 }
 0x576   : > { %7142 = vtanh.f32 %v5640_v63  ;;  %v5647_v19 = vpop.f32.mrf.mxu1 }
 0x577   : > { %v5648_v1 = vadd.f32 %v5647_v19, %v5543_v12 }
 0x578   : > { %v6568_v44 = vpop.f32.mrf.mxu1 }
 0x579   : > { %v5659_v38 = vadd.f32 %v6568_v44, %v6558_v4  ;;  %7144 = vtanh.f32 %v5648_v1 }
 0x57a   : > { %v5650_v36 = vpop.f32.mrf.mxu1 }
 0x57b   : > { %v5651_v17 = vadd.f32 %v5650_v36, %v5546_v16  ;;  %7146 = vtanh.f32 %v5659_v38 }
 0x57d   : > { %7148 = vtanh.f32 %v5651_v17 }
 0x57e   : > { %7150 = vtanh.f32 %v5656_v3  ;;  %v7137_v47 = vpop.eup %7136 }
 0x580   : > { %v7139_v49 = vpop.eup %7138 }
 0x582   : > { %v7141_v8 = vpop.eup %7140 }
 0x583   : > { %v7143_v60 = vpop.eup %7142  ;;  %v5670_v0 = vpack.c.bf16 %v7141_v8, %v7137_v47 }
 0x584   : > { %v5671_v57 = vpack.c.bf16 %v7139_v49, %v7143_v60 }
 0x585   : > { %6585 = vmatprep.mubr.bf16.mxu0 %v5670_v0 }
 0x586   : > { %6586 = vmatmul.mubr.bf16.vlgmr.msra.gmra.mxu0 %v5671_v57  ;;  %v7145_v2 = vpop.eup %7144 }
 0x588   : > { %v7147_v6 = vpop.eup %7146 }
 0x58a   : > { %v7149_v30 = vpop.eup %7148 }
 0x58b   : > { %v7151_v13 = vpop.eup %7150  ;;  %v5672_v29 = vpack.c.bf16 %v7149_v30, %v7145_v2 }
 0x58c   : > { %v5673_v7 = vpack.c.bf16 %v7147_v6, %v7151_v13 }
 0x58d   : > { %6589 = vmatprep.mubr.bf16.mxu0 %v5672_v29 }
 0x58e   : > { %6590 = vmatmul.mubr.bf16.gmra.mxu0 %v5673_v7 }
 0x646   : > { %v6587_v51 = vpop.f32.mrf.mxu0 }
 0x647   : > { %v5788_v18 = vadd.f32 %v6587_v51, %v6455_v5 }
 0x648   : > { %v5779_v59 = vpop.f32.mrf.mxu0 }
 0x649   : > { %5812 = vst [vmem:[%s494_s22 + $0x10] sm:$0xff] %v5788_v18  ;;  %v5780_v25 = vadd.f32 %v6455_v5, %v5779_v59 }
 0x64a   : > { %v6588_v39 = vpop.f32.mrf.mxu0 }
 0x64b   : > { %5810 = vst [vmem:[%s494_s22] sm:$0xff] %v5780_v25  ;;  %v5791_v54 = vadd.f32 %v6588_v39, %v6455_v5 }
 0x64c   : > { %v5782_v35 = vpop.f32.mrf.mxu0 }
 0x64d   : > { %5813 = vst [vmem:[%s494_s22 + $0x18] sm:$0xff] %v5791_v54  ;;  %v5783_v37 = vadd.f32 %v6455_v5, %v5782_v35 }
 0x64e   : > { %v6591_v48 = vpop.f32.mrf.mxu0 }
 0x64f   : > { %5811 = vst [vmem:[%s494_s22 + $0x8] sm:$0xff] %v5783_v37  ;;  %v5804_v27 = vadd.f32 %v6591_v48, %v6455_v5 }
 0x650   : > { %v5795_v43 = vpop.f32.mrf.mxu0 }
 0x651   : > { %5816 = vst [vmem:[%s494_s22 + $0x30] sm:$0xff] %v5804_v27  ;;  %v5796_v23 = vadd.f32 %v6455_v5, %v5795_v43 }
 0x652   : > { %v6592_v46 = vpop.f32.mrf.mxu0 }
 0x653   : > { %5814 = vst [vmem:[%s494_s22 + $0x20] sm:$0xff] %v5796_v23  ;;  %v5807_v40 = vadd.f32 %v6592_v46, %v6455_v5 }
 0x654   : > { %v5798_v61 = vpop.f32.mrf.mxu0 }
 0x655   : > { %5817 = vst [vmem:[%s494_s22 + $0x38] sm:$0xff] %v5807_v40  ;;  %v5799_v33 = vadd.f32 %v6455_v5, %v5798_v61 }
 0x657   : > { %5815 = vst [vmem:[%s494_s22 + $0x28] sm:$0xff] %v5799_v33 }
 0x658 PF: > { %s24_s29 = sadd.s32 1, %s7170_s29  }
 0x659   : > { %p21_p4 = scmp.ge.s32.totalorder %s24_s29, 4  }
 0x65b   :  { %23 = sbr.rel (!%p21_p4) target bundleno = 1 (0x1), region = 109 }

</bundles_post_ra>
